<compile_context>
chip_gen: v7x
topology: tpu7x:2x2x1
jax: 0.10.0
libtpu: 0.0.40
codegen_flags: <defaults>
</compile_context>

<pallas_src>
import functools

import jax
import jax.numpy as jnp
from jax.experimental import pallas as pl
from jax.experimental.pallas import tpu as pltpu


# ---------------------------------------------------------------------------
# Fused layers 1-3 kernel (layer-3 output returned as per-core partial sums)
# ---------------------------------------------------------------------------
def _fused_mlp123_kernel(x_ref, w1_ref, b1_ref, w2_ref, b2_ref, w3_ref,
                         o_ref, h1_ref, acc_ref):
    """One (core, tile) step.

    Per step (grid axes: c 'parallel' over W2-column / W3-row halves,
    j 'arbitrary' over 512-wide tiles within a half):
      j == 0 :  h1  = relu(x @ W1 + b1)          (resident weights, per core)
                acc = 0
      every j:  h2t = relu(h1 @ W2[:, cols] + b2[cols])
                acc += h2t @ W3[cols, :]          (layer-3 K-partial sum)
      last j :  o[c] = acc   (pre-b3 / pre-ReLU partial; wrapper finishes)
    """
    j = pl.program_id(1)

    @pl.when(j == 0)
    def _init():
        h1 = jnp.dot(x_ref[...], w1_ref[...],
                     preferred_element_type=jnp.float32)
        h1_ref[...] = jnp.maximum(h1 + b1_ref[...], 0.0).astype(jnp.bfloat16)
        acc_ref[...] = jnp.zeros_like(acc_ref)

    h2 = jnp.dot(h1_ref[...], w2_ref[...], preferred_element_type=jnp.float32)
    h2 = jnp.maximum(h2 + b2_ref[...], 0.0).astype(jnp.bfloat16)
    acc_ref[...] += jnp.dot(h2, w3_ref[...],
                            preferred_element_type=jnp.float32)

    @pl.when(j == pl.num_programs(1) - 1)
    def _finalize():
        o_ref[...] = acc_ref[...]


def fused_layers_123(x, w1, b1, w2, b2, w3, *, tn=512, n_split=2):
    """relu-MLP layers 1-3 (pre-b3 / pre-ReLU), as n_split per-core partials.

    x : (M, dim) ; w1: (dim, 2048) ; w2: (2048, 2048) ; w3: (2048, 1024)
    Returns (n_split*M, 1024) f32; summing the n_split row-blocks gives
    relu(relu(x W1 + b1) W2 + b2) @ W3.
    """
    M, K = x.shape
    K1, H1 = w1.shape
    H1b, H2 = w2.shape
    H2b, H3 = w3.shape
    assert K == K1 and H1 == H1b and H2 == H2b, (
        x.shape, w1.shape, w2.shape, w3.shape)
    # TODO(synk): tile M (multiples of 128) for large batches; the whole-M
    # block + VMEM scratch layout here is only sized for small batches.
    assert M % 8 == 0 and M <= 512, "small-batch kernel: tile M if batch grows"
    assert H2 % n_split == 0
    cols_per_core = H2 // n_split
    tn = min(tn, cols_per_core)
    assert cols_per_core % tn == 0 and tn % 128 == 0, (tn, cols_per_core)
    n_j = cols_per_core // tn

    x = x.astype(jnp.bfloat16)
    w1 = w1.astype(jnp.bfloat16)
    w2 = w2.astype(jnp.bfloat16)
    w3 = w3.astype(jnp.bfloat16)
    b1_2d = b1.reshape(1, H1).astype(jnp.float32)
    b2_2d = b2.reshape(1, H2).astype(jnp.float32)

    # Constant-index (resident) inputs: fetched once, single-buffered.
    resident = functools.partial(pl.BlockSpec, pipeline_mode=pl.Buffered(1))

    flops = 2 * M * (K * H1 + H1 * H2 + H2 * H3)
    bytes_accessed = int(
        M * K * 2                     # x (bf16)
        + (K * H1 + H1 * H2 + H2 * H3) * 2   # bf16 weights
        + (H1 + H2) * 4               # f32 biases
        + n_split * M * H3 * 4)       # f32 partial outputs

    return pl.pallas_call(
        _fused_mlp123_kernel,
        out_shape=jax.ShapeDtypeStruct((n_split * M, H3), jnp.float32),
        grid_spec=pltpu.PrefetchScalarGridSpec(
            num_scalar_prefetch=0,
            grid=(n_split, n_j),
            in_specs=[
                resident((M, K), lambda c, j: (0, 0)),    # x   (resident)
                resident((K, H1), lambda c, j: (0, 0)),   # W1  (resident)
                resident((1, H1), lambda c, j: (0, 0)),   # b1  (resident)
                pl.BlockSpec((H1, tn), lambda c, j: (0, c * n_j + j)),  # W2
                pl.BlockSpec((1, tn), lambda c, j: (0, c * n_j + j)),   # b2
                pl.BlockSpec((tn, H3), lambda c, j: (c * n_j + j, 0)),  # W3
            ],
            out_specs=pl.BlockSpec((M, H3), lambda c, j: (c, 0)),
            scratch_shapes=[
                pltpu.VMEM((M, H1), jnp.bfloat16),   # h1 = relu(x W1 + b1)
                pltpu.VMEM((M, H3), jnp.float32),    # layer-3 partial accum
            ],
        ),
        compiler_params=pltpu.CompilerParams(
            dimension_semantics=("parallel", "arbitrary"),
        ),
        cost_estimate=pl.CostEstimate(
            flops=flops, transcendentals=0, bytes_accessed=bytes_accessed),
    )(x, w1, b1_2d, w2, b2_2d, w3)


# ---------------------------------------------------------------------------
# boundaryDetector forward: one fused Pallas kernel + tiny layer-4 in XLA
# ---------------------------------------------------------------------------
def init_params(key, dim):
    """Deterministic parameter init (PyTorch-like uniform bounds), f32."""
    sizes = [(dim, 2048), (2048, 2048), (2048, 1024), (1024, 2)]
    params = []
    for (fan_in, fan_out) in sizes:
        key, kw, kb = jax.random.split(key, 3)
        bound = 1.0 / jnp.sqrt(fan_in)
        w = jax.random.uniform(kw, (fan_in, fan_out), jnp.float32, -bound, bound)
        b = jax.random.uniform(kb, (fan_out,), jnp.float32, -bound, bound)
        params.append((w, b))
    return params


@jax.jit
def boundary_detector_forward(attention, params):
    (w1, b1), (w2, b2), (w3, b3), (w4, b4) = params
    x = attention.astype(jnp.bfloat16)
    M = x.shape[0]
    # Layers 1-3 in one weight-bandwidth-bound Pallas call (per-core partials).
    partials = fused_layers_123(x, w1, b1, w2, b2, w3)
    h3 = jnp.maximum(
        partials.reshape(2, M, -1).sum(axis=0) + b3.astype(jnp.float32), 0.0)
    # Layer 4 (1024 -> 2, ~16 KFLOP) stays in XLA: a 2-lane-wide Pallas output
    # tile would only add a launch plus masked partial stores.
    out = jnp.dot(h3.astype(jnp.bfloat16), w4.astype(jnp.bfloat16),
                  preferred_element_type=jnp.float32)
    return out + b4.astype(jnp.float32)


def reference_forward(attention, params):
    """Pure-JAX reference with the same bf16/f32 dtype choices as the kernel."""
    x = attention.astype(jnp.bfloat16)
    n = len(params)
    for i, (w, b) in enumerate(params):
        y = jnp.dot(x, w.astype(jnp.bfloat16),
                    preferred_element_type=jnp.float32) + b.astype(jnp.float32)
        if i < n - 1:
            x = jnp.maximum(y, 0.0).astype(jnp.bfloat16)
        else:
            return y


if __name__ == "__main__":
    key = jax.random.PRNGKey(0)
    dim = 256         # input feature dimension
    batch = 8         # small batch of attention vectors

    k_in, k_params = jax.random.split(key)
    attention = jax.random.normal(k_in, (batch, dim), dtype=jnp.float32)
    params_f32 = init_params(k_params, dim)
    # bf16 weights (bandwidth-bound workload); biases stay f32.
    params = [(w.astype(jnp.bfloat16), b) for (w, b) in params_f32]

    out = boundary_detector_forward(attention, params)
    out = jax.block_until_ready(out)

    ref = reference_forward(attention, params)
    assert out.shape == (batch, 2), out.shape
    assert jnp.allclose(out, ref, atol=1e-2, rtol=1e-2), "mismatch vs reference"

    print("KERNEL_OK")
</pallas_src>

<mosaic_0001>
module attributes {stable_mosaic.version = 11 : i64} {
  func.func @_fused_mlp123_kernel(%arg0: i32, %arg1: i32, %arg2: memref<8x256xbf16, #tpu.memory_space<vmem>>, %arg3: memref<256x2048xbf16, #tpu.memory_space<vmem>>, %arg4: memref<1x2048xf32, #tpu.memory_space<vmem>>, %arg5: memref<2048x512xbf16, #tpu.memory_space<vmem>>, %arg6: memref<1x512xf32, #tpu.memory_space<vmem>>, %arg7: memref<512x1024xbf16, #tpu.memory_space<vmem>>, %arg8: memref<8x1024xf32, #tpu.memory_space<vmem>>, %arg9: memref<8x2048xbf16, #tpu.memory_space<vmem>>, %arg10: memref<8x1024xf32, #tpu.memory_space<vmem>>) attributes {dimension_semantics = [#tpu.dimension_semantics<parallel>, #tpu.dimension_semantics<arbitrary>], iteration_bounds = array<i64: 2, 2>, scalar_prefetch = 0 : i64, scratch_operands = 2 : i64, tpu.core_type = #tpu.core_type<tc>, window_params = [{pipeline_mode = #tpu.pipeline_mode<synchronous>, transform_indices = @transform_0, window_bounds = array<i64: 8, 256>}, {pipeline_mode = #tpu.pipeline_mode<synchronous>, transform_indices = @transform_1, window_bounds = array<i64: 256, 2048>}, {pipeline_mode = #tpu.pipeline_mode<synchronous>, transform_indices = @transform_2, window_bounds = array<i64: 1, 2048>}, {transform_indices = @transform_3, window_bounds = array<i64: 2048, 512>}, {transform_indices = @transform_4, window_bounds = array<i64: 1, 512>}, {transform_indices = @transform_5, window_bounds = array<i64: 512, 1024>}, {transform_indices = @transform_6, window_bounds = array<i64: 8, 1024>}]} {
    %c0_i32 = arith.constant 0 : i32
    %0 = arith.cmpi eq, %arg1, %c0_i32 : i32
    %1 = arith.extui %0 : i1 to i32
    %c0_i32_0 = arith.constant 0 : i32
    %2 = arith.cmpi ne, %1, %c0_i32_0 : i32
    scf.if %2 {
      %c0_15 = arith.constant 0 : index
      %c0_16 = arith.constant 0 : index
      %20 = vector.load %arg2[%c0_15, %c0_16] : memref<8x256xbf16, #tpu.memory_space<vmem>>, vector<8x256xbf16>
      %c0_17 = arith.constant 0 : index
      %c0_18 = arith.constant 0 : index
      %21 = vector.load %arg3[%c0_17, %c0_18] : memref<256x2048xbf16, #tpu.memory_space<vmem>>, vector<256x2048xbf16>
      %cst_19 = arith.constant dense<0.000000e+00> : vector<8x2048xf32>
      %22 = tpu.matmul %20, %21, %cst_19 {dimension_numbers = #tpu.dot_dimension_numbers<[1], [0], [0], [1], [0, 0, 1, 1], [], []>} : vector<8x256xbf16>, vector<256x2048xbf16>, vector<8x2048xf32> -> vector<8x2048xf32>
      %c0_20 = arith.constant 0 : index
      %c0_21 = arith.constant 0 : index
      %23 = vector.load %arg4[%c0_20, %c0_21] : memref<1x2048xf32, #tpu.memory_space<vmem>>, vector<1x2048xf32>
      %24 = vector.broadcast %23 : vector<1x2048xf32> to vector<8x2048xf32>
      %25 = arith.addf %22, %24 : vector<8x2048xf32>
      %cst_22 = arith.constant 0.000000e+00 : f32
      %26 = vector.broadcast %cst_22 : f32 to vector<8x2048xf32>
      %27 = arith.maximumf %25, %26 : vector<8x2048xf32>
      %28 = arith.truncf %27 : vector<8x2048xf32> to vector<8x2048xbf16>
      %c0_23 = arith.constant 0 : index
      %c0_24 = arith.constant 0 : index
      %29 = vector.load %arg9[%c0_23, %c0_24] : memref<8x2048xbf16, #tpu.memory_space<vmem>>, vector<8x2048xbf16>
      tpu.vector_store %arg9[%c0_23, %c0_24], %28 {strides = array<i32>} : memref<8x2048xbf16, #tpu.memory_space<vmem>>, vector<8x2048xbf16>,
      %cst_25 = arith.constant 0.000000e+00 : f32
      %30 = vector.broadcast %cst_25 : f32 to vector<8x1024xf32>
      %c0_26 = arith.constant 0 : index
      %c0_27 = arith.constant 0 : index
      %31 = vector.load %arg10[%c0_26, %c0_27] : memref<8x1024xf32, #tpu.memory_space<vmem>>, vector<8x1024xf32>
      tpu.vector_store %arg10[%c0_26, %c0_27], %30 {strides = array<i32>} : memref<8x1024xf32, #tpu.memory_space<vmem>>, vector<8x1024xf32>,
    } else {
    }
    %c0 = arith.constant 0 : index
    %c0_1 = arith.constant 0 : index
    %3 = vector.load %arg9[%c0, %c0_1] : memref<8x2048xbf16, #tpu.memory_space<vmem>>, vector<8x2048xbf16>
    %c0_2 = arith.constant 0 : index
    %c0_3 = arith.constant 0 : index
    %4 = vector.load %arg5[%c0_2, %c0_3] : memref<2048x512xbf16, #tpu.memory_space<vmem>>, vector<2048x512xbf16>
    %cst = arith.constant dense<0.000000e+00> : vector<8x512xf32>
    %5 = tpu.matmul %3, %4, %cst {dimension_numbers = #tpu.dot_dimension_numbers<[1], [0], [0], [1], [0, 0, 1, 1], [], []>} : vector<8x2048xbf16>, vector<2048x512xbf16>, vector<8x512xf32> -> vector<8x512xf32>
    %c0_4 = arith.constant 0 : index
    %c0_5 = arith.constant 0 : index
    %6 = vector.load %arg6[%c0_4, %c0_5] : memref<1x512xf32, #tpu.memory_space<vmem>>, vector<1x512xf32>
    %7 = vector.broadcast %6 : vector<1x512xf32> to vector<8x512xf32>
    %8 = arith.addf %5, %7 : vector<8x512xf32>
    %cst_6 = arith.constant 0.000000e+00 : f32
    %9 = vector.broadcast %cst_6 : f32 to vector<8x512xf32>
    %10 = arith.maximumf %8, %9 : vector<8x512xf32>
    %11 = arith.truncf %10 : vector<8x512xf32> to vector<8x512xbf16>
    %c0_7 = arith.constant 0 : index
    %c0_8 = arith.constant 0 : index
    %12 = vector.load %arg10[%c0_7, %c0_8] : memref<8x1024xf32, #tpu.memory_space<vmem>>, vector<8x1024xf32>
    %c0_9 = arith.constant 0 : index
    %c0_10 = arith.constant 0 : index
    %13 = vector.load %arg7[%c0_9, %c0_10] : memref<512x1024xbf16, #tpu.memory_space<vmem>>, vector<512x1024xbf16>
    %cst_11 = arith.constant dense<0.000000e+00> : vector<8x1024xf32>
    %14 = tpu.matmul %11, %13, %cst_11 {dimension_numbers = #tpu.dot_dimension_numbers<[1], [0], [0], [1], [0, 0, 1, 1], [], []>} : vector<8x512xbf16>, vector<512x1024xbf16>, vector<8x1024xf32> -> vector<8x1024xf32>
    %15 = arith.addf %12, %14 : vector<8x1024xf32>
    %c0_12 = arith.constant 0 : index
    %c0_13 = arith.constant 0 : index
    %16 = vector.load %arg10[%c0_12, %c0_13] : memref<8x1024xf32, #tpu.memory_space<vmem>>, vector<8x1024xf32>
    tpu.vector_store %arg10[%c0_12, %c0_13], %15 {strides = array<i32>} : memref<8x1024xf32, #tpu.memory_space<vmem>>, vector<8x1024xf32>,
    %c1_i32 = arith.constant 1 : i32
    %17 = arith.cmpi eq, %arg1, %c1_i32 : i32
    %18 = arith.extui %17 : i1 to i32
    %c0_i32_14 = arith.constant 0 : i32
    %19 = arith.cmpi ne, %18, %c0_i32_14 : i32
    scf.if %19 {
      %c0_15 = arith.constant 0 : index
      %c0_16 = arith.constant 0 : index
      %20 = vector.load %arg10[%c0_15, %c0_16] : memref<8x1024xf32, #tpu.memory_space<vmem>>, vector<8x1024xf32>
      %c0_17 = arith.constant 0 : index
      %c0_18 = arith.constant 0 : index
      %21 = vector.load %arg8[%c0_17, %c0_18] : memref<8x1024xf32, #tpu.memory_space<vmem>>, vector<8x1024xf32>
      tpu.vector_store %arg8[%c0_17, %c0_18], %20 {strides = array<i32>} : memref<8x1024xf32, #tpu.memory_space<vmem>>, vector<8x1024xf32>,
    } else {
    }
    return
  }
  func.func @transform_0(%arg0: i32, %arg1: i32) -> (i32, i32) {
    %c0_i32 = arith.constant 0 : i32
    %c0_i32_0 = arith.constant 0 : i32
    %c0_i32_1 = arith.constant 0 : i32
    return %c0_i32, %c0_i32_0 : i32, i32
  }
  func.func @transform_1(%arg0: i32, %arg1: i32) -> (i32, i32) {
    %c0_i32 = arith.constant 0 : i32
    %c0_i32_0 = arith.constant 0 : i32
    %c0_i32_1 = arith.constant 0 : i32
    return %c0_i32, %c0_i32_0 : i32, i32
  }
  func.func @transform_2(%arg0: i32, %arg1: i32) -> (i32, i32) {
    %c0_i32 = arith.constant 0 : i32
    %c0_i32_0 = arith.constant 0 : i32
    %c0_i32_1 = arith.constant 0 : i32
    return %c0_i32, %c0_i32_0 : i32, i32
  }
  func.func @transform_3(%arg0: i32, %arg1: i32) -> (i32, i32) {
    %c2_i32 = arith.constant 2 : i32
    %0 = arith.muli %arg0, %c2_i32 : i32
    %1 = arith.addi %0, %arg1 : i32
    %c0_i32 = arith.constant 0 : i32
    %c0_i32_0 = arith.constant 0 : i32
    return %c0_i32, %1 : i32, i32
  }
  func.func @transform_4(%arg0: i32, %arg1: i32) -> (i32, i32) {
    %c2_i32 = arith.constant 2 : i32
    %0 = arith.muli %arg0, %c2_i32 : i32
    %1 = arith.addi %0, %arg1 : i32
    %c0_i32 = arith.constant 0 : i32
    %c0_i32_0 = arith.constant 0 : i32
    return %c0_i32, %1 : i32, i32
  }
  func.func @transform_5(%arg0: i32, %arg1: i32) -> (i32, i32) {
    %c2_i32 = arith.constant 2 : i32
    %0 = arith.muli %arg0, %c2_i32 : i32
    %1 = arith.addi %0, %arg1 : i32
    %c0_i32 = arith.constant 0 : i32
    %c0_i32_0 = arith.constant 0 : i32
    return %1, %c0_i32 : i32, i32
  }
  func.func @transform_6(%arg0: i32, %arg1: i32) -> (i32, i32) {
    %c0_i32 = arith.constant 0 : i32
    %c0_i32_0 = arith.constant 0 : i32
    return %arg0, %c0_i32 : i32, i32
  }
}

</mosaic_0001>

<bundles_post_ra>
// kernel: boundary_detector_forward.1
= control target key start
LH: loop header
LB: loop body
LE: loop exit
PB: predicated region body
PF: predicated region fallthrough
CT: control target
= control target key end

     0   :  { %s11862_s0 = inlined_call_operand.vmem [shape: bf16[8,256], index: 0, kind: input, shape index: {}]   ;;  %s11863_s1 = inlined_call_operand.hbm [shape: bf16[256,2048], index: 1, kind: input, shape index: {}]   ;;  %s11864_s2 = inlined_call_operand.hbm [shape: f32[1,2048], index: 2, kind: input, shape index: {}]   ;;  %s11865_s3 = inlined_call_operand.hbm [shape: bf16[2048,2048], index: 3, kind: input, shape index: {}]   ;;  %s11866_s4 = inlined_call_operand.hbm [shape: f32[1,2048], index: 4, kind: input, shape index: {}]   ;;  %s11867_s5 = inlined_call_operand.hbm [shape: bf16[2048,1024], index: 5, kind: input, shape index: {}]   ;;  %s11868_s6 = inlined_call_operand.vmem [shape: f32[16,1024], index: 6, kind: output, shape index: {}]  }
   0x1   :  { %11887 = sst [smem:[#allocation20_spill]] %s11862_s0 }
   0x2   :  { %11888 = sst [smem:[#allocation21_spill]] %s11863_s1 }
   0x3   :  { %11889 = sst [smem:[#allocation22_spill]] %s11865_s3 }
   0x4   :  { %11890 = sst [smem:[#allocation23_spill]] %s11868_s6 }
   0x5   :  { %11 = vsyncpa [#allocation5], 0 }
   0x6   :  { %12 = vsyncpa [#allocation7], 0  ;;  %s10662_s21 = smov 0   ;;  %s10664_s22 = smov 0  }
   0x7   :  { %s10666_s23 = smov 0   ;;  %s10668_s24 = smov 0  }
   0x8   :  { %s10670_s25 = smov 0   ;;  %s10672_s26 = smov 0  }
   0x9   :  { %s10674_s27 = smov 0   ;;  %s10676_s28 = smov 0  }
   0xa LB: > { %11891 = sst [smem:[#allocation14_spill]] %s10597_s24  ;;  %s11874_s29 = sadd.s32 4294967295, %s10613_s28   ;;  %s10613_s28 = sphi %s10676_s28, %s18_s28   ;;  %s10609_s27 = sphi %s10674_s27, %s11930_s27   ;;  %s10605_s26 = sphi %s10672_s26, %s11929_s26   ;;  %s10601_s25 = sphi %s10670_s25, %s11928_s25   ;;  %s10597_s24 = sphi %s10668_s24, %s11927_s24   ;;  %s10593_s23 = sphi %s10666_s23, %s11933_s23   ;;  %s10589_s22 = sphi %s10664_s22, %s11932_s22   ;;  %s10585_s21 = sphi %s10662_s21, %s11931_s21  }
   0xb   : > { %11892 = sst [smem:[#allocation15_spill]] %s10601_s25  ;;  %p111_p0 = scmp.ne.s32.totalorder %s10593_s23, %s10589_s22 }
   0xc   : > { %11893 = sst [smem:[#allocation16_spill]] %s10605_s26  ;;  %p112_p1 = scmp.eq.s32.totalorder %s10613_s28, 0 }
   0xd   : > { %11894 = sst [smem:[#allocation17_spill]] %s10609_s27  ;;  %p117_p2 = scmp.ne.s32.totalorder %s10589_s22, %s10585_s21 }
   0xe   : > { %p10708_p3 = scmp.eq.s32.totalorder %s11874_s29, 0  ;;  %p113_p4 = por %p112_p1, %p111_p0 }
   0xf   : > { %p8346_p5 = scmp.ge.s32.totalorder %s10613_s28, 1  ;;  %p214_p7 = scmp.lt.s32.totalorder %s10613_s28, 5 }
  0x10   : > { %s11895_s7 = scalar_select %p10708_p3, 1, 0 }
  0x11   : > { %p10715_p6 = por %p10708_p3, %p117_p2  ;;  %p10720_p8 = pnand %p8346_p5, %p214_p7 }
  0x12   : > { %s10615_s10 = smov [#allocation4]   ;;  %p9531_p10 = scmp.lt.s32.totalorder %s10613_s28, 4 }
  0x13   : > { %s11896_s8 = scalar_select %p10715_p6, 1, 0 }
  0x14   : > { %s11897_s9 = scalar_select %p10720_p8, 1, 0 }
  0x15   : > { %s229_s11 = sshll.u32 %s10615_s10, 4  ;;  %p9512_p9 = pneg %p10720_p8  ;;  %s230_s11 = int_to_ptr.vmem [resolvable:$true] %s229_s11 }
  0x16   : > { %p10733_p12 = pnand %p9531_p10, %p113_p4  ;;  %s11900_s1 = sld [smem:[#allocation21_spill]] }
  0x17   : > { %p10729_p11 = pnand %p9512_p9, %p10708_p3 }
  0x18   : > { %s11899_s13 = scalar_select %p10733_p12, 1, 0 }
  0x19   : > { %s11898_s12 = scalar_select %p10729_p11, 1, 0 }
  0x1a   : > { %p11878_p0 = pneg %p10729_p11 }
  0x1c   : > { %s10393_s16 = scalar_lea.hbm %s11900_s1, 32768 }
  0x1d   : > { %p10394_p13 = scmp.ne.s32.totalorder %s11900_s1, %s10393_s16  ;;  %p10400_p4 = scmp.lt.u32.totalorder %s10393_s16, %s11900_s1 }
  0x1f   : > { %p10396_p1 = pnand %p11878_p0, %p10394_p13 }
  0x21   : > { %p10397_p2 = pneg %p10396_p1 }
  0x23   : > { %p10402_p5 = pnand %p10400_p4, %p10397_p2 }
  0x25   : > { %10405 = shalt.err (!%p10402_p5)
}
  0x26   : > { %s10406_s21 = scalar_lea.vmem %s230_s11, 32768  ;;  %p10414_p6 = scmp.lt.s32.totalorder %s230_s11, %s230_s11 }
  0x27   : > { %p10407_p7 = scmp.ne.s32.totalorder %s230_s11, %s10406_s21  ;;  %p10415_p3 = scmp.lt.s32.totalorder %s10406_s21, %s10406_s21 }
  0x29   : > { %p10409_p9 = pnand %p10407_p7, %p11878_p0  ;;  %p10416_p8 = por %p10415_p3, %p10414_p6 }
  0x2b   : > { %p10410_p10 = pneg %p10409_p9 }
  0x2d   : > { %p10417_p12 = pnand %p10416_p8, %p10410_p10 }
  0x2f   : > { %10420 = shalt.err (!%p10417_p12)
}
  0x30   : > { %s11875_s10 = smov 1024   ;;  %s10617_s14 = smov 64  }
  0x31   : > { %9515 = dma.hbm_to_vmem [thread:$0]  (!%p10729_p11), %s11900_s1, 32768, %s230_s11, [#allocation5], %s11875_s10, %s11875_s10, %s10617_s14  }
  0x32   : > { %s27_s17 = sadd.s32 1, %s10605_s26  ;;  %s30_s18 = sadd.s32 1, %s10609_s27 }
  0x33   : > { %p28_p3 = scmp.ge.s32.totalorder %s27_s17, 2  ;;  %s8340_s19 = sshll.u32 %s10609_s27, 1 }
  0x34   : > { %s10765_s20 = sadd.s32 %s10605_s26, %s8340_s19  ;;  %s254_s21 = sand.u32 1, %s10613_s28  }
  0x35   : > { %s11935_s17 = smov (%p28_p3, %s27_s17), 0  ;;  %s11937_s18 = smov (!%p28_p3, %s30_s18), %s10609_s27 }
  0x36   : > { %11901 = sst [smem:[#allocation18_spill]] %s11935_s17  ;;  %s10772_s29 = sand.u32 1, %s10593_s23  }
  0x37   : > { %p32_p6 = scmp.ge.s32.totalorder %s11937_s18, 2  ;;  %s8350_s11 = sshll.u32 %s10772_s29, 12 }
  0x38   : > { %s9425_s14 = sshll.u32 %s10765_s20, 8  ;;  %s11903_s3 = sld [smem:[#allocation22_spill]] }
  0x39   : > { %s11939_s18 = smov (%p32_p6, %s11937_s18), 0  ;;  %s258_s30 = scalar_lea.vmem [#allocation8], %s8350_s11 }
  0x3a   : > { %11902 = sst [smem:[#allocation19_spill]] %s11939_s18  ;;  %s267_s10 = sshll.u32 %s258_s30, 4  ;;  %s10784_s10 = int_to_ptr.vmem [resolvable:$true] %s267_s10 }
  0x3b   : > { %s8341_s1 = sshll.u32 %s11939_s18, 1  ;;  %s10793_s15 = scalar_lea.sflag [#allocation5], %s254_s21 }
  0x3c   : > { %s100_s27 = sadd.s32 %s8341_s1, %s11935_s17  ;;  %p11905_p13 = scmp.ne.s32.totalorder %s11899_s13, 0 }
  0x3d   : > { %s101_s26 = ssub.s32 %s10765_s20, %s100_s27 }
  0x3e   : > { %s10781_s19 = scalar_lea.hbm %s11903_s3, %s9425_s14  ;;  %p10788_p8 = scmp.eq.s32.totalorder %s101_s26, 0 }
  0x3f   : > { %s10421_s14 = scalar_lea.hbm %s10781_s19, 65536  ;;  %p10799_p1 = pneg %p11905_p13 }
  0x40   : > { %s11904_s0 = scalar_select %p10788_p8, 1, 0 }
  0x41   : > { %p10422_p12 = scmp.ne.s32.totalorder %s10781_s19, %s10421_s14  ;;  %s10426_s26 = scalar_lea.hbm %s11903_s3, 262144 }
  0x42   : > { %s11906_s16 = scalar_select %p10799_p1, 1, 0 }
  0x43   : > { %p10424_p2 = pnand %p10799_p1, %p10422_p12  ;;  %p10427_p5 = scmp.lt.u32.totalorder %s10781_s19, %s11903_s3 }
  0x44   : > { %p10428_p7 = scmp.lt.u32.totalorder %s10426_s26, %s10421_s14  ;;  %p10430_p10 = scmp.lt.u32.totalorder %s10421_s14, %s10781_s19 }
  0x45   : > { %p10425_p4 = pneg %p10424_p2 }
  0x46   : > { %p10429_p9 = por %p10428_p7, %p10427_p5 }
  0x48   : > { %p10431_p3 = por %p10430_p10, %p10429_p9 }
  0x4a   : > { %p10432_p6 = pnand %p10431_p3, %p10425_p4 }
  0x4c   : > { %10435 = shalt.err (!%p10432_p6)
}
  0x4d   : > { %s10436_s21 = scalar_lea.vmem %s10784_s10, 65536  ;;  %s10618_s1 = smov [#allocation8]  }
  0x4e   : > { %p10437_p12 = scmp.ne.s32.totalorder %s10784_s10, %s10436_s21  ;;  %s10441_s27 = sshll.u32 %s10618_s1, 4  ;;  %s10442_s27 = int_to_ptr.vmem [resolvable:$false] %s10441_s27 }
  0x4f   : > { %s10443_s30 = scalar_lea.vmem %s10442_s27, 131072  ;;  %p10444_p11 = scmp.lt.s32.totalorder %s10784_s10, %s10442_s27 }
  0x50   : > { %p10439_p2 = pnand %p10437_p12, %p10799_p1  ;;  %p10445_p8 = scmp.lt.s32.totalorder %s10443_s30, %s10436_s21 }
  0x52   : > { %p10440_p0 = pneg %p10439_p2  ;;  %p10446_p5 = por %p10445_p8, %p10444_p11 }
  0x54   : > { %p10447_p7 = pnand %p10446_p5, %p10440_p0 }
  0x56   : > { %10450 = shalt.err (!%p10447_p7)
}
  0x57   : > { %s10619_s14 = smov 256   ;;  %s10620_s26 = smov 16  }
  0x58   : > { %s11907_s11 = smov 1024   ;;  %s11908_s1 = sadd.s32 1, %s10593_s23 }
  0x59   : > { %9522 = dma.hbm_to_vmem [thread:$0]  (!%p11905_p13), %s10781_s19, 65536, %s10784_s10, %s10793_s15, %s11907_s11, %s10619_s14, %s10620_s26  }
  0x5a   : > { %p11909_p4 = scmp.ne.s32.totalorder %s11904_s0, 0  ;;  %s9426_s27 = sshll.u32 %s10765_s20, 6 }
  0x5b   : > { %s10835_s3 = scalar_lea.hbm %s11866_s4, %s9426_s27  ;;  %s11910_s18 = sshll.u32 %s10772_s29, 2 }
  0x5c   : > { %s10829_s21 = scalar_select %p11909_p4, %s10593_s23, %s11908_s1  }
  0x5d   : > { %s281_s17 = scalar_lea.vmem [#allocation9], %s11910_s18  ;;  %s10451_s25 = scalar_lea.hbm %s10835_s3, 64 }
  0x5e   : > { %s291_s6 = sshll.u32 %s281_s17, 4  ;;  %p10452_p11 = scmp.ne.s32.totalorder %s10835_s3, %s10451_s25  ;;  %s292_s6 = int_to_ptr.vmem [resolvable:$true] %s291_s6 }
  0x5f   : > { %s10456_s19 = scalar_lea.hbm %s11866_s4, 256  ;;  %p10457_p9 = scmp.lt.u32.totalorder %s10835_s3, %s11866_s4 }
  0x60   : > { %p10454_p0 = pnand %p10452_p11, %p10799_p1  ;;  %p10458_p10 = scmp.lt.u32.totalorder %s10456_s19, %s10451_s25 }
  0x61   : > { %p10460_p6 = scmp.lt.u32.totalorder %s10451_s25, %s10835_s3 }
  0x62   : > { %p10455_p8 = pneg %p10454_p0  ;;  %p10459_p3 = por %p10458_p10, %p10457_p9 }
  0x64   : > { %p10461_p12 = por %p10460_p6, %p10459_p3 }
  0x66   : > { %p10462_p2 = pnand %p10461_p12, %p10455_p8 }
  0x68   : > { %10465 = shalt.err (!%p10462_p2)
}
  0x69   : > { %s10466_s17 = scalar_lea.vmem %s292_s6, 64  ;;  %s10621_s18 = smov [#allocation9]  }
  0x6a   : > { %p10467_p5 = scmp.ne.s32.totalorder %s292_s6, %s10466_s17  ;;  %s10471_s26 = sshll.u32 %s10621_s18, 4  ;;  %s10472_s26 = int_to_ptr.vmem [resolvable:$false] %s10471_s26 }
  0x6b   : > { %s10473_s11 = scalar_lea.vmem %s10472_s26, 128  ;;  %p10474_p11 = scmp.lt.s32.totalorder %s292_s6, %s10472_s26 }
  0x6c   : > { %p10469_p7 = pnand %p10467_p5, %p10799_p1  ;;  %p10475_p0 = scmp.lt.s32.totalorder %s10473_s11, %s10466_s17 }
  0x6e   : > { %p10470_p4 = pneg %p10469_p7  ;;  %p10476_p13 = por %p10475_p0, %p10474_p11 }
  0x70   : > { %p10477_p9 = pnand %p10476_p13, %p10470_p4 }
  0x72   : > { %10480 = shalt.err (!%p10477_p9)
}
  0x73   : > { %p11911_p10 = scmp.ne.s32.totalorder %s11899_s13, 0  ;;  %s10622_s25 = smov [#allocation6]  }
  0x74   : > { %s243_s1 = sshll.u32 %s10622_s25, 4  ;;  %s8358_s27 = sshll.u32 %s10772_s29, 11  ;;  %s244_s1 = int_to_ptr.vmem [resolvable:$true] %s243_s1 }
  0x75   : > { %9525 = dma.hbm_to_vmem [thread:$0]  (!%p11911_p10), %s10835_s3, 64, %s292_s6, %s10793_s15  }
  0x76   : > { %s10481_s10 = scalar_lea.hbm %s11864_s2, 256  ;;  %p11912_p8 = scmp.ne.s32.totalorder %s11898_s12, 0 }
  0x77   : > { %p10482_p13 = scmp.ne.s32.totalorder %s11864_s2, %s10481_s10  ;;  %p10488_p2 = scmp.lt.u32.totalorder %s10481_s10, %s11864_s2 }
  0x78   : > { %p11913_p3 = pneg %p11912_p8 }
  0x7a   : > { %p10484_p6 = pnand %p10482_p13, %p11913_p3 }
  0x7c   : > { %p10485_p12 = pneg %p10484_p6 }
  0x7e   : > { %p10490_p5 = pnand %p10488_p2, %p10485_p12 }
  0x80   : > { %10493 = shalt.err (!%p10490_p5)
}
  0x81   : > { %s10494_s3 = scalar_lea.vmem %s244_s1, 256  ;;  %p11914_p4 = pmov %p11913_p3 }
  0x82   : > { %p10495_p7 = scmp.ne.s32.totalorder %s244_s1, %s10494_s3  ;;  %p10502_p9 = scmp.lt.s32.totalorder %s244_s1, %s244_s1 }
  0x83   : > { %p10503_p10 = scmp.lt.s32.totalorder %s10494_s3, %s10494_s3 }
  0x84   : > { %p10497_p11 = pnand %p10495_p7, %p11914_p4 }
  0x85   : > { %p10504_p1 = por %p10503_p10, %p10502_p9 }
  0x86   : > { %p10498_p0 = pneg %p10497_p11 }
  0x88   : > { %p10505_p3 = pnand %p10504_p1, %p10498_p0 }
  0x8a   : > { %10508 = shalt.err (!%p10505_p3)
}
  0x8b   : > { %9518 = dma.hbm_to_vmem [thread:$0]  (!%p11912_p8), %s11864_s2, 256, %s244_s1, [#allocation7]  }
  0x8c   : > { %s9428_s18 = sshll.u32 %s10765_s20, 15  ;;  %s302_s26 = scalar_lea.vmem [#allocation10], %s8358_s27 }
  0x8d   : > { %s312_s11 = sshll.u32 %s302_s26, 4  ;;  %s10882_s0 = scalar_lea.hbm %s11867_s5, %s9428_s18  ;;  %s10884_s11 = int_to_ptr.vmem [resolvable:$true] %s312_s11 }
  0x8e   : > { %s10509_s12 = scalar_lea.hbm %s10882_s0, 32768  ;;  %p11915_p10 = scmp.ne.s32.totalorder %s11906_s16, 0 }
  0x8f   : > { %p10510_p1 = scmp.ne.s32.totalorder %s10882_s0, %s10509_s12  ;;  %s10514_s27 = scalar_lea.hbm %s11867_s5, 131072 }
  0x90   : > { %p10515_p8 = scmp.lt.u32.totalorder %s10882_s0, %s11867_s5  ;;  %p10516_p12 = scmp.lt.u32.totalorder %s10514_s27, %s10509_s12 }
  0x91   : > { %p10512_p13 = pnand %p10510_p1, %p11915_p10  ;;  %p10518_p5 = scmp.lt.u32.totalorder %s10509_s12, %s10882_s0 }
  0x92   : > { %p10517_p2 = por %p10516_p12, %p10515_p8 }
  0x93   : > { %p10513_p6 = pneg %p10512_p13 }
  0x94   : > { %p10519_p7 = por %p10518_p5, %p10517_p2 }
  0x96   : > { %p10520_p4 = pnand %p10519_p7, %p10513_p6 }
  0x98   : > { %10523 = shalt.err (!%p10520_p4)
}
  0x99   : > { %s10524_s24 = scalar_lea.vmem %s10884_s11, 32768  ;;  %s10623_s14 = smov [#allocation10]  }
  0x9a   : > { %p10525_p11 = scmp.ne.s32.totalorder %s10884_s11, %s10524_s24  ;;  %s10529_s17 = sshll.u32 %s10623_s14, 4  ;;  %s10530_s17 = int_to_ptr.vmem [resolvable:$false] %s10529_s17 }
  0x9b   : > { %s10531_s3 = scalar_lea.vmem %s10530_s17, 65536  ;;  %p10532_p3 = scmp.lt.s32.totalorder %s10884_s11, %s10530_s17 }
  0x9c   : > { %p10527_p0 = pnand %p10525_p11, %p11915_p10  ;;  %p10533_p1 = scmp.lt.s32.totalorder %s10531_s3, %s10524_s24 }
  0x9e   : > { %p10528_p9 = pneg %p10527_p0  ;;  %p10534_p13 = por %p10533_p1, %p10532_p3 }
  0xa0   : > { %p10535_p8 = pnand %p10534_p13, %p10528_p9 }
  0xa2   : > { %10538 = shalt.err (!%p10535_p8)
}
  0xa3   : > { %s10624_s6 = smov 512   ;;  %s10625_s29 = smov 32  }
  0xa4   : > { %p11916_p6 = scmp.ne.s32.totalorder %s11899_s13, 0  ;;  %p11917_p10 = scmp.ne.s32.totalorder %s11897_s9, 0 }
  0xa5   : > { %p11918_p12 = scmp.ne.s32.totalorder (!%p11917_p10), %s11895_s7, 0 }
  0xa6   : > { %9528 = dma.hbm_to_vmem [thread:$0]  (!%p11916_p6), %s10882_s0, 32768, %s10884_s11, %s10793_s15, %s10624_s6, %s10624_s6, %s10625_s29  }
  0xa7   : > { %324 = sbr.rel (%p11917_p10) target bundleno = 1825 (0x721), region = 44 }
  0xae   : > { %10572 = dma.done.wait (%p11918_p12), [#allocation5], 32768  }
  0xaf   : > { %10574 = vsyncadd (%p11918_p12), [#allocation5], 4294934528 }
  0xb0   : > { %10576 = dma.done.wait (%p11918_p12), [#allocation7], 256  }
  0xb1   : > { %10578 = vsyncadd (%p11918_p12), [#allocation7], 4294967040  ;;  %s11919_s16 = sadd.s32 4294967295, %s10613_s28   ;;  %s336_s15 = sand.u32 1, %s10589_s22  }
  0xb2   : > { %s334_s13 = sand.u32 1, %s11919_s16   ;;  %s8366_s9 = sshll.u32 %s336_s15, 12 }
  0xb3   : > { %s335_s18 = scalar_lea.sflag [#allocation5], %s334_s13  ;;  %s10921_s26 = scalar_lea.vmem [#allocation8], %s8366_s9 }
  0xb4   : > { %p11920_p2 = scmp.ne.s32.totalorder %s11896_s8, 0 }
  0xb6   : > { %10580 = dma.done.wait (%p11920_p2), %s335_s18, 98368  }
  0xb7   : > { %10582 = vsyncadd (%p11920_p2), %s335_s18, 4294868928  ;;  %s11921_s11 = sld [smem:[#allocation15_spill]]  ;;  %s8367_s25 = sshll.u32 %s336_s15, 2 }
  0xb8   : > { %s8368_s7 = sshll.u32 %s336_s15, 11  ;;  %s11922_s1 = sld [smem:[#allocation23_spill]] }
  0xb9   : > { %s10934_s27 = scalar_lea.vmem [#allocation9], %s8367_s25  ;;  %s10936_s10 = scalar_lea.vmem [#allocation10], %s8368_s7 }
  0xba   : > { %s11923_s19 = sld [smem:[#allocation14_spill]] }
  0xbd   : > { %p404_p5 = scmp.lt.s32.totalorder %s11921_s11, 1 }
  0xbf   : > { %s11941_s11 = smov (!%p404_p5, %s11921_s11), 1 }
  0xc0   : > { %s9429_s30 = sshll.u32 %s11941_s11, 6  ;;  %p8371_p7 = scmp.ne.s32.totalorder %s11923_s19, 0 }
  0xc1   : > { %s10932_s20 = scalar_lea.vmem %s11922_s1, %s9429_s30  ;;  %v414_v0 = vld [vmem:[#allocation4] sm:$0xff] (!%p8371_p7)  ;;  %v415_v2 = vld [vmem:[#allocation4 + $0x8] sm:$0xff] (!%p8371_p7)  ;;  %s11924_s14 = sld [smem:[#allocation20_spill]] (!%p8371_p7) }
  0xc2   : > { %412 = sbr.rel (%p8371_p7) target bundleno = 673 (0x2a1), region = 68  ;;  %v422_v1 = vld [vmem:[#allocation4 + $0x40] sm:$0xff] (!%p8371_p7)  ;;  %v423_v4 = vld [vmem:[#allocation4 + $0x48] sm:$0xff] (!%p8371_p7) }
  0xc3   : > { %v8375_v3 = vcombine.high (!%p8371_p7), %v414_v0, %v422_v1  ;;  %v8374_v5 = vcombine.low (!%p8371_p7), %v414_v0, %v422_v1  ;;  %v430_v6 = vld [vmem:[#allocation4 + $0x80] sm:$0xff] (!%p8371_p7)  ;;  %v8377_v8 = vcombine.high (!%p8371_p7), %v415_v2, %v423_v4  ;;  %v8376_v9 = vcombine.low (!%p8371_p7), %v415_v2, %v423_v4  ;;  %v431_v11 = vld [vmem:[#allocation4 + $0x88] sm:$0xff] (!%p8371_p7) }
  0xc4   : > { %v438_v7 = vld [vmem:[#allocation4 + $0xc0] sm:$0xff] (!%p8371_p7)  ;;  %v439_v12 = vld [vmem:[#allocation4 + $0xc8] sm:$0xff] (!%p8371_p7) }
  0xc5   : > { %v8391_v10 = vcombine.high (!%p8371_p7), %v430_v6, %v438_v7  ;;  %v446_v13 = vld [vmem:[#allocation4 + $0x100] sm:$0xff] (!%p8371_p7)  ;;  %2041 = vmatprep.subr.bf16.mxu0 (!%p8371_p7), %v8375_v3  ;;  %v8393_v14 = vcombine.high (!%p8371_p7), %v431_v11, %v439_v12  ;;  %v447_v16 = vld [vmem:[#allocation4 + $0x108] sm:$0xff] (!%p8371_p7)  ;;  %2082 = vmatprep.subr.bf16.mxu1 (!%p8371_p7), %v8377_v8  ;;  %v8390_v18 = vcombine.low (!%p8371_p7), %v430_v6, %v438_v7 }
  0xc6   : > { %v454_v15 = vld [vmem:[#allocation4 + $0x140] sm:$0xff] (!%p8371_p7)  ;;  %v455_v17 = vld [vmem:[#allocation4 + $0x148] sm:$0xff] (!%p8371_p7)  ;;  %2042 = vmatpush1.bf16.msra.mxu0 (!%p8371_p7), %v8374_v5  ;;  %2083 = vmatpush1.bf16.msra.mxu1 (!%p8371_p7), %v8376_v9  ;;  %v8392_v19 = vcombine.low (!%p8371_p7), %v431_v11, %v439_v12 }
  0xc7   : > { %2043 = vmatprep.subr.bf16.mxu0 (!%p8371_p7), %v8391_v10  ;;  %v8407_v20 = vcombine.high (!%p8371_p7), %v446_v13, %v454_v15  ;;  %2084 = vmatprep.subr.bf16.mxu1 (!%p8371_p7), %v8393_v14  ;;  %v8409_v21 = vcombine.high (!%p8371_p7), %v447_v16, %v455_v17  ;;  %v462_v22 = vld [vmem:[#allocation4 + $0x180] sm:$0xff] (!%p8371_p7)  ;;  %v463_v24 = vld [vmem:[#allocation4 + $0x188] sm:$0xff] (!%p8371_p7)  ;;  %v8406_v26 = vcombine.low (!%p8371_p7), %v446_v13, %v454_v15 }
  0xc8   : > { %v470_v23 = vld [vmem:[#allocation4 + $0x1c0] sm:$0xff] (!%p8371_p7)  ;;  %v471_v25 = vld [vmem:[#allocation4 + $0x1c8] sm:$0xff] (!%p8371_p7)  ;;  %v8408_v27 = vcombine.low (!%p8371_p7), %v447_v16, %v455_v17 }
  0xc9   : > { %v8423_v28 = vcombine.high %v462_v22, %v470_v23  ;;  %v8425_v29 = vcombine.high %v463_v24, %v471_v25  ;;  %v478_v30 = vld [vmem:[#allocation4 + $0x200] sm:$0xff]  ;;  %v479_v32 = vld [vmem:[#allocation4 + $0x208] sm:$0xff]  ;;  %v8422_v34 = vcombine.low %v462_v22, %v470_v23  ;;  %v8424_v35 = vcombine.low %v463_v24, %v471_v25 }
  0xca   : > { %2044 = vmatpush1.bf16.msra.mxu0 %v8390_v18  ;;  %2085 = vmatpush1.bf16.msra.mxu1 %v8392_v19  ;;  %v486_v31 = vld [vmem:[#allocation4 + $0x240] sm:$0xff]  ;;  %v487_v33 = vld [vmem:[#allocation4 + $0x248] sm:$0xff] }
  0xcb   : > { %2045 = vmatprep.subr.bf16.mxu0 %v8407_v20  ;;  %2086 = vmatprep.subr.bf16.mxu1 %v8409_v21  ;;  %v8439_v36 = vcombine.high %v478_v30, %v486_v31  ;;  %v8441_v37 = vcombine.high %v479_v32, %v487_v33  ;;  %v494_v38 = vld [vmem:[#allocation4 + $0x280] sm:$0xff]  ;;  %v495_v40 = vld [vmem:[#allocation4 + $0x288] sm:$0xff]  ;;  %v8438_v42 = vcombine.low %v478_v30, %v486_v31 }
  0xcc   : > { %v502_v39 = vld [vmem:[#allocation4 + $0x2c0] sm:$0xff]  ;;  %v503_v41 = vld [vmem:[#allocation4 + $0x2c8] sm:$0xff]  ;;  %v8440_v43 = vcombine.low %v479_v32, %v487_v33 }
  0xcd   : > { %v8455_v44 = vcombine.high %v494_v38, %v502_v39  ;;  %v8457_v45 = vcombine.high %v495_v40, %v503_v41  ;;  %v510_v46 = vld [vmem:[#allocation4 + $0x300] sm:$0xff]  ;;  %v511_v48 = vld [vmem:[#allocation4 + $0x308] sm:$0xff]  ;;  %v8454_v50 = vcombine.low %v494_v38, %v502_v39  ;;  %v8456_v51 = vcombine.low %v495_v40, %v503_v41 }
  0xce   : > { %2046 = vmatpush1.bf16.msra.mxu0 %v8406_v26  ;;  %2087 = vmatpush1.bf16.msra.mxu1 %v8408_v27  ;;  %v518_v47 = vld [vmem:[#allocation4 + $0x340] sm:$0xff]  ;;  %v519_v49 = vld [vmem:[#allocation4 + $0x348] sm:$0xff] }
  0xcf   : > { %2047 = vmatprep.subr.bf16.mxu0 %v8423_v28  ;;  %2088 = vmatprep.subr.bf16.mxu1 %v8425_v29  ;;  %v8471_v52 = vcombine.high %v510_v46, %v518_v47  ;;  %v10942_v53 = vld [vmem:[%s11924_s14] sm:$0xff]  ;;  %v8473_v54 = vcombine.high %v511_v48, %v519_v49  ;;  %v527_v58 = vld [vmem:[#allocation4 + $0x388] sm:$0xff]  ;;  %v8470_v60 = vcombine.low %v510_v46, %v518_v47 }
  0xd0   : > { %v526_v55 = vld [vmem:[#allocation4 + $0x380] sm:$0xff]  ;;  %v10946_v57 = vcombine.high %v10942_v53, %v10942_v53  ;;  %v535_v59 = vld [vmem:[#allocation4 + $0x3c8] sm:$0xff]  ;;  %v8472_v61 = vcombine.low %v511_v48, %v519_v49 }
  0xd1   : > { %v534_v56 = vld [vmem:[#allocation4 + $0x3c0] sm:$0xff]  ;;  %v8489_v63 = vcombine.high %v527_v58, %v535_v59  ;;  %v543_v2 = vld [vmem:[#allocation4 + $0x408] sm:$0xff]  ;;  %v8488_v5 = vcombine.low %v527_v58, %v535_v59 }
  0xd2   : > { %2048 = vmatpush1.bf16.msra.mxu0 %v8422_v34  ;;  %2089 = vmatpush1.bf16.msra.mxu1 %v8424_v35  ;;  %v8487_v62 = vcombine.high %v526_v55, %v534_v56  ;;  %v542_v0 = vld [vmem:[#allocation4 + $0x400] sm:$0xff]  ;;  %v551_v3 = vld [vmem:[#allocation4 + $0x448] sm:$0xff]  ;;  %v8486_v4 = vcombine.low %v526_v55, %v534_v56 }
  0xd3   : > { %2049 = vmatprep.subr.bf16.mxu0 %v8439_v36  ;;  %2090 = vmatprep.subr.bf16.mxu1 %v8441_v37  ;;  %v550_v1 = vld [vmem:[#allocation4 + $0x440] sm:$0xff]  ;;  %v8505_v7 = vcombine.high %v543_v2, %v551_v3  ;;  %v559_v10 = vld [vmem:[#allocation4 + $0x488] sm:$0xff]  ;;  %v8504_v13 = vcombine.low %v543_v2, %v551_v3  ;;  %v416_v2 = vld [vmem:[#allocation4 + $0x10] sm:$0xff] }
  0xd4   : > { %2073 = vmatprep.mubr.bf16.mxu0 %v10946_v57  ;;  %2114 = vmatprep.mubr.bf16.mxu1 %v10946_v57  ;;  %v8503_v6 = vcombine.high %v542_v0, %v550_v1  ;;  %v558_v8 = vld [vmem:[#allocation4 + $0x480] sm:$0xff]  ;;  %v567_v11 = vld [vmem:[#allocation4 + $0x4c8] sm:$0xff]  ;;  %v8502_v12 = vcombine.low %v542_v0, %v550_v1  ;;  %v424_v3 = vld [vmem:[#allocation4 + $0x50] sm:$0xff] }
  0xd5   : > { %v566_v9 = vld [vmem:[#allocation4 + $0x4c0] sm:$0xff]  ;;  %v8521_v15 = vcombine.high %v559_v10, %v567_v11  ;;  %v575_v18 = vld [vmem:[#allocation4 + $0x508] sm:$0xff]  ;;  %v8520_v21 = vcombine.low %v559_v10, %v567_v11  ;;  %v432_v10 = vld [vmem:[#allocation4 + $0x90] sm:$0xff] }
  0xd6   : > { %2050 = vmatpush1.bf16.msra.mxu0 %v8438_v42  ;;  %2091 = vmatpush1.bf16.msra.mxu1 %v8440_v43  ;;  %v8519_v14 = vcombine.high %v558_v8, %v566_v9  ;;  %v574_v16 = vld [vmem:[#allocation4 + $0x500] sm:$0xff]  ;;  %v583_v19 = vld [vmem:[#allocation4 + $0x548] sm:$0xff]  ;;  %v8518_v20 = vcombine.low %v558_v8, %v566_v9  ;;  %v8379_v8 = vcombine.high %v416_v2, %v424_v3  ;;  %v440_v11 = vld [vmem:[#allocation4 + $0xd0] sm:$0xff] }
  0xd7   : > { %2051 = vmatprep.subr.bf16.mxu0 %v8455_v44  ;;  %2092 = vmatprep.subr.bf16.mxu1 %v8457_v45  ;;  %v582_v17 = vld [vmem:[#allocation4 + $0x540] sm:$0xff]  ;;  %v8537_v23 = vcombine.high %v575_v18, %v583_v19  ;;  %v591_v26 = vld [vmem:[#allocation4 + $0x588] sm:$0xff]  ;;  %v8536_v29 = vcombine.low %v575_v18, %v583_v19  ;;  %v448_v19 = vld [vmem:[#allocation4 + $0x110] sm:$0xff] }
  0xd8   : > { %v8535_v22 = vcombine.high %v574_v16, %v582_v17  ;;  %v590_v24 = vld [vmem:[#allocation4 + $0x580] sm:$0xff]  ;;  %v599_v27 = vld [vmem:[#allocation4 + $0x5c8] sm:$0xff]  ;;  %v8534_v28 = vcombine.low %v574_v16, %v582_v17  ;;  %v8395_v17 = vcombine.high %v432_v10, %v440_v11 }
  0xd9   : > { %v598_v25 = vld [vmem:[#allocation4 + $0x5c0] sm:$0xff]  ;;  %v8553_v31 = vcombine.high %v591_v26, %v599_v27  ;;  %v607_v34 = vld [vmem:[#allocation4 + $0x608] sm:$0xff]  ;;  %v8552_v37 = vcombine.low %v591_v26, %v599_v27  ;;  %v464_v26 = vld [vmem:[#allocation4 + $0x190] sm:$0xff] }
  0xda   : > { %2052 = vmatpush1.bf16.msra.mxu0 %v8454_v50  ;;  %2093 = vmatpush1.bf16.msra.mxu1 %v8456_v51  ;;  %v8551_v30 = vcombine.high %v590_v24, %v598_v25  ;;  %v606_v32 = vld [vmem:[#allocation4 + $0x600] sm:$0xff]  ;;  %v615_v35 = vld [vmem:[#allocation4 + $0x648] sm:$0xff]  ;;  %v8550_v36 = vcombine.low %v590_v24, %v598_v25  ;;  %v472_v27 = vld [vmem:[#allocation4 + $0x1d0] sm:$0xff] }
  0xdb   : > { %2053 = vmatprep.subr.bf16.mxu0 %v8471_v52  ;;  %2094 = vmatprep.subr.bf16.mxu1 %v8473_v54  ;;  %v614_v33 = vld [vmem:[#allocation4 + $0x640] sm:$0xff]  ;;  %v8569_v39 = vcombine.high %v607_v34, %v615_v35  ;;  %v623_v42 = vld [vmem:[#allocation4 + $0x688] sm:$0xff]  ;;  %v8568_v45 = vcombine.low %v607_v34, %v615_v35  ;;  %v480_v34 = vld [vmem:[#allocation4 + $0x210] sm:$0xff] }
  0xdc   : > { %v8567_v38 = vcombine.high %v606_v32, %v614_v33  ;;  %v622_v40 = vld [vmem:[#allocation4 + $0x680] sm:$0xff]  ;;  %v631_v43 = vld [vmem:[#allocation4 + $0x6c8] sm:$0xff]  ;;  %v8566_v44 = vcombine.low %v606_v32, %v614_v33  ;;  %v8427_v32 = vcombine.high %v464_v26, %v472_v27  ;;  %v488_v35 = vld [vmem:[#allocation4 + $0x250] sm:$0xff] }
  0xdd   : > { %v630_v41 = vld [vmem:[#allocation4 + $0x6c0] sm:$0xff]  ;;  %v8585_v47 = vcombine.high %v623_v42, %v631_v43  ;;  %v639_v50 = vld [vmem:[#allocation4 + $0x708] sm:$0xff]  ;;  %v8584_v54 = vcombine.low %v623_v42, %v631_v43  ;;  %v496_v42 = vld [vmem:[#allocation4 + $0x290] sm:$0xff] }
  0xde   : > { %2054 = vmatpush1.bf16.msra.mxu0 %v8470_v60  ;;  %2095 = vmatpush1.bf16.msra.mxu1 %v8472_v61  ;;  %v8583_v46 = vcombine.high %v622_v40, %v630_v41  ;;  %v638_v48 = vld [vmem:[#allocation4 + $0x700] sm:$0xff]  ;;  %v647_v51 = vld [vmem:[#allocation4 + $0x748] sm:$0xff]  ;;  %v8582_v52 = vcombine.low %v622_v40, %v630_v41  ;;  %v8443_v40 = vcombine.high %v480_v34, %v488_v35  ;;  %v504_v43 = vld [vmem:[#allocation4 + $0x2d0] sm:$0xff] }
  0xdf   : > { %2055 = vmatprep.subr.bf16.mxu0 %v8487_v62  ;;  %2096 = vmatprep.subr.bf16.mxu1 %v8489_v63  ;;  %v646_v49 = vld [vmem:[#allocation4 + $0x740] sm:$0xff]  ;;  %v8601_v56 = vcombine.high %v639_v50, %v647_v51  ;;  %v655_v60 = vld [vmem:[#allocation4 + $0x788] sm:$0xff]  ;;  %v8600_v63 = vcombine.low %v639_v50, %v647_v51  ;;  %v512_v50 = vld [vmem:[#allocation4 + $0x310] sm:$0xff] }
  0xe0   : > { %v8599_v55 = vcombine.high %v638_v48, %v646_v49  ;;  %v654_v58 = vld [vmem:[#allocation4 + $0x780] sm:$0xff]  ;;  %v663_v61 = vld [vmem:[#allocation4 + $0x7c8] sm:$0xff]  ;;  %v8598_v62 = vcombine.low %v638_v48, %v646_v49  ;;  %v8459_v48 = vcombine.high %v496_v42, %v504_v43  ;;  %v520_v51 = vld [vmem:[#allocation4 + $0x350] sm:$0xff] }
  0xe1   : > { %v662_v59 = vld [vmem:[#allocation4 + $0x7c0] sm:$0xff]  ;;  %v8617_v1 = vcombine.high %v655_v60, %v663_v61 }
  0xe2   : > { %2056 = vmatpush1.bf16.msra.mxu0 %v8486_v4  ;;  %2097 = vmatpush1.bf16.msra.mxu1 %v8488_v5  ;;  %v8615_v0 = vcombine.high %v654_v58, %v662_v59  ;;  %v417_v4 = vld [vmem:[#allocation4 + $0x18] sm:$0xff] }
  0xe3   : > { %2057 = vmatprep.subr.bf16.mxu0 %v8503_v6  ;;  %2098 = vmatprep.subr.bf16.mxu1 %v8505_v7  ;;  %v425_v5 = vld [vmem:[#allocation4 + $0x58] sm:$0xff]  ;;  %v8614_v6 = vcombine.low %v654_v58, %v662_v59  ;;  %v8616_v7 = vcombine.low %v655_v60, %v663_v61  ;;  %v8475_v58 = vcombine.high %v512_v50, %v520_v51  ;;  %v528_v60 = vld [vmem:[#allocation4 + $0x390] sm:$0xff] }
  0xe4   : > { %v8381_v9 = vcombine.high %v417_v4, %v425_v5  ;;  %v8380_v16 = vcombine.low %v417_v4, %v425_v5  ;;  %v536_v61 = vld [vmem:[#allocation4 + $0x3d0] sm:$0xff] }
  0xe5   : > { %v544_v4 = vld [vmem:[#allocation4 + $0x410] sm:$0xff] }
  0xe6   : > { %2058 = vmatpush1.bf16.msra.mxu0 %v8502_v12  ;;  %2099 = vmatpush1.bf16.msra.mxu1 %v8504_v13  ;;  %v10952_v12 = vcombine.low %v10942_v53, %v10942_v53  ;;  %v433_v13 = vld [vmem:[#allocation4 + $0x98] sm:$0xff]  ;;  %v8394_v53 = vcombine.low %v432_v10, %v440_v11  ;;  %v552_v5 = vld [vmem:[#allocation4 + $0x450] sm:$0xff] }
  0xe7   : > { %2059 = vmatprep.subr.bf16.mxu0 %v8519_v14  ;;  %2100 = vmatprep.subr.bf16.mxu1 %v8521_v15  ;;  %v441_v14 = vld [vmem:[#allocation4 + $0xd8] sm:$0xff]  ;;  %v8378_v15 = vcombine.low %v416_v2, %v424_v3  ;;  %v8491_v2 = vcombine.high %v528_v60, %v536_v61  ;;  %v8507_v10 = vcombine.high %v544_v4, %v552_v5 }
  0xe8   : > { %v8397_v18 = vcombine.high %v433_v13, %v441_v14 }
  0xea   : > { %2060 = vmatpush1.bf16.msra.mxu0 %v8518_v20  ;;  %2101 = vmatpush1.bf16.msra.mxu1 %v8520_v21  ;;  %v456_v20 = vld [vmem:[#allocation4 + $0x150] sm:$0xff]  ;;  %v449_v21 = vld [vmem:[#allocation4 + $0x118] sm:$0xff] }
  0xeb   : > { %2061 = vmatprep.subr.bf16.mxu0 %v8535_v22  ;;  %2102 = vmatprep.subr.bf16.mxu1 %v8537_v23  ;;  %v457_v22 = vld [vmem:[#allocation4 + $0x158] sm:$0xff]  ;;  %v8396_v23 = vcombine.low %v433_v13, %v441_v14  ;;  %v8411_v24 = vcombine.high %v448_v19, %v456_v20  ;;  %v560_v13 = vld [vmem:[#allocation4 + $0x490] sm:$0xff] }
  0xec   : > { %v8413_v25 = vcombine.high %v449_v21, %v457_v22  ;;  %v568_v14 = vld [vmem:[#allocation4 + $0x4d0] sm:$0xff] }
  0xee   : > { %2062 = vmatpush1.bf16.msra.mxu0 %v8534_v28  ;;  %2103 = vmatpush1.bf16.msra.mxu1 %v8536_v29  ;;  %v465_v28 = vld [vmem:[#allocation4 + $0x198] sm:$0xff] }
  0xef   : > { %2063 = vmatprep.subr.bf16.mxu0 %v8551_v30  ;;  %2104 = vmatprep.subr.bf16.mxu1 %v8553_v31  ;;  %v473_v29 = vld [vmem:[#allocation4 + $0x1d8] sm:$0xff]  ;;  %v8410_v30 = vcombine.low %v448_v19, %v456_v20  ;;  %v8412_v31 = vcombine.low %v449_v21, %v457_v22  ;;  %v8523_v19 = vcombine.high %v560_v13, %v568_v14  ;;  %v576_v21 = vld [vmem:[#allocation4 + $0x510] sm:$0xff] }
  0xf0   : > { %v8429_v33 = vcombine.high %v465_v28, %v473_v29  ;;  %v584_v22 = vld [vmem:[#allocation4 + $0x550] sm:$0xff] }
  0xf2   : > { %2064 = vmatpush1.bf16.msra.mxu0 %v8550_v36  ;;  %2105 = vmatpush1.bf16.msra.mxu1 %v8552_v37  ;;  %v481_v36 = vld [vmem:[#allocation4 + $0x218] sm:$0xff] }
  0xf3   : > { %2065 = vmatprep.subr.bf16.mxu0 %v8567_v38  ;;  %2106 = vmatprep.subr.bf16.mxu1 %v8569_v39  ;;  %v489_v37 = vld [vmem:[#allocation4 + $0x258] sm:$0xff]  ;;  %v8426_v38 = vcombine.low %v464_v26, %v472_v27  ;;  %v8428_v39 = vcombine.low %v465_v28, %v473_v29  ;;  %v8539_v26 = vcombine.high %v576_v21, %v584_v22  ;;  %v592_v28 = vld [vmem:[#allocation4 + $0x590] sm:$0xff] }
  0xf4   : > { %v8445_v41 = vcombine.high %v481_v36, %v489_v37  ;;  %v600_v29 = vld [vmem:[#allocation4 + $0x5d0] sm:$0xff] }
  0xf6   : > { %2066 = vmatpush1.bf16.msra.mxu0 %v8566_v44  ;;  %2107 = vmatpush1.bf16.msra.mxu1 %v8568_v45  ;;  %v497_v44 = vld [vmem:[#allocation4 + $0x298] sm:$0xff] }
  0xf7   : > { %2067 = vmatprep.subr.bf16.mxu0 %v8583_v46  ;;  %2108 = vmatprep.subr.bf16.mxu1 %v8585_v47  ;;  %v505_v45 = vld [vmem:[#allocation4 + $0x2d8] sm:$0xff]  ;;  %v8442_v46 = vcombine.low %v480_v34, %v488_v35  ;;  %v8444_v47 = vcombine.low %v481_v36, %v489_v37  ;;  %v8555_v34 = vcombine.high %v592_v28, %v600_v29  ;;  %v608_v36 = vld [vmem:[#allocation4 + $0x610] sm:$0xff] }
  0xf8   : > { %v8461_v49 = vcombine.high %v497_v44, %v505_v45  ;;  %v616_v37 = vld [vmem:[#allocation4 + $0x650] sm:$0xff] }
  0xfa   : > { %2068 = vmatpush1.bf16.msra.mxu0 %v8582_v52  ;;  %2109 = vmatpush1.bf16.msra.mxu1 %v8584_v54  ;;  %v513_v52 = vld [vmem:[#allocation4 + $0x318] sm:$0xff] }
  0xfb   : > { %2069 = vmatprep.subr.bf16.mxu0 %v8599_v55  ;;  %2110 = vmatprep.subr.bf16.mxu1 %v8601_v56  ;;  %v521_v54 = vld [vmem:[#allocation4 + $0x358] sm:$0xff]  ;;  %v8458_v55 = vcombine.low %v496_v42, %v504_v43  ;;  %v8460_v56 = vcombine.low %v497_v44, %v505_v45  ;;  %v8571_v42 = vcombine.high %v608_v36, %v616_v37  ;;  %v624_v44 = vld [vmem:[#allocation4 + $0x690] sm:$0xff] }
  0xfc   : > { %v8477_v59 = vcombine.high %v513_v52, %v521_v54  ;;  %v632_v45 = vld [vmem:[#allocation4 + $0x6d0] sm:$0xff] }
  0xfe   : > { %2070 = vmatpush1.bf16.msra.mxu0 %v8598_v62  ;;  %2111 = vmatpush1.bf16.msra.mxu1 %v8600_v63  ;;  %v529_v62 = vld [vmem:[#allocation4 + $0x398] sm:$0xff] }
  0xff   : > { %2071 = vmatprep.subr.bf16.mxu0 %v8615_v0  ;;  %2112 = vmatprep.subr.bf16.mxu1 %v8617_v1  ;;  %v537_v63 = vld [vmem:[#allocation4 + $0x3d8] sm:$0xff]  ;;  %v8474_v0 = vcombine.low %v512_v50, %v520_v51  ;;  %v8476_v1 = vcombine.low %v513_v52, %v521_v54  ;;  %v8587_v50 = vcombine.high %v624_v44, %v632_v45  ;;  %v640_v52 = vld [vmem:[#allocation4 + $0x710] sm:$0xff] }
 0x100   : > { %v8493_v3 = vcombine.high %v529_v62, %v537_v63  ;;  %v648_v54 = vld [vmem:[#allocation4 + $0x750] sm:$0xff] }
 0x102   : > { %2072 = vmatpush1.bf16.msra.mxu0 %v8614_v6  ;;  %2113 = vmatpush1.bf16.msra.mxu1 %v8616_v7  ;;  %v545_v6 = vld [vmem:[#allocation4 + $0x418] sm:$0xff] }
 0x103   : > { %2123 = vmatprep.subr.bf16.mxu0 %v8379_v8  ;;  %2164 = vmatprep.subr.bf16.mxu1 %v8381_v9  ;;  %v553_v7 = vld [vmem:[#allocation4 + $0x458] sm:$0xff]  ;;  %v8490_v8 = vcombine.low %v528_v60, %v536_v61  ;;  %v8492_v9 = vcombine.low %v529_v62, %v537_v63  ;;  %v8603_v60 = vcombine.high %v640_v52, %v648_v54  ;;  %v656_v62 = vld [vmem:[#allocation4 + $0x790] sm:$0xff] }
 0x104   : > { %v8509_v11 = vcombine.high %v545_v6, %v553_v7  ;;  %v664_v63 = vld [vmem:[#allocation4 + $0x7d0] sm:$0xff] }
 0x105   : > { %2074 = vmatmul.mubr.bf16.vlgmr.msra.gmra.mrb[0].mxu0 %v10952_v12  ;;  %2115 = vmatmul.mubr.bf16.vlgmr.msra.gmra.mrb[0].mxu1 %v10952_v12 }
 0x106   : > { %2124 = vmatpush1.bf16.msra.mxu0 %v8378_v15  ;;  %2165 = vmatpush1.bf16.msra.mxu1 %v8380_v16  ;;  %v561_v15 = vld [vmem:[#allocation4 + $0x498] sm:$0xff] }
 0x107   : > { %2125 = vmatprep.subr.bf16.mxu0 %v8395_v17  ;;  %2166 = vmatprep.subr.bf16.mxu1 %v8397_v18  ;;  %v569_v16 = vld [vmem:[#allocation4 + $0x4d8] sm:$0xff]  ;;  %v8506_v17 = vcombine.low %v544_v4, %v552_v5  ;;  %v8508_v18 = vcombine.low %v545_v6, %v553_v7  ;;  %v8619_v4 = vcombine.high %v656_v62, %v664_v63  ;;  %v418_v6 = vld [vmem:[#allocation4 + $0x20] sm:$0xff] }
 0x108   : > { %2155 = vmatprep.mubr.bf16.mxu0 %v10946_v57  ;;  %2196 = vmatprep.mubr.bf16.mxu1 %v10946_v57  ;;  %v8525_v20 = vcombine.high %v561_v15, %v569_v16  ;;  %v426_v7 = vld [vmem:[#allocation4 + $0x60] sm:$0xff] }
 0x10a   : > { %2126 = vmatpush1.bf16.msra.mxu0 %v8394_v53  ;;  %2167 = vmatpush1.bf16.msra.mxu1 %v8396_v23  ;;  %v577_v53 = vld [vmem:[#allocation4 + $0x518] sm:$0xff] }
 0x10b   : > { %2127 = vmatprep.subr.bf16.mxu0 %v8411_v24  ;;  %2168 = vmatprep.subr.bf16.mxu1 %v8413_v25  ;;  %v585_v23 = vld [vmem:[#allocation4 + $0x558] sm:$0xff]  ;;  %v8522_v24 = vcombine.low %v560_v13, %v568_v14  ;;  %v8524_v25 = vcombine.low %v561_v15, %v569_v16  ;;  %v8383_v13 = vcombine.high %v418_v6, %v426_v7  ;;  %v434_v15 = vld [vmem:[#allocation4 + $0xa0] sm:$0xff] }
 0x10c   : > { %v8541_v27 = vcombine.high %v577_v53, %v585_v23  ;;  %v442_v16 = vld [vmem:[#allocation4 + $0xe0] sm:$0xff] }
 0x10e   : > { %2128 = vmatpush1.bf16.msra.mxu0 %v8410_v30  ;;  %2169 = vmatpush1.bf16.msra.mxu1 %v8412_v31  ;;  %v593_v30 = vld [vmem:[#allocation4 + $0x598] sm:$0xff] }
 0x10f   : > { %2129 = vmatprep.subr.bf16.mxu0 %v8427_v32  ;;  %2170 = vmatprep.subr.bf16.mxu1 %v8429_v33  ;;  %v601_v31 = vld [vmem:[#allocation4 + $0x5d8] sm:$0xff]  ;;  %v8538_v32 = vcombine.low %v576_v21, %v584_v22  ;;  %v8540_v33 = vcombine.low %v577_v53, %v585_v23  ;;  %v8399_v21 = vcombine.high %v434_v15, %v442_v16  ;;  %v450_v53 = vld [vmem:[#allocation4 + $0x120] sm:$0xff] }
 0x110   : > { %v8557_v35 = vcombine.high %v593_v30, %v601_v31  ;;  %v458_v23 = vld [vmem:[#allocation4 + $0x160] sm:$0xff] }
 0x112   : > { %2130 = vmatpush1.bf16.msra.mxu0 %v8426_v38  ;;  %2171 = vmatpush1.bf16.msra.mxu1 %v8428_v39  ;;  %v609_v38 = vld [vmem:[#allocation4 + $0x618] sm:$0xff] }
 0x113   : > { %2131 = vmatprep.subr.bf16.mxu0 %v8443_v40  ;;  %2172 = vmatprep.subr.bf16.mxu1 %v8445_v41  ;;  %v617_v39 = vld [vmem:[#allocation4 + $0x658] sm:$0xff]  ;;  %v8554_v40 = vcombine.low %v592_v28, %v600_v29  ;;  %v8556_v41 = vcombine.low %v593_v30, %v601_v31  ;;  %v8415_v28 = vcombine.high %v450_v53, %v458_v23  ;;  %v466_v30 = vld [vmem:[#allocation4 + $0x1a0] sm:$0xff] }
 0x114   : > { %v8573_v43 = vcombine.high %v609_v38, %v617_v39  ;;  %v474_v31 = vld [vmem:[#allocation4 + $0x1e0] sm:$0xff] }
 0x116   : > { %2132 = vmatpush1.bf16.msra.mxu0 %v8442_v46  ;;  %2173 = vmatpush1.bf16.msra.mxu1 %v8444_v47  ;;  %v625_v46 = vld [vmem:[#allocation4 + $0x698] sm:$0xff] }
 0x117   : > { %2133 = vmatprep.subr.bf16.mxu0 %v8459_v48  ;;  %2174 = vmatprep.subr.bf16.mxu1 %v8461_v49  ;;  %v633_v47 = vld [vmem:[#allocation4 + $0x6d8] sm:$0xff]  ;;  %v8570_v48 = vcombine.low %v608_v36, %v616_v37  ;;  %v8572_v49 = vcombine.low %v609_v38, %v617_v39  ;;  %v8431_v36 = vcombine.high %v466_v30, %v474_v31  ;;  %v482_v38 = vld [vmem:[#allocation4 + $0x220] sm:$0xff] }
 0x118   : > { %v8589_v51 = vcombine.high %v625_v46, %v633_v47  ;;  %v490_v39 = vld [vmem:[#allocation4 + $0x260] sm:$0xff] }
 0x11a   : > { %2134 = vmatpush1.bf16.msra.mxu0 %v8458_v55  ;;  %2175 = vmatpush1.bf16.msra.mxu1 %v8460_v56  ;;  %v641_v55 = vld [vmem:[#allocation4 + $0x718] sm:$0xff] }
 0x11b   : > { %2135 = vmatprep.subr.bf16.mxu0 %v8475_v58  ;;  %2176 = vmatprep.subr.bf16.mxu1 %v8477_v59  ;;  %v649_v56 = vld [vmem:[#allocation4 + $0x758] sm:$0xff]  ;;  %v8586_v58 = vcombine.low %v624_v44, %v632_v45  ;;  %v8588_v59 = vcombine.low %v625_v46, %v633_v47  ;;  %v8447_v44 = vcombine.high %v482_v38, %v490_v39  ;;  %v498_v46 = vld [vmem:[#allocation4 + $0x2a0] sm:$0xff] }
 0x11c   : > { %v8605_v61 = vcombine.high %v641_v55, %v649_v56  ;;  %v506_v47 = vld [vmem:[#allocation4 + $0x2e0] sm:$0xff] }
 0x11e   : > { %2136 = vmatpush1.bf16.msra.mxu0 %v8474_v0  ;;  %2177 = vmatpush1.bf16.msra.mxu1 %v8476_v1  ;;  %v657_v0 = vld [vmem:[#allocation4 + $0x798] sm:$0xff] }
 0x11f   : > { %2137 = vmatprep.subr.bf16.mxu0 %v8491_v2  ;;  %2178 = vmatprep.subr.bf16.mxu1 %v8493_v3  ;;  %v665_v1 = vld [vmem:[#allocation4 + $0x7d8] sm:$0xff]  ;;  %v8602_v2 = vcombine.low %v640_v52, %v648_v54  ;;  %v8604_v3 = vcombine.low %v641_v55, %v649_v56  ;;  %v8463_v52 = vcombine.high %v498_v46, %v506_v47  ;;  %v514_v55 = vld [vmem:[#allocation4 + $0x320] sm:$0xff] }
 0x120   : > { %v8621_v5 = vcombine.high %v657_v0, %v665_v1  ;;  %v522_v56 = vld [vmem:[#allocation4 + $0x360] sm:$0xff] }
 0x122   : > { %2138 = vmatpush1.bf16.msra.mxu0 %v8490_v8  ;;  %2179 = vmatpush1.bf16.msra.mxu1 %v8492_v9  ;;  %v419_v8 = vld [vmem:[#allocation4 + $0x28] sm:$0xff] }
 0x123   : > { %2139 = vmatprep.subr.bf16.mxu0 %v8507_v10  ;;  %2180 = vmatprep.subr.bf16.mxu1 %v8509_v11  ;;  %v427_v9 = vld [vmem:[#allocation4 + $0x68] sm:$0xff]  ;;  %v8618_v10 = vcombine.low %v656_v62, %v664_v63  ;;  %v8620_v11 = vcombine.low %v657_v0, %v665_v1  ;;  %v8479_v62 = vcombine.high %v514_v55, %v522_v56  ;;  %v530_v0 = vld [vmem:[#allocation4 + $0x3a0] sm:$0xff] }
 0x124   : > { %v8385_v14 = vcombine.high %v419_v8, %v427_v9  ;;  %v538_v1 = vld [vmem:[#allocation4 + $0x3e0] sm:$0xff] }
 0x126   : > { %2140 = vmatpush1.bf16.msra.mxu0 %v8506_v17  ;;  %2181 = vmatpush1.bf16.msra.mxu1 %v8508_v18  ;;  %v435_v17 = vld [vmem:[#allocation4 + $0xa8] sm:$0xff] }
 0x127   : > { %2141 = vmatprep.subr.bf16.mxu0 %v8523_v19  ;;  %2182 = vmatprep.subr.bf16.mxu1 %v8525_v20  ;;  %v443_v18 = vld [vmem:[#allocation4 + $0xe8] sm:$0xff]  ;;  %v8382_v19 = vcombine.low %v418_v6, %v426_v7  ;;  %v8384_v20 = vcombine.low %v419_v8, %v427_v9  ;;  %v8495_v6 = vcombine.high %v530_v0, %v538_v1  ;;  %v546_v8 = vld [vmem:[#allocation4 + $0x420] sm:$0xff] }
 0x128   : > { %v8401_v22 = vcombine.high %v435_v17, %v443_v18  ;;  %v554_v9 = vld [vmem:[#allocation4 + $0x460] sm:$0xff] }
 0x12a   : > { %2142 = vmatpush1.bf16.msra.mxu0 %v8522_v24  ;;  %2183 = vmatpush1.bf16.msra.mxu1 %v8524_v25  ;;  %v451_v24 = vld [vmem:[#allocation4 + $0x128] sm:$0xff] }
 0x12b   : > { %2143 = vmatprep.subr.bf16.mxu0 %v8539_v26  ;;  %2184 = vmatprep.subr.bf16.mxu1 %v8541_v27  ;;  %v459_v25 = vld [vmem:[#allocation4 + $0x168] sm:$0xff]  ;;  %v8398_v26 = vcombine.low %v434_v15, %v442_v16  ;;  %v8400_v27 = vcombine.low %v435_v17, %v443_v18  ;;  %v8511_v15 = vcombine.high %v546_v8, %v554_v9  ;;  %v562_v17 = vld [vmem:[#allocation4 + $0x4a0] sm:$0xff] }
 0x12c   : > { %v8417_v29 = vcombine.high %v451_v24, %v459_v25  ;;  %v570_v18 = vld [vmem:[#allocation4 + $0x4e0] sm:$0xff] }
 0x12e   : > { %2144 = vmatpush1.bf16.msra.mxu0 %v8538_v32  ;;  %2185 = vmatpush1.bf16.msra.mxu1 %v8540_v33  ;;  %v467_v32 = vld [vmem:[#allocation4 + $0x1a8] sm:$0xff] }
 0x12f   : > { %2145 = vmatprep.subr.bf16.mxu0 %v8555_v34  ;;  %2186 = vmatprep.subr.bf16.mxu1 %v8557_v35  ;;  %v475_v33 = vld [vmem:[#allocation4 + $0x1e8] sm:$0xff]  ;;  %v8414_v34 = vcombine.low %v450_v53, %v458_v23  ;;  %v8416_v35 = vcombine.low %v451_v24, %v459_v25  ;;  %v8527_v53 = vcombine.high %v562_v17, %v570_v18  ;;  %v578_v24 = vld [vmem:[#allocation4 + $0x520] sm:$0xff] }
 0x130   : > { %v8433_v37 = vcombine.high %v467_v32, %v475_v33  ;;  %v586_v25 = vld [vmem:[#allocation4 + $0x560] sm:$0xff] }
 0x132   : > { %2146 = vmatpush1.bf16.msra.mxu0 %v8554_v40  ;;  %2187 = vmatpush1.bf16.msra.mxu1 %v8556_v41  ;;  %v483_v40 = vld [vmem:[#allocation4 + $0x228] sm:$0xff] }
 0x133   : > { %2147 = vmatprep.subr.bf16.mxu0 %v8571_v42  ;;  %2188 = vmatprep.subr.bf16.mxu1 %v8573_v43  ;;  %v491_v41 = vld [vmem:[#allocation4 + $0x268] sm:$0xff]  ;;  %v8430_v42 = vcombine.low %v466_v30, %v474_v31  ;;  %v8432_v43 = vcombine.low %v467_v32, %v475_v33  ;;  %v8543_v30 = vcombine.high %v578_v24, %v586_v25  ;;  %v594_v32 = vld [vmem:[#allocation4 + $0x5a0] sm:$0xff] }
 0x134   : > { %v8449_v45 = vcombine.high %v483_v40, %v491_v41  ;;  %v602_v33 = vld [vmem:[#allocation4 + $0x5e0] sm:$0xff] }
 0x136   : > { %2148 = vmatpush1.bf16.msra.mxu0 %v8570_v48  ;;  %2189 = vmatpush1.bf16.msra.mxu1 %v8572_v49  ;;  %v499_v48 = vld [vmem:[#allocation4 + $0x2a8] sm:$0xff] }
 0x137   : > { %2149 = vmatprep.subr.bf16.mxu0 %v8587_v50  ;;  %2190 = vmatprep.subr.bf16.mxu1 %v8589_v51  ;;  %v507_v49 = vld [vmem:[#allocation4 + $0x2e8] sm:$0xff]  ;;  %v8446_v50 = vcombine.low %v482_v38, %v490_v39  ;;  %v8448_v51 = vcombine.low %v483_v40, %v491_v41  ;;  %v8559_v38 = vcombine.high %v594_v32, %v602_v33  ;;  %v610_v40 = vld [vmem:[#allocation4 + $0x620] sm:$0xff] }
 0x138   : > { %v8465_v54 = vcombine.high %v499_v48, %v507_v49  ;;  %v618_v41 = vld [vmem:[#allocation4 + $0x660] sm:$0xff] }
 0x13a   : > { %2150 = vmatpush1.bf16.msra.mxu0 %v8586_v58  ;;  %2191 = vmatpush1.bf16.msra.mxu1 %v8588_v59  ;;  %v515_v58 = vld [vmem:[#allocation4 + $0x328] sm:$0xff] }
 0x13b   : > { %2151 = vmatprep.subr.bf16.mxu0 %v8603_v60  ;;  %2192 = vmatprep.subr.bf16.mxu1 %v8605_v61  ;;  %v523_v59 = vld [vmem:[#allocation4 + $0x368] sm:$0xff]  ;;  %v8462_v60 = vcombine.low %v498_v46, %v506_v47  ;;  %v8464_v61 = vcombine.low %v499_v48, %v507_v49  ;;  %v8575_v46 = vcombine.high %v610_v40, %v618_v41  ;;  %v626_v48 = vld [vmem:[#allocation4 + $0x6a0] sm:$0xff] }
 0x13c   : > { %v8481_v63 = vcombine.high %v515_v58, %v523_v59  ;;  %v634_v49 = vld [vmem:[#allocation4 + $0x6e0] sm:$0xff] }
 0x13e   : > { %2152 = vmatpush1.bf16.msra.mxu0 %v8602_v2  ;;  %2193 = vmatpush1.bf16.msra.mxu1 %v8604_v3  ;;  %v531_v2 = vld [vmem:[#allocation4 + $0x3a8] sm:$0xff] }
 0x13f   : > { %2153 = vmatprep.subr.bf16.mxu0 %v8619_v4  ;;  %2194 = vmatprep.subr.bf16.mxu1 %v8621_v5  ;;  %v539_v3 = vld [vmem:[#allocation4 + $0x3e8] sm:$0xff]  ;;  %v8478_v4 = vcombine.low %v514_v55, %v522_v56  ;;  %v8480_v5 = vcombine.low %v515_v58, %v523_v59  ;;  %v8591_v55 = vcombine.high %v626_v48, %v634_v49  ;;  %v642_v58 = vld [vmem:[#allocation4 + $0x720] sm:$0xff] }
 0x140   : > { %v8497_v7 = vcombine.high %v531_v2, %v539_v3  ;;  %v650_v59 = vld [vmem:[#allocation4 + $0x760] sm:$0xff] }
 0x142   : > { %2154 = vmatpush1.bf16.msra.mxu0 %v8618_v10  ;;  %2195 = vmatpush1.bf16.msra.mxu1 %v8620_v11  ;;  %v547_v10 = vld [vmem:[#allocation4 + $0x428] sm:$0xff] }
 0x143   : > { %2205 = vmatprep.subr.bf16.mxu0 %v8383_v13  ;;  %2246 = vmatprep.subr.bf16.mxu1 %v8385_v14  ;;  %v555_v11 = vld [vmem:[#allocation4 + $0x468] sm:$0xff]  ;;  %v8494_v13 = vcombine.low %v530_v0, %v538_v1  ;;  %v8496_v14 = vcombine.low %v531_v2, %v539_v3  ;;  %v8607_v0 = vcombine.high %v642_v58, %v650_v59  ;;  %v658_v2 = vld [vmem:[#allocation4 + $0x7a0] sm:$0xff] }
 0x144   : > { %v8513_v16 = vcombine.high %v547_v10, %v555_v11  ;;  %v666_v3 = vld [vmem:[#allocation4 + $0x7e0] sm:$0xff] }
 0x145   : > { %2156 = vmatmul.mubr.bf16.vlgmr.msra.gmra.mrb[4].mxu0 %v10952_v12  ;;  %2197 = vmatmul.mubr.bf16.vlgmr.msra.gmra.mrb[4].mxu1 %v10952_v12 }
 0x146   : > { %2206 = vmatpush1.bf16.msra.mxu0 %v8382_v19  ;;  %2247 = vmatpush1.bf16.msra.mxu1 %v8384_v20  ;;  %v563_v19 = vld [vmem:[#allocation4 + $0x4a8] sm:$0xff] }
 0x147   : > { %2207 = vmatprep.subr.bf16.mxu0 %v8399_v21  ;;  %2248 = vmatprep.subr.bf16.mxu1 %v8401_v22  ;;  %v571_v20 = vld [vmem:[#allocation4 + $0x4e8] sm:$0xff]  ;;  %v8510_v21 = vcombine.low %v546_v8, %v554_v9  ;;  %v8512_v22 = vcombine.low %v547_v10, %v555_v11  ;;  %v8623_v8 = vcombine.high %v658_v2, %v666_v3  ;;  %v420_v10 = vld [vmem:[#allocation4 + $0x30] sm:$0xff] }
 0x148   : > { %2237 = vmatprep.mubr.bf16.mxu0 %v10946_v57  ;;  %2278 = vmatprep.mubr.bf16.mxu1 %v10946_v57  ;;  %v8529_v23 = vcombine.high %v563_v19, %v571_v20  ;;  %v428_v11 = vld [vmem:[#allocation4 + $0x70] sm:$0xff] }
 0x14a   : > { %2208 = vmatpush1.bf16.msra.mxu0 %v8398_v26  ;;  %2249 = vmatpush1.bf16.msra.mxu1 %v8400_v27  ;;  %v579_v26 = vld [vmem:[#allocation4 + $0x528] sm:$0xff] }
 0x14b   : > { %2209 = vmatprep.subr.bf16.mxu0 %v8415_v28  ;;  %2250 = vmatprep.subr.bf16.mxu1 %v8417_v29  ;;  %v587_v27 = vld [vmem:[#allocation4 + $0x568] sm:$0xff]  ;;  %v8526_v28 = vcombine.low %v562_v17, %v570_v18  ;;  %v8528_v29 = vcombine.low %v563_v19, %v571_v20  ;;  %v8387_v17 = vcombine.high %v420_v10, %v428_v11  ;;  %v436_v19 = vld [vmem:[#allocation4 + $0xb0] sm:$0xff] }
 0x14c   : > { %v8545_v31 = vcombine.high %v579_v26, %v587_v27  ;;  %v444_v20 = vld [vmem:[#allocation4 + $0xf0] sm:$0xff] }
 0x14e   : > { %2210 = vmatpush1.bf16.msra.mxu0 %v8414_v34  ;;  %2251 = vmatpush1.bf16.msra.mxu1 %v8416_v35  ;;  %v595_v34 = vld [vmem:[#allocation4 + $0x5a8] sm:$0xff] }
 0x14f   : > { %2211 = vmatprep.subr.bf16.mxu0 %v8431_v36  ;;  %2252 = vmatprep.subr.bf16.mxu1 %v8433_v37  ;;  %v603_v35 = vld [vmem:[#allocation4 + $0x5e8] sm:$0xff]  ;;  %v8542_v36 = vcombine.low %v578_v24, %v586_v25  ;;  %v8544_v37 = vcombine.low %v579_v26, %v587_v27  ;;  %v8403_v24 = vcombine.high %v436_v19, %v444_v20  ;;  %v452_v26 = vld [vmem:[#allocation4 + $0x130] sm:$0xff] }
 0x150   : > { %v8561_v39 = vcombine.high %v595_v34, %v603_v35  ;;  %v460_v27 = vld [vmem:[#allocation4 + $0x170] sm:$0xff] }
 0x152   : > { %2212 = vmatpush1.bf16.msra.mxu0 %v8430_v42  ;;  %2253 = vmatpush1.bf16.msra.mxu1 %v8432_v43  ;;  %v611_v42 = vld [vmem:[#allocation4 + $0x628] sm:$0xff] }
 0x153   : > { %2213 = vmatprep.subr.bf16.mxu0 %v8447_v44  ;;  %2254 = vmatprep.subr.bf16.mxu1 %v8449_v45  ;;  %v619_v43 = vld [vmem:[#allocation4 + $0x668] sm:$0xff]  ;;  %v8558_v44 = vcombine.low %v594_v32, %v602_v33  ;;  %v8560_v45 = vcombine.low %v595_v34, %v603_v35  ;;  %v8419_v32 = vcombine.high %v452_v26, %v460_v27  ;;  %v468_v34 = vld [vmem:[#allocation4 + $0x1b0] sm:$0xff] }
 0x154   : > { %v8577_v47 = vcombine.high %v611_v42, %v619_v43  ;;  %v476_v35 = vld [vmem:[#allocation4 + $0x1f0] sm:$0xff] }
 0x156   : > { %2214 = vmatpush1.bf16.msra.mxu0 %v8446_v50  ;;  %2255 = vmatpush1.bf16.msra.mxu1 %v8448_v51  ;;  %v627_v50 = vld [vmem:[#allocation4 + $0x6a8] sm:$0xff] }
 0x157   : > { %2215 = vmatprep.subr.bf16.mxu0 %v8463_v52  ;;  %2256 = vmatprep.subr.bf16.mxu1 %v8465_v54  ;;  %v635_v51 = vld [vmem:[#allocation4 + $0x6e8] sm:$0xff]  ;;  %v8574_v52 = vcombine.low %v610_v40, %v618_v41  ;;  %v8576_v54 = vcombine.low %v611_v42, %v619_v43  ;;  %v8435_v40 = vcombine.high %v468_v34, %v476_v35  ;;  %v484_v42 = vld [vmem:[#allocation4 + $0x230] sm:$0xff] }
 0x158   : > { %v8593_v56 = vcombine.high %v627_v50, %v635_v51  ;;  %v492_v43 = vld [vmem:[#allocation4 + $0x270] sm:$0xff] }
 0x15a   : > { %2216 = vmatpush1.bf16.msra.mxu0 %v8462_v60  ;;  %2257 = vmatpush1.bf16.msra.mxu1 %v8464_v61  ;;  %v643_v60 = vld [vmem:[#allocation4 + $0x728] sm:$0xff] }
 0x15b   : > { %2217 = vmatprep.subr.bf16.mxu0 %v8479_v62  ;;  %2258 = vmatprep.subr.bf16.mxu1 %v8481_v63  ;;  %v651_v61 = vld [vmem:[#allocation4 + $0x768] sm:$0xff]  ;;  %v8590_v62 = vcombine.low %v626_v48, %v634_v49  ;;  %v8592_v63 = vcombine.low %v627_v50, %v635_v51  ;;  %v8451_v48 = vcombine.high %v484_v42, %v492_v43  ;;  %v500_v49 = vld [vmem:[#allocation4 + $0x2b0] sm:$0xff]  ;;  %v501_v51 = vld [vmem:[#allocation4 + $0x2b8] sm:$0xff] }
 0x15c   : > { %v8609_v1 = vcombine.high %v643_v60, %v651_v61  ;;  %v508_v50 = vld [vmem:[#allocation4 + $0x2f0] sm:$0xff] }
 0x15e   : > { %2218 = vmatpush1.bf16.msra.mxu0 %v8478_v4  ;;  %2259 = vmatpush1.bf16.msra.mxu1 %v8480_v5  ;;  %v659_v4 = vld [vmem:[#allocation4 + $0x7a8] sm:$0xff] }
 0x15f   : > { %2219 = vmatprep.subr.bf16.mxu0 %v8495_v6  ;;  %2260 = vmatprep.subr.bf16.mxu1 %v8497_v7  ;;  %v667_v5 = vld [vmem:[#allocation4 + $0x7e8] sm:$0xff]  ;;  %v8606_v6 = vcombine.low %v642_v58, %v650_v59  ;;  %v8608_v7 = vcombine.low %v643_v60, %v651_v61  ;;  %v516_v59 = vld [vmem:[#allocation4 + $0x330] sm:$0xff]  ;;  %v517_v61 = vld [vmem:[#allocation4 + $0x338] sm:$0xff] }
 0x160   : > { %v8625_v9 = vcombine.high %v659_v4, %v667_v5  ;;  %v524_v60 = vld [vmem:[#allocation4 + $0x370] sm:$0xff] }
 0x162   : > { %2220 = vmatpush1.bf16.msra.mxu0 %v8494_v13  ;;  %2261 = vmatpush1.bf16.msra.mxu1 %v8496_v14  ;;  %v421_v13 = vld [vmem:[#allocation4 + $0x38] sm:$0xff] }
 0x163   : > { %2221 = vmatprep.subr.bf16.mxu0 %v8511_v15  ;;  %2262 = vmatprep.subr.bf16.mxu1 %v8513_v16  ;;  %v429_v14 = vld [vmem:[#allocation4 + $0x78] sm:$0xff]  ;;  %v8622_v15 = vcombine.low %v658_v2, %v666_v3  ;;  %v8624_v16 = vcombine.low %v659_v4, %v667_v5  ;;  %v532_v3 = vld [vmem:[#allocation4 + $0x3b0] sm:$0xff] }
 0x164   : > { %v8389_v18 = vcombine.high %v421_v13, %v429_v14  ;;  %v540_v4 = vld [vmem:[#allocation4 + $0x3f0] sm:$0xff]  ;;  %v533_v5 = vld [vmem:[#allocation4 + $0x3b8] sm:$0xff] }
 0x166   : > { %2222 = vmatpush1.bf16.msra.mxu0 %v8510_v21  ;;  %2263 = vmatpush1.bf16.msra.mxu1 %v8512_v22  ;;  %v437_v21 = vld [vmem:[#allocation4 + $0xb8] sm:$0xff] }
 0x167   : > { %2223 = vmatprep.subr.bf16.mxu0 %v8527_v53  ;;  %2264 = vmatprep.subr.bf16.mxu1 %v8529_v23  ;;  %v445_v22 = vld [vmem:[#allocation4 + $0xf8] sm:$0xff]  ;;  %v8386_v53 = vcombine.low %v420_v10, %v428_v11  ;;  %v8388_v23 = vcombine.low %v421_v13, %v429_v14  ;;  %v548_v11 = vld [vmem:[#allocation4 + $0x430] sm:$0xff] }
 0x168   : > { %v8405_v25 = vcombine.high %v437_v21, %v445_v22  ;;  %v556_v13 = vld [vmem:[#allocation4 + $0x470] sm:$0xff]  ;;  %v549_v14 = vld [vmem:[#allocation4 + $0x438] sm:$0xff] }
 0x16a   : > { %2224 = vmatpush1.bf16.msra.mxu0 %v8526_v28  ;;  %2265 = vmatpush1.bf16.msra.mxu1 %v8528_v29  ;;  %v453_v28 = vld [vmem:[#allocation4 + $0x138] sm:$0xff] }
 0x16b   : > { %2225 = vmatprep.subr.bf16.mxu0 %v8543_v30  ;;  %2266 = vmatprep.subr.bf16.mxu1 %v8545_v31  ;;  %v461_v29 = vld [vmem:[#allocation4 + $0x178] sm:$0xff]  ;;  %v8402_v30 = vcombine.low %v436_v19, %v444_v20  ;;  %v8404_v31 = vcombine.low %v437_v21, %v445_v22  ;;  %v564_v20 = vld [vmem:[#allocation4 + $0x4b0] sm:$0xff] }
 0x16c   : > { %v8421_v33 = vcombine.high %v453_v28, %v461_v29  ;;  %v572_v21 = vld [vmem:[#allocation4 + $0x4f0] sm:$0xff]  ;;  %v565_v22 = vld [vmem:[#allocation4 + $0x4b8] sm:$0xff] }
 0x16e   : > { %2226 = vmatpush1.bf16.msra.mxu0 %v8542_v36  ;;  %2267 = vmatpush1.bf16.msra.mxu1 %v8544_v37  ;;  %v469_v36 = vld [vmem:[#allocation4 + $0x1b8] sm:$0xff] }
 0x16f   : > { %2227 = vmatprep.subr.bf16.mxu0 %v8559_v38  ;;  %2268 = vmatprep.subr.bf16.mxu1 %v8561_v39  ;;  %v477_v37 = vld [vmem:[#allocation4 + $0x1f8] sm:$0xff]  ;;  %v8418_v38 = vcombine.low %v452_v26, %v460_v27  ;;  %v8420_v39 = vcombine.low %v453_v28, %v461_v29  ;;  %v580_v27 = vld [vmem:[#allocation4 + $0x530] sm:$0xff] }
 0x170   : > { %v8437_v41 = vcombine.high %v469_v36, %v477_v37  ;;  %v588_v28 = vld [vmem:[#allocation4 + $0x570] sm:$0xff]  ;;  %v581_v29 = vld [vmem:[#allocation4 + $0x538] sm:$0xff] }
 0x172   : > { %2228 = vmatpush1.bf16.msra.mxu0 %v8558_v44  ;;  %2269 = vmatpush1.bf16.msra.mxu1 %v8560_v45  ;;  %v485_v44 = vld [vmem:[#allocation4 + $0x238] sm:$0xff] }
 0x173   : > { %2229 = vmatprep.subr.bf16.mxu0 %v8575_v46  ;;  %2270 = vmatprep.subr.bf16.mxu1 %v8577_v47  ;;  %v493_v45 = vld [vmem:[#allocation4 + $0x278] sm:$0xff]  ;;  %v8434_v46 = vcombine.low %v468_v34, %v476_v35  ;;  %v8436_v47 = vcombine.low %v469_v36, %v477_v37  ;;  %v596_v35 = vld [vmem:[#allocation4 + $0x5b0] sm:$0xff] }
 0x174   : > { %v604_v36 = vld [vmem:[#allocation4 + $0x5f0] sm:$0xff]  ;;  %v597_v37 = vld [vmem:[#allocation4 + $0x5b8] sm:$0xff] }
 0x176   : > { %2230 = vmatpush1.bf16.msra.mxu0 %v8574_v52  ;;  %2271 = vmatpush1.bf16.msra.mxu1 %v8576_v54  ;;  %v509_v52 = vld [vmem:[#allocation4 + $0x2f8] sm:$0xff]  ;;  %v8450_v54 = vcombine.low %v484_v42, %v492_v43  ;;  %v612_v43 = vld [vmem:[#allocation4 + $0x630] sm:$0xff] }
 0x177   : > { %2231 = vmatprep.subr.bf16.mxu0 %v8591_v55  ;;  %2272 = vmatprep.subr.bf16.mxu1 %v8593_v56  ;;  %v8452_v55 = vcombine.low %v485_v44, %v493_v45  ;;  %v8467_v56 = vcombine.high %v500_v49, %v508_v50  ;;  %v8469_v58 = vcombine.high %v501_v51, %v509_v52 }
 0x17a   : > { %2232 = vmatpush1.bf16.msra.mxu0 %v8590_v62  ;;  %2273 = vmatpush1.bf16.msra.mxu1 %v8592_v63  ;;  %v525_v62 = vld [vmem:[#allocation4 + $0x378] sm:$0xff]  ;;  %v8466_v63 = vcombine.low %v500_v49, %v508_v50  ;;  %v628_v50 = vld [vmem:[#allocation4 + $0x6b0] sm:$0xff] }
 0x17b   : > { %2233 = vmatprep.subr.bf16.mxu0 %v8607_v0  ;;  %2274 = vmatprep.subr.bf16.mxu1 %v8609_v1  ;;  %v8468_v0 = vcombine.low %v501_v51, %v509_v52  ;;  %v8483_v1 = vcombine.high %v516_v59, %v524_v60  ;;  %v8485_v2 = vcombine.high %v517_v61, %v525_v62  ;;  %v636_v51 = vld [vmem:[#allocation4 + $0x6f0] sm:$0xff]  ;;  %v629_v52 = vld [vmem:[#allocation4 + $0x6b8] sm:$0xff] }
 0x17e   : > { %2234 = vmatpush1.bf16.msra.mxu0 %v8606_v6  ;;  %2275 = vmatpush1.bf16.msra.mxu1 %v8608_v7  ;;  %v541_v6 = vld [vmem:[#allocation4 + $0x3f8] sm:$0xff]  ;;  %v8482_v7 = vcombine.low %v516_v59, %v524_v60  ;;  %v644_v60 = vld [vmem:[#allocation4 + $0x730] sm:$0xff] }
 0x17f   : > { %2235 = vmatprep.subr.bf16.mxu0 %v8623_v8  ;;  %2276 = vmatprep.subr.bf16.mxu1 %v8625_v9  ;;  %v8484_v8 = vcombine.low %v517_v61, %v525_v62  ;;  %v8499_v9 = vcombine.high %v532_v3, %v540_v4  ;;  %v8501_v10 = vcombine.high %v533_v5, %v541_v6  ;;  %v652_v61 = vld [vmem:[#allocation4 + $0x770] sm:$0xff]  ;;  %v645_v62 = vld [vmem:[#allocation4 + $0x738] sm:$0xff] }
 0x182   : > { %2236 = vmatpush1.bf16.msra.mxu0 %v8622_v15  ;;  %2277 = vmatpush1.bf16.msra.mxu1 %v8624_v16  ;;  %v557_v15 = vld [vmem:[#allocation4 + $0x478] sm:$0xff]  ;;  %v8498_v16 = vcombine.low %v532_v3, %v540_v4  ;;  %v660_v4 = vld [vmem:[#allocation4 + $0x7b0] sm:$0xff] }
 0x183   : > { %2287 = vmatprep.subr.bf16.mxu0 %v8387_v17  ;;  %2328 = vmatprep.subr.bf16.mxu1 %v8389_v18  ;;  %v8500_v17 = vcombine.low %v533_v5, %v541_v6  ;;  %v8515_v18 = vcombine.high %v548_v11, %v556_v13  ;;  %v8517_v19 = vcombine.high %v549_v14, %v557_v15  ;;  %v668_v5 = vld [vmem:[#allocation4 + $0x7f0] sm:$0xff]  ;;  %v661_v6 = vld [vmem:[#allocation4 + $0x7b8] sm:$0xff] }
 0x185   : > { %2238 = vmatmul.mubr.bf16.vlgmr.msra.gmra.mrb[8].mxu0 %v10952_v12  ;;  %2279 = vmatmul.mubr.bf16.vlgmr.msra.gmra.mrb[8].mxu1 %v10952_v12 }
 0x186   : > { %2288 = vmatpush1.bf16.msra.mxu0 %v8386_v53  ;;  %2329 = vmatpush1.bf16.msra.mxu1 %v8388_v23  ;;  %v573_v53 = vld [vmem:[#allocation4 + $0x4f8] sm:$0xff]  ;;  %v8514_v23 = vcombine.low %v548_v11, %v556_v13  ;;  %v8626_v13 = vcombine.low %v660_v4, %v668_v5 }
 0x187   : > { %2289 = vmatprep.subr.bf16.mxu0 %v8403_v24  ;;  %2330 = vmatprep.subr.bf16.mxu1 %v8405_v25  ;;  %v8516_v24 = vcombine.low %v549_v14, %v557_v15  ;;  %v8531_v25 = vcombine.high %v564_v20, %v572_v21  ;;  %v8533_v26 = vcombine.high %v565_v22, %v573_v53  ;;  %v674_v15 = vlaneseq }
 0x188   : > { %2319 = vmatprep.mubr.bf16.mxu0 %v10946_v57  ;;  %2360 = vmatprep.mubr.bf16.mxu1 %v10946_v57  ;;  %v8453_v57 = vcombine.high %v485_v44, %v493_v45  ;;  %v620_v44 = vld [vmem:[#allocation4 + $0x670] sm:$0xff]  ;;  %v613_v45 = vld [vmem:[#allocation4 + $0x638] sm:$0xff] }
 0x18a   : > { %2290 = vmatpush1.bf16.msra.mxu0 %v8402_v30  ;;  %2331 = vmatpush1.bf16.msra.mxu1 %v8404_v31  ;;  %v589_v30 = vld [vmem:[#allocation4 + $0x578] sm:$0xff]  ;;  %v8530_v31 = vcombine.low %v564_v20, %v572_v21 }
 0x18b   : > { %2291 = vmatprep.subr.bf16.mxu0 %v8419_v32  ;;  %2332 = vmatprep.subr.bf16.mxu1 %v8421_v33  ;;  %v8532_v32 = vcombine.low %v565_v22, %v573_v53  ;;  %v8547_v33 = vcombine.high %v580_v27, %v588_v28  ;;  %v8549_v34 = vcombine.high %v581_v29, %v589_v30 }
 0x18e   : > { %2292 = vmatpush1.bf16.msra.mxu0 %v8418_v38  ;;  %2333 = vmatpush1.bf16.msra.mxu1 %v8420_v39  ;;  %v605_v38 = vld [vmem:[#allocation4 + $0x5f8] sm:$0xff]  ;;  %v8546_v39 = vcombine.low %v580_v27, %v588_v28 }
 0x18f   : > { %2293 = vmatprep.subr.bf16.mxu0 %v8435_v40  ;;  %2334 = vmatprep.subr.bf16.mxu1 %v8437_v41  ;;  %v8548_v40 = vcombine.low %v581_v29, %v589_v30  ;;  %v8563_v41 = vcombine.high %v596_v35, %v604_v36  ;;  %v8565_v42 = vcombine.high %v597_v37, %v605_v38 }
 0x192   : > { %2294 = vmatpush1.bf16.msra.mxu0 %v8434_v46  ;;  %2335 = vmatpush1.bf16.msra.mxu1 %v8436_v47  ;;  %v621_v46 = vld [vmem:[#allocation4 + $0x678] sm:$0xff]  ;;  %v8562_v47 = vcombine.low %v596_v35, %v604_v36 }
 0x193   : > { %2295 = vmatprep.subr.bf16.mxu0 %v8451_v48  ;;  %2336 = vmatprep.subr.bf16.mxu1 %v8453_v57  ;;  %v8564_v48 = vcombine.low %v597_v37, %v605_v38  ;;  %v8579_v57 = vcombine.high %v612_v43, %v620_v44  ;;  %v8581_v49 = vcombine.high %v613_v45, %v621_v46 }
 0x196   : > { %2296 = vmatpush1.bf16.msra.mxu0 %v8450_v54  ;;  %2337 = vmatpush1.bf16.msra.mxu1 %v8452_v55  ;;  %v637_v54 = vld [vmem:[#allocation4 + $0x6f8] sm:$0xff]  ;;  %v8578_v55 = vcombine.low %v612_v43, %v620_v44 }
 0x197   : > { %2297 = vmatprep.subr.bf16.mxu0 %v8467_v56  ;;  %2338 = vmatprep.subr.bf16.mxu1 %v8469_v58  ;;  %v8580_v56 = vcombine.low %v613_v45, %v621_v46  ;;  %v8595_v58 = vcombine.high %v628_v50, %v636_v51  ;;  %v8597_v59 = vcombine.high %v629_v52, %v637_v54 }
 0x19a   : > { %2298 = vmatpush1.bf16.msra.mxu0 %v8466_v63  ;;  %2339 = vmatpush1.bf16.msra.mxu1 %v8468_v0  ;;  %v653_v63 = vld [vmem:[#allocation4 + $0x778] sm:$0xff]  ;;  %v8594_v0 = vcombine.low %v628_v50, %v636_v51 }
 0x19b   : > { %2299 = vmatprep.subr.bf16.mxu0 %v8483_v1  ;;  %2340 = vmatprep.subr.bf16.mxu1 %v8485_v2  ;;  %v8596_v1 = vcombine.low %v629_v52, %v637_v54  ;;  %v8611_v2 = vcombine.high %v644_v60, %v652_v61  ;;  %v8613_v3 = vcombine.high %v645_v62, %v653_v63 }
 0x19e   : > { %2300 = vmatpush1.bf16.msra.mxu0 %v8482_v7  ;;  %2341 = vmatpush1.bf16.msra.mxu1 %v8484_v8  ;;  %v669_v7 = vld [vmem:[#allocation4 + $0x7f8] sm:$0xff]  ;;  %v8610_v8 = vcombine.low %v644_v60, %v652_v61 }
 0x19f   : > { %2301 = vmatprep.subr.bf16.mxu0 %v8499_v9  ;;  %2342 = vmatprep.subr.bf16.mxu1 %v8501_v10  ;;  %v8612_v9 = vcombine.low %v645_v62, %v653_v63  ;;  %v8627_v10 = vcombine.high %v660_v4, %v668_v5  ;;  %v8629_v11 = vcombine.high %v661_v6, %v669_v7  ;;  %v10626_v5 = vmov 0.0  }
 0x1a0   : > { %v8628_v14 = vcombine.low %v661_v6, %v669_v7  ;;  %2457 = vst [vmem:[#allocation3] sm:$0xff] %v10626_v5  ;;  %2458 = vst [vmem:[#allocation3 + $0x8] sm:$0xff] %v10626_v5  ;;  %v671_v6 = vld [vmem:[#allocation6 + $0x8] sm:$0xff] }
 0x1a1   : > { %2459 = vst [vmem:[#allocation3 + $0x10] sm:$0xff] %v10626_v5  ;;  %2460 = vst [vmem:[#allocation3 + $0x18] sm:$0xff] %v10626_v5 }
 0x1a2   : > { %2302 = vmatpush1.bf16.msra.mxu0 %v8498_v16  ;;  %2343 = vmatpush1.bf16.msra.mxu1 %v8500_v17  ;;  %v10968_v16 = vshrl.u32 %v674_v15, 7  ;;  %2461 = vst [vmem:[#allocation3 + $0x20] sm:$0xff] %v10626_v5  ;;  %2462 = vst [vmem:[#allocation3 + $0x28] sm:$0xff] %v10626_v5 }
 0x1a3   : > { %2303 = vmatprep.subr.bf16.mxu0 %v8515_v18  ;;  %2344 = vmatprep.subr.bf16.mxu1 %v8517_v19  ;;  %v670_v18 = vld [vmem:[#allocation6] sm:$0xff]  ;;  %2463 = vst [vmem:[#allocation3 + $0x30] sm:$0xff] %v10626_v5  ;;  %2464 = vst [vmem:[#allocation3 + $0x38] sm:$0xff] %v10626_v5 }
 0x1a4   : > { %v676_v17 = vsub.s32 0, %v10968_v16  ;;  %v684_v19 = vsub.s32 2, %v10968_v16  ;;  %v680_v20 = vsub.s32 1, %v10968_v16  ;;  %v688_v21 = vsub.s32 3, %v10968_v16 }
 0x1a5   : > { %v700_v43 = vsub.s32 6, %v10968_v16  ;;  %v696_v44 = vsub.s32 5, %v10968_v16  ;;  %v704_v45 = vsub.s32 7, %v10968_v16 }
 0x1a6   : > { %2304 = vmatpush1.bf16.msra.mxu0 %v8514_v23  ;;  %2345 = vmatpush1.bf16.msra.mxu1 %v8516_v24  ;;  %v677_v22 = vrot.slane %v670_v18, %v676_v17  ;;  %v685_v53 = vrot.slane %v670_v18, %v684_v19  ;;  %v689_v23 = vrot.slane %v670_v18, %v688_v21 }
 0x1a7   : > { %2305 = vmatprep.subr.bf16.mxu0 %v8531_v25  ;;  %2346 = vmatprep.subr.bf16.mxu1 %v8533_v26  ;;  %v709_v7 = vrot.slane %v671_v6, %v676_v17 }
 0x1aa   : > { %2306 = vmatpush1.bf16.msra.mxu0 %v8530_v31  ;;  %2347 = vmatpush1.bf16.msra.mxu1 %v8532_v32 }
 0x1ab   : > { %2307 = vmatprep.subr.bf16.mxu0 %v8547_v33  ;;  %2348 = vmatprep.subr.bf16.mxu1 %v8549_v34 }
 0x1ae   : > { %2308 = vmatpush1.bf16.msra.mxu0 %v8546_v39  ;;  %2349 = vmatpush1.bf16.msra.mxu1 %v8548_v40 }
 0x1af   : > { %2309 = vmatprep.subr.bf16.mxu0 %v8563_v41  ;;  %2350 = vmatprep.subr.bf16.mxu1 %v8565_v42  ;;  %v692_v42 = vsub.s32 4, %v10968_v16 }
 0x1b1   : > { %v693_v46 = vrot.slane %v670_v18, %v692_v42  ;;  %v725_v16 = vrot.slane %v671_v6, %v692_v42 }
 0x1b2   : > { %2310 = vmatpush1.bf16.msra.mxu0 %v8562_v47  ;;  %2351 = vmatpush1.bf16.msra.mxu1 %v8564_v48  ;;  %v701_v47 = vrot.slane %v670_v18, %v700_v43  ;;  %v697_v48 = vrot.slane %v670_v18, %v696_v44 }
 0x1b3   : > { %2311 = vmatprep.subr.bf16.mxu0 %v8579_v57  ;;  %2352 = vmatprep.subr.bf16.mxu1 %v8581_v49  ;;  %v705_v57 = vrot.slane %v670_v18, %v704_v45 }
 0x1b6   : > { %2312 = vmatpush1.bf16.msra.mxu0 %v8578_v55  ;;  %2353 = vmatpush1.bf16.msra.mxu1 %v8580_v56 }
 0x1b7   : > { %2313 = vmatprep.subr.bf16.mxu0 %v8595_v58  ;;  %2354 = vmatprep.subr.bf16.mxu1 %v8597_v59 }
 0x1ba   : > { %2314 = vmatpush1.bf16.msra.mxu0 %v8594_v0  ;;  %2355 = vmatpush1.bf16.msra.mxu1 %v8596_v1 }
 0x1bb   : > { %2315 = vmatprep.subr.bf16.mxu0 %v8611_v2  ;;  %2356 = vmatprep.subr.bf16.mxu1 %v8613_v3 }
 0x1be   : > { %2316 = vmatpush1.bf16.msra.mxu0 %v8610_v8  ;;  %2357 = vmatpush1.bf16.msra.mxu1 %v8612_v9  ;;  %v717_v8 = vrot.slane %v671_v6, %v684_v19  ;;  %v713_v9 = vrot.slane %v671_v6, %v680_v20 }
 0x1bf   : > { %2317 = vmatprep.subr.bf16.mxu0 %v8627_v10  ;;  %2358 = vmatprep.subr.bf16.mxu1 %v8629_v11  ;;  %v721_v10 = vrot.slane %v671_v6, %v688_v21  ;;  %v733_v21 = vrot.slane %v671_v6, %v700_v43 }
 0x1c2   : > { %2318 = vmatpush1.bf16.msra.mxu0 %v8626_v13  ;;  %2359 = vmatpush1.bf16.msra.mxu1 %v8628_v14 }
 0x1c5   : > { %2320 = vmatmul.mubr.bf16.vlgmr.msra.gmra.mrb[12].mxu0 %v10952_v12  ;;  %2361 = vmatmul.mubr.bf16.vlgmr.msra.gmra.mrb[12].mxu1 %v10952_v12  ;;  %v681_v12 = vrot.slane %v670_v18, %v680_v20 }
 0x1d8   : > { %v2075_v24 = vpop.f32.mrb[0].mxu0  ;;  %v2116_v26 = vpop.f32.mrb[0].mxu1 }
 0x1d9   : > { %v2076_v25 = vadd.f32 %v2075_v24, %v677_v22  ;;  %v2077_v27 = vpop.f32.mrb[1].mxu0  ;;  %v2117_v28 = vadd.f32 %v2116_v26, %v685_v53  ;;  %v2118_v30 = vpop.f32.mrb[1].mxu1 }
 0x1da   : > { %v2078_v29 = vadd.f32 %v2077_v27, %v681_v12  ;;  %v2079_v31 = vpop.f32.mrb[2].mxu0  ;;  %v2119_v33 = vadd.f32 %v2118_v30, %v689_v23  ;;  %v2120_v34 = vpop.f32.mrb[2].mxu1  ;;  %v729_v30 = vrot.slane %v671_v6, %v696_v44 }
 0x1db   : > { %v2369_v32 = vmax.f32 %v2076_v25, 0.0  ;;  %v2080_v35 = vpop.f32.mrb[3].mxu0  ;;  %v2371_v36 = vmax.f32 %v2117_v28, 0.0  ;;  %v2121_v38 = vpop.f32.mrb[3].mxu1  ;;  %v737_v31 = vrot.slane %v671_v6, %v704_v45 }
 0x1dc   : > { %v2370_v37 = vmax.f32 %v2078_v29, 0.0  ;;  %v2372_v39 = vmax.f32 %v2119_v33, 0.0 }
 0x1de   : > { %v9430_v40 = vpack.c.bf16 %v2370_v37, %v2369_v32  ;;  %v9431_v41 = vpack.c.bf16 %v2372_v39, %v2371_v36 }
 0x1e0   : > { %2449 = vst [vmem:[#allocation2] sm:$0xff] %v9430_v40  ;;  %2450 = vst [vmem:[#allocation2 + $0x8] sm:$0xff] %v9431_v41 }
 0x218   : > { %v2157_v49 = vpop.f32.mrb[4].mxu0  ;;  %v2198_v51 = vpop.f32.mrb[4].mxu1 }
 0x219   : > { %v2158_v50 = vadd.f32 %v2157_v49, %v693_v46  ;;  %v2159_v52 = vpop.f32.mrb[5].mxu0  ;;  %v2199_v54 = vadd.f32 %v2198_v51, %v701_v47  ;;  %v2200_v56 = vpop.f32.mrb[5].mxu1 }
 0x21a   : > { %v2160_v55 = vadd.f32 %v2159_v52, %v697_v48  ;;  %v2161_v58 = vpop.f32.mrb[6].mxu0  ;;  %v2201_v60 = vadd.f32 %v2200_v56, %v705_v57  ;;  %v2202_v61 = vpop.f32.mrb[6].mxu1 }
 0x21b   : > { %v2373_v59 = vmax.f32 %v2158_v50, 0.0  ;;  %v2162_v62 = vpop.f32.mrb[7].mxu0  ;;  %v2375_v63 = vmax.f32 %v2199_v54, 0.0  ;;  %v2203_v1 = vpop.f32.mrb[7].mxu1 }
 0x21c   : > { %v2374_v0 = vmax.f32 %v2160_v55, 0.0  ;;  %v2376_v2 = vmax.f32 %v2201_v60, 0.0 }
 0x21e   : > { %v9432_v3 = vpack.c.bf16 %v2374_v0, %v2373_v59  ;;  %v9433_v4 = vpack.c.bf16 %v2376_v2, %v2375_v63 }
 0x220   : > { %2451 = vst [vmem:[#allocation2 + $0x10] sm:$0xff] %v9432_v3  ;;  %2452 = vst [vmem:[#allocation2 + $0x18] sm:$0xff] %v9433_v4 }
 0x258   : > { %v2239_v11 = vpop.f32.mrb[8].mxu0  ;;  %v2280_v14 = vpop.f32.mrb[8].mxu1 }
 0x259   : > { %v2240_v13 = vadd.f32 %v2239_v11, %v709_v7  ;;  %v2241_v15 = vpop.f32.mrb[9].mxu0  ;;  %v2281_v18 = vadd.f32 %v2280_v14, %v717_v8  ;;  %v2282_v53 = vpop.f32.mrb[9].mxu1 }
 0x25a   : > { %v2242_v22 = vadd.f32 %v2241_v15, %v713_v9  ;;  %v2243_v12 = vpop.f32.mrb[10].mxu0  ;;  %v2283_v24 = vadd.f32 %v2282_v53, %v721_v10  ;;  %v2284_v17 = vpop.f32.mrb[10].mxu1 }
 0x25b   : > { %v2377_v23 = vmax.f32 %v2240_v13, 0.0  ;;  %v2244_v25 = vpop.f32.mrb[11].mxu0  ;;  %v2379_v26 = vmax.f32 %v2281_v18, 0.0  ;;  %v2285_v27 = vpop.f32.mrb[11].mxu1 }
 0x25c   : > { %v2378_v19 = vmax.f32 %v2242_v22, 0.0  ;;  %v2380_v28 = vmax.f32 %v2283_v24, 0.0 }
 0x25e   : > { %v9434_v20 = vpack.c.bf16 %v2378_v19, %v2377_v23  ;;  %v9435_v29 = vpack.c.bf16 %v2380_v28, %v2379_v26 }
 0x260   : > { %2453 = vst [vmem:[#allocation2 + $0x20] sm:$0xff] %v9434_v20  ;;  %2454 = vst [vmem:[#allocation2 + $0x28] sm:$0xff] %v9435_v29 }
 0x298   : > { %v2321_v32 = vpop.f32.mrb[12].mxu0  ;;  %v2362_v34 = vpop.f32.mrb[12].mxu1 }
 0x299   : > { %v2322_v33 = vadd.f32 %v2321_v32, %v725_v16  ;;  %v2323_v35 = vpop.f32.mrb[13].mxu0  ;;  %v2363_v36 = vadd.f32 %v2362_v34, %v733_v21  ;;  %v2364_v38 = vpop.f32.mrb[13].mxu1 }
 0x29a   : > { %v2324_v37 = vadd.f32 %v2323_v35, %v729_v30  ;;  %v2325_v39 = vpop.f32.mrb[14].mxu0  ;;  %v2365_v41 = vadd.f32 %v2364_v38, %v737_v31  ;;  %v2366_v46 = vpop.f32.mrb[14].mxu1 }
 0x29b   : > { %v2381_v40 = vmax.f32 %v2322_v33, 0.0  ;;  %v2326_v47 = vpop.f32.mrb[15].mxu0  ;;  %v2383_v48 = vmax.f32 %v2363_v36, 0.0  ;;  %v2367_v49 = vpop.f32.mrb[15].mxu1 }
 0x29c   : > { %v2382_v57 = vmax.f32 %v2324_v37, 0.0  ;;  %v2384_v50 = vmax.f32 %v2365_v41, 0.0 }
 0x29e   : > { %v9436_v42 = vpack.c.bf16 %v2382_v57, %v2381_v40  ;;  %v9437_v43 = vpack.c.bf16 %v2384_v50, %v2383_v48 }
 0x2a0   : > { %2455 = vst [vmem:[#allocation2 + $0x30] sm:$0xff] %v9436_v42  ;;  %2456 = vst [vmem:[#allocation2 + $0x38] sm:$0xff] %v9437_v43 }
 0x2a1 PF: > { %v9609_v44 = vld [vmem:[%s10921_s26 + $0x4] ss:$16 sps:$4 sm:$0xff]   ;;  %v9611_v45 = vld [vmem:[%s10921_s26 + $0xc] ss:$16 sps:$4 sm:$0xff]   ;;  %v9613_v51 = vld [vmem:[%s10921_s26] ss:$16 sps:$4 sm:$0xff]  }
 0x2a2   : > { %5623 = vmatprep.subr.bf16.mxu0 %v9609_v44  ;;  %v9614_v52 = vld [vmem:[%s10921_s26 + $0x8] ss:$16 sps:$4 sm:$0xff]   ;;  %5951 = vmatprep.subr.bf16.mxu1 %v9611_v45  ;;  %v9615_v54 = vld [vmem:[%s10921_s26 + $0x24] ss:$16 sps:$4 sm:$0xff]   ;;  %v9617_v55 = vld [vmem:[%s10921_s26 + $0x2c] ss:$16 sps:$4 sm:$0xff]  }
 0x2a3   : > { %5624 = vmatpush1.bf16.msra.mxu0 %v9613_v51  ;;  %5952 = vmatpush1.bf16.msra.mxu1 %v9614_v52  ;;  %v9619_v56 = vld [vmem:[%s10921_s26 + $0x20] ss:$16 sps:$4 sm:$0xff]   ;;  %v9620_v58 = vld [vmem:[%s10921_s26 + $0x28] ss:$16 sps:$4 sm:$0xff]   ;;  %v9621_v59 = vld [vmem:[%s10921_s26 + $0x44] ss:$16 sps:$4 sm:$0xff]  }
 0x2a4   : > { %5625 = vmatprep.subr.bf16.mxu0 %v9615_v54  ;;  %5953 = vmatprep.subr.bf16.mxu1 %v9617_v55  ;;  %v9623_v60 = vld [vmem:[%s10921_s26 + $0x4c] ss:$16 sps:$4 sm:$0xff]   ;;  %v9625_v61 = vld [vmem:[%s10921_s26 + $0x40] ss:$16 sps:$4 sm:$0xff]   ;;  %v9626_v62 = vld [vmem:[%s10921_s26 + $0x48] ss:$16 sps:$4 sm:$0xff]  }
 0x2a5   : > { %v9627_v63 = vld [vmem:[%s10921_s26 + $0x64] ss:$16 sps:$4 sm:$0xff]   ;;  %v9629_v0 = vld [vmem:[%s10921_s26 + $0x6c] ss:$16 sps:$4 sm:$0xff]   ;;  %v9631_v1 = vld [vmem:[%s10921_s26 + $0x60] ss:$16 sps:$4 sm:$0xff]  }
 0x2a6   : > { %v9632_v2 = vld [vmem:[%s10921_s26 + $0x68] ss:$16 sps:$4 sm:$0xff]   ;;  %v9633_v3 = vld [vmem:[%s10921_s26 + $0x84] ss:$16 sps:$4 sm:$0xff]   ;;  %v9635_v4 = vld [vmem:[%s10921_s26 + $0x8c] ss:$16 sps:$4 sm:$0xff]  }
 0x2a7   : > { %5626 = vmatpush1.bf16.msra.mxu0 %v9619_v56  ;;  %5954 = vmatpush1.bf16.msra.mxu1 %v9620_v58  ;;  %v9637_v5 = vld [vmem:[%s10921_s26 + $0x80] ss:$16 sps:$4 sm:$0xff]   ;;  %v9638_v6 = vld [vmem:[%s10921_s26 + $0x88] ss:$16 sps:$4 sm:$0xff]   ;;  %v9639_v7 = vld [vmem:[%s10921_s26 + $0xa4] ss:$16 sps:$4 sm:$0xff]  }
 0x2a8   : > { %5627 = vmatprep.subr.bf16.mxu0 %v9621_v59  ;;  %5955 = vmatprep.subr.bf16.mxu1 %v9623_v60  ;;  %v9641_v8 = vld [vmem:[%s10921_s26 + $0xac] ss:$16 sps:$4 sm:$0xff]   ;;  %v9643_v9 = vld [vmem:[%s10921_s26 + $0xa0] ss:$16 sps:$4 sm:$0xff]   ;;  %v9644_v10 = vld [vmem:[%s10921_s26 + $0xa8] ss:$16 sps:$4 sm:$0xff]  }
 0x2a9   : > { %v9645_v11 = vld [vmem:[%s10921_s26 + $0xc4] ss:$16 sps:$4 sm:$0xff]   ;;  %v9647_v13 = vld [vmem:[%s10921_s26 + $0xcc] ss:$16 sps:$4 sm:$0xff]   ;;  %v9649_v14 = vld [vmem:[%s10921_s26 + $0xc0] ss:$16 sps:$4 sm:$0xff]  }
 0x2aa   : > { %v9650_v15 = vld [vmem:[%s10921_s26 + $0xc8] ss:$16 sps:$4 sm:$0xff]   ;;  %v9651_v18 = vld [vmem:[%s10921_s26 + $0xe4] ss:$16 sps:$4 sm:$0xff]   ;;  %v9653_v22 = vld [vmem:[%s10921_s26 + $0xec] ss:$16 sps:$4 sm:$0xff]  }
 0x2ab   : > { %5628 = vmatpush1.bf16.msra.mxu0 %v9625_v61  ;;  %5956 = vmatpush1.bf16.msra.mxu1 %v9626_v62  ;;  %v9655_v53 = vld [vmem:[%s10921_s26 + $0xe0] ss:$16 sps:$4 sm:$0xff]   ;;  %v9656_v12 = vld [vmem:[%s10921_s26 + $0xe8] ss:$16 sps:$4 sm:$0xff]   ;;  %v9657_v23 = vld [vmem:[%s10921_s26 + $0x104] ss:$16 sps:$4 sm:$0xff]  }
 0x2ac   : > { %5629 = vmatprep.subr.bf16.mxu0 %v9627_v63  ;;  %5957 = vmatprep.subr.bf16.mxu1 %v9629_v0  ;;  %v9659_v24 = vld [vmem:[%s10921_s26 + $0x10c] ss:$16 sps:$4 sm:$0xff]   ;;  %v9661_v17 = vld [vmem:[%s10921_s26 + $0x100] ss:$16 sps:$4 sm:$0xff]   ;;  %v9662_v25 = vld [vmem:[%s10921_s26 + $0x108] ss:$16 sps:$4 sm:$0xff]  }
 0x2ad   : > { %v9663_v26 = vld [vmem:[%s10921_s26 + $0x124] ss:$16 sps:$4 sm:$0xff]   ;;  %v9665_v19 = vld [vmem:[%s10921_s26 + $0x12c] ss:$16 sps:$4 sm:$0xff]   ;;  %v9667_v27 = vld [vmem:[%s10921_s26 + $0x120] ss:$16 sps:$4 sm:$0xff]  }
 0x2ae   : > { %v9668_v28 = vld [vmem:[%s10921_s26 + $0x128] ss:$16 sps:$4 sm:$0xff]   ;;  %v9669_v20 = vld [vmem:[%s10921_s26 + $0x144] ss:$16 sps:$4 sm:$0xff]   ;;  %v9671_v29 = vld [vmem:[%s10921_s26 + $0x14c] ss:$16 sps:$4 sm:$0xff]  }
 0x2af   : > { %5630 = vmatpush1.bf16.msra.mxu0 %v9631_v1  ;;  %5958 = vmatpush1.bf16.msra.mxu1 %v9632_v2  ;;  %v9673_v16 = vld [vmem:[%s10921_s26 + $0x140] ss:$16 sps:$4 sm:$0xff]   ;;  %v9674_v21 = vld [vmem:[%s10921_s26 + $0x148] ss:$16 sps:$4 sm:$0xff]   ;;  %v9675_v30 = vld [vmem:[%s10921_s26 + $0x164] ss:$16 sps:$4 sm:$0xff]  }
 0x2b0   : > { %5631 = vmatprep.subr.bf16.mxu0 %v9633_v3  ;;  %5959 = vmatprep.subr.bf16.mxu1 %v9635_v4  ;;  %v9677_v31 = vld [vmem:[%s10921_s26 + $0x16c] ss:$16 sps:$4 sm:$0xff]   ;;  %v2465_v32 = vld [vmem:[#allocation2] sm:$0xff]  ;;  %v9680_v35 = vld [vmem:[%s10921_s26 + $0x168] ss:$16 sps:$4 sm:$0xff]   ;;  %s11925_s17 = sld [smem:[#allocation14_spill]] }
 0x2b1   : > { %v9679_v33 = vld [vmem:[%s10921_s26 + $0x160] ss:$16 sps:$4 sm:$0xff]   ;;  %v8639_v34 = vcombine.high %v2465_v32, %v2465_v32  ;;  %v9681_v36 = vld [vmem:[%s10921_s26 + $0x184] ss:$16 sps:$4 sm:$0xff]   ;;  %v9683_v37 = vld [vmem:[%s10921_s26 + $0x18c] ss:$16 sps:$4 sm:$0xff]   ;;  %v8638_v54 = vcombine.low %v2465_v32, %v2465_v32 }
 0x2b2   : > { %v9685_v38 = vld [vmem:[%s10921_s26 + $0x180] ss:$16 sps:$4 sm:$0xff]   ;;  %v9686_v39 = vld [vmem:[%s10921_s26 + $0x188] ss:$16 sps:$4 sm:$0xff]   ;;  %v9687_v40 = vld [vmem:[%s10921_s26 + $0x1a4] ss:$16 sps:$4 sm:$0xff]  }
 0x2b3   : > { %5632 = vmatpush1.bf16.msra.mxu0 %v9637_v5  ;;  %5960 = vmatpush1.bf16.msra.mxu1 %v9638_v6  ;;  %v9689_v41 = vld [vmem:[%s10921_s26 + $0x1ac] ss:$16 sps:$4 sm:$0xff]   ;;  %v9691_v46 = vld [vmem:[%s10921_s26 + $0x1a0] ss:$16 sps:$4 sm:$0xff]   ;;  %v9692_v47 = vld [vmem:[%s10921_s26 + $0x1a8] ss:$16 sps:$4 sm:$0xff]  }
 0x2b4   : > { %5633 = vmatprep.subr.bf16.mxu0 %v9639_v7  ;;  %5961 = vmatprep.subr.bf16.mxu1 %v9641_v8  ;;  %v9693_v48 = vld [vmem:[%s10921_s26 + $0x1c4] ss:$16 sps:$4 sm:$0xff]   ;;  %v9695_v57 = vld [vmem:[%s10921_s26 + $0x1cc] ss:$16 sps:$4 sm:$0xff]   ;;  %v9697_v49 = vld [vmem:[%s10921_s26 + $0x1c0] ss:$16 sps:$4 sm:$0xff]  }
 0x2b5   : > { %5655 = vmatprep.mubr.bf16.mxu0 %v8639_v34  ;;  %5983 = vmatprep.mubr.bf16.mxu1 %v8639_v34  ;;  %v9698_v50 = vld [vmem:[%s10921_s26 + $0x1c8] ss:$16 sps:$4 sm:$0xff]   ;;  %v9699_v42 = vld [vmem:[%s10921_s26 + $0x1e4] ss:$16 sps:$4 sm:$0xff]   ;;  %v9701_v43 = vld [vmem:[%s10921_s26 + $0x1ec] ss:$16 sps:$4 sm:$0xff]  }
 0x2b6   : > { %v9703_v44 = vld [vmem:[%s10921_s26 + $0x1e0] ss:$16 sps:$4 sm:$0xff]   ;;  %v9704_v45 = vld [vmem:[%s10921_s26 + $0x1e8] ss:$16 sps:$4 sm:$0xff]   ;;  %v9709_v51 = vld [vmem:[%s10921_s26 + $0x204] ss:$16 sps:$4 sm:$0xff]  }
 0x2b7   : > { %5634 = vmatpush1.bf16.msra.mxu0 %v9643_v9  ;;  %5962 = vmatpush1.bf16.msra.mxu1 %v9644_v10  ;;  %v9712_v52 = vld [vmem:[%s10921_s26 + $0x20c] ss:$16 sps:$4 sm:$0xff]   ;;  %v9707_v55 = vld [vmem:[%s10921_s26 + $0x200] ss:$16 sps:$4 sm:$0xff]   ;;  %v9710_v56 = vld [vmem:[%s10921_s26 + $0x208] ss:$16 sps:$4 sm:$0xff]  }
 0x2b8   : > { %5635 = vmatprep.subr.bf16.mxu0 %v9645_v11  ;;  %5963 = vmatprep.subr.bf16.mxu1 %v9647_v13  ;;  %v9715_v58 = vld [vmem:[%s10921_s26 + $0x224] ss:$16 sps:$4 sm:$0xff]   ;;  %v9718_v59 = vld [vmem:[%s10921_s26 + $0x22c] ss:$16 sps:$4 sm:$0xff]   ;;  %v9713_v60 = vld [vmem:[%s10921_s26 + $0x220] ss:$16 sps:$4 sm:$0xff]  }
 0x2b9   : > { %v9716_v61 = vld [vmem:[%s10921_s26 + $0x228] ss:$16 sps:$4 sm:$0xff]   ;;  %v9721_v62 = vld [vmem:[%s10921_s26 + $0x244] ss:$16 sps:$4 sm:$0xff]   ;;  %v9724_v63 = vld [vmem:[%s10921_s26 + $0x24c] ss:$16 sps:$4 sm:$0xff]  }
 0x2ba   : > { %v9719_v0 = vld [vmem:[%s10921_s26 + $0x240] ss:$16 sps:$4 sm:$0xff]   ;;  %v9722_v1 = vld [vmem:[%s10921_s26 + $0x248] ss:$16 sps:$4 sm:$0xff]   ;;  %v9727_v2 = vld [vmem:[%s10921_s26 + $0x264] ss:$16 sps:$4 sm:$0xff]  }
 0x2bb   : > { %5636 = vmatpush1.bf16.msra.mxu0 %v9649_v14  ;;  %5964 = vmatpush1.bf16.msra.mxu1 %v9650_v15  ;;  %v9730_v3 = vld [vmem:[%s10921_s26 + $0x26c] ss:$16 sps:$4 sm:$0xff]   ;;  %v9725_v4 = vld [vmem:[%s10921_s26 + $0x260] ss:$16 sps:$4 sm:$0xff]   ;;  %v9728_v5 = vld [vmem:[%s10921_s26 + $0x268] ss:$16 sps:$4 sm:$0xff]  }
 0x2bc   : > { %5637 = vmatprep.subr.bf16.mxu0 %v9651_v18  ;;  %5965 = vmatprep.subr.bf16.mxu1 %v9653_v22  ;;  %v9733_v6 = vld [vmem:[%s10921_s26 + $0x284] ss:$16 sps:$4 sm:$0xff]   ;;  %v9736_v7 = vld [vmem:[%s10921_s26 + $0x28c] ss:$16 sps:$4 sm:$0xff]   ;;  %v9731_v8 = vld [vmem:[%s10921_s26 + $0x280] ss:$16 sps:$4 sm:$0xff]  }
 0x2bd   : > { %v9734_v9 = vld [vmem:[%s10921_s26 + $0x288] ss:$16 sps:$4 sm:$0xff]   ;;  %v9739_v10 = vld [vmem:[%s10921_s26 + $0x2a4] ss:$16 sps:$4 sm:$0xff]   ;;  %v9742_v11 = vld [vmem:[%s10921_s26 + $0x2ac] ss:$16 sps:$4 sm:$0xff]  }
 0x2be   : > { %v9737_v13 = vld [vmem:[%s10921_s26 + $0x2a0] ss:$16 sps:$4 sm:$0xff]   ;;  %v9740_v14 = vld [vmem:[%s10921_s26 + $0x2a8] ss:$16 sps:$4 sm:$0xff]   ;;  %v9745_v15 = vld [vmem:[%s10921_s26 + $0x2c4] ss:$16 sps:$4 sm:$0xff]  }
 0x2bf   : > { %5638 = vmatpush1.bf16.msra.mxu0 %v9655_v53  ;;  %5966 = vmatpush1.bf16.msra.mxu1 %v9656_v12  ;;  %v9748_v18 = vld [vmem:[%s10921_s26 + $0x2cc] ss:$16 sps:$4 sm:$0xff]   ;;  %v9743_v12 = vld [vmem:[%s10921_s26 + $0x2c0] ss:$16 sps:$4 sm:$0xff]   ;;  %v9770_v34 = vld [vmem:[%s10921_s26 + $0x348] ss:$16 sps:$4 sm:$0xff]  }
 0x2c0   : > { %5639 = vmatprep.subr.bf16.mxu0 %v9657_v23  ;;  %5967 = vmatprep.subr.bf16.mxu1 %v9659_v24  ;;  %v11084_v22 = vld [vmem:[#allocation2 + $0x8] sm:$0xff]  ;;  %v9751_v24 = vld [vmem:[%s10921_s26 + $0x2e4] ss:$16 sps:$4 sm:$0xff]   ;;  %p9422_p4 = scmp.ne.s32.totalorder %s11925_s17, 1 }
 0x2c1   : > { %v8641_v53 = vcombine.high %v11084_v22, %v11084_v22  ;;  %v9746_v23 = vld [vmem:[%s10921_s26 + $0x2c8] ss:$16 sps:$4 sm:$0xff]   ;;  %v9772_v32 = vld [vmem:[%s10921_s26 + $0x34c] ss:$16 sps:$4 sm:$0xff]  }
 0x2c3   : > { %5640 = vmatpush1.bf16.msra.mxu0 %v9661_v17  ;;  %5968 = vmatpush1.bf16.msra.mxu1 %v9662_v25  ;;  %v9754_v17 = vld [vmem:[%s10921_s26 + $0x2ec] ss:$16 sps:$4 sm:$0xff]   ;;  %v9749_v25 = vld [vmem:[%s10921_s26 + $0x2e0] ss:$16 sps:$4 sm:$0xff]  }
 0x2c4   : > { %5641 = vmatprep.subr.bf16.mxu0 %v9663_v26  ;;  %5969 = vmatprep.subr.bf16.mxu1 %v9665_v19  ;;  %v9752_v26 = vld [vmem:[%s10921_s26 + $0x2e8] ss:$16 sps:$4 sm:$0xff]   ;;  %v9757_v19 = vld [vmem:[%s10921_s26 + $0x304] ss:$16 sps:$4 sm:$0xff]  }
 0x2c7   : > { %5642 = vmatpush1.bf16.msra.mxu0 %v9667_v27  ;;  %5970 = vmatpush1.bf16.msra.mxu1 %v9668_v28  ;;  %v9760_v27 = vld [vmem:[%s10921_s26 + $0x30c] ss:$16 sps:$4 sm:$0xff]   ;;  %v9755_v28 = vld [vmem:[%s10921_s26 + $0x300] ss:$16 sps:$4 sm:$0xff]  }
 0x2c8   : > { %5643 = vmatprep.subr.bf16.mxu0 %v9669_v20  ;;  %5971 = vmatprep.subr.bf16.mxu1 %v9671_v29  ;;  %v9758_v20 = vld [vmem:[%s10921_s26 + $0x308] ss:$16 sps:$4 sm:$0xff]   ;;  %v9763_v29 = vld [vmem:[%s10921_s26 + $0x324] ss:$16 sps:$4 sm:$0xff]  }
 0x2cb   : > { %5644 = vmatpush1.bf16.msra.mxu0 %v9673_v16  ;;  %5972 = vmatpush1.bf16.msra.mxu1 %v9674_v21  ;;  %v9766_v16 = vld [vmem:[%s10921_s26 + $0x32c] ss:$16 sps:$4 sm:$0xff]   ;;  %v9761_v21 = vld [vmem:[%s10921_s26 + $0x320] ss:$16 sps:$4 sm:$0xff]  }
 0x2cc   : > { %5645 = vmatprep.subr.bf16.mxu0 %v9675_v30  ;;  %5973 = vmatprep.subr.bf16.mxu1 %v9677_v31  ;;  %v9764_v30 = vld [vmem:[%s10921_s26 + $0x328] ss:$16 sps:$4 sm:$0xff]   ;;  %v9769_v31 = vld [vmem:[%s10921_s26 + $0x344] ss:$16 sps:$4 sm:$0xff]  }
 0x2cf   : > { %5646 = vmatpush1.bf16.msra.mxu0 %v9679_v33  ;;  %5974 = vmatpush1.bf16.msra.mxu1 %v9680_v35  ;;  %v9767_v33 = vld [vmem:[%s10921_s26 + $0x340] ss:$16 sps:$4 sm:$0xff]   ;;  %v9775_v35 = vld [vmem:[%s10921_s26 + $0x364] ss:$16 sps:$4 sm:$0xff]  }
 0x2d0   : > { %5647 = vmatprep.subr.bf16.mxu0 %v9681_v36  ;;  %5975 = vmatprep.subr.bf16.mxu1 %v9683_v37  ;;  %v9778_v36 = vld [vmem:[%s10921_s26 + $0x36c] ss:$16 sps:$4 sm:$0xff]   ;;  %v9773_v37 = vld [vmem:[%s10921_s26 + $0x360] ss:$16 sps:$4 sm:$0xff]  }
 0x2d3   : > { %5648 = vmatpush1.bf16.msra.mxu0 %v9685_v38  ;;  %5976 = vmatpush1.bf16.msra.mxu1 %v9686_v39  ;;  %v9776_v38 = vld [vmem:[%s10921_s26 + $0x368] ss:$16 sps:$4 sm:$0xff]   ;;  %v9781_v39 = vld [vmem:[%s10921_s26 + $0x384] ss:$16 sps:$4 sm:$0xff]  }
 0x2d4   : > { %5649 = vmatprep.subr.bf16.mxu0 %v9687_v40  ;;  %5977 = vmatprep.subr.bf16.mxu1 %v9689_v41  ;;  %v9784_v40 = vld [vmem:[%s10921_s26 + $0x38c] ss:$16 sps:$4 sm:$0xff]   ;;  %v9779_v41 = vld [vmem:[%s10921_s26 + $0x380] ss:$16 sps:$4 sm:$0xff]  }
 0x2d7   : > { %5650 = vmatpush1.bf16.msra.mxu0 %v9691_v46  ;;  %5978 = vmatpush1.bf16.msra.mxu1 %v9692_v47  ;;  %v9782_v46 = vld [vmem:[%s10921_s26 + $0x388] ss:$16 sps:$4 sm:$0xff]   ;;  %v9787_v47 = vld [vmem:[%s10921_s26 + $0x3a4] ss:$16 sps:$4 sm:$0xff]  }
 0x2d8   : > { %5651 = vmatprep.subr.bf16.mxu0 %v9693_v48  ;;  %5979 = vmatprep.subr.bf16.mxu1 %v9695_v57  ;;  %v9790_v48 = vld [vmem:[%s10921_s26 + $0x3ac] ss:$16 sps:$4 sm:$0xff]   ;;  %v9785_v57 = vld [vmem:[%s10921_s26 + $0x3a0] ss:$16 sps:$4 sm:$0xff]  }
 0x2db   : > { %5652 = vmatpush1.bf16.msra.mxu0 %v9697_v49  ;;  %5980 = vmatpush1.bf16.msra.mxu1 %v9698_v50  ;;  %v9788_v49 = vld [vmem:[%s10921_s26 + $0x3a8] ss:$16 sps:$4 sm:$0xff]   ;;  %v9793_v50 = vld [vmem:[%s10921_s26 + $0x3c4] ss:$16 sps:$4 sm:$0xff]  }
 0x2dc   : > { %5653 = vmatprep.subr.bf16.mxu0 %v9699_v42  ;;  %5981 = vmatprep.subr.bf16.mxu1 %v9701_v43  ;;  %v9796_v42 = vld [vmem:[%s10921_s26 + $0x3cc] ss:$16 sps:$4 sm:$0xff]   ;;  %v9791_v43 = vld [vmem:[%s10921_s26 + $0x3c0] ss:$16 sps:$4 sm:$0xff]  }
 0x2df   : > { %5654 = vmatpush1.bf16.msra.mxu0 %v9703_v44  ;;  %5982 = vmatpush1.bf16.msra.mxu1 %v9704_v45  ;;  %v9794_v44 = vld [vmem:[%s10921_s26 + $0x3c8] ss:$16 sps:$4 sm:$0xff]   ;;  %v9799_v45 = vld [vmem:[%s10921_s26 + $0x3e4] ss:$16 sps:$4 sm:$0xff]  }
 0x2e0   : > { %5664 = vmatprep.subr.bf16.mxu0 %v9709_v51  ;;  %5992 = vmatprep.subr.bf16.mxu1 %v9712_v52  ;;  %v9802_v51 = vld [vmem:[%s10921_s26 + $0x3ec] ss:$16 sps:$4 sm:$0xff]   ;;  %v9797_v52 = vld [vmem:[%s10921_s26 + $0x3e0] ss:$16 sps:$4 sm:$0xff]  }
 0x2e2   : > { %5656 = vmatmul.mubr.bf16.vlgmr.msra.gmra.mrb[0].mxu0 %v8638_v54  ;;  %5984 = vmatmul.mubr.bf16.vlgmr.msra.gmra.mrb[0].mxu1 %v8638_v54  ;;  %v9800_v54 = vld [vmem:[%s10921_s26 + $0x3e8] ss:$16 sps:$4 sm:$0xff]  }
 0x2e3   : > { %5665 = vmatpush1.bf16.msra.mxu0 %v9707_v55  ;;  %5993 = vmatpush1.bf16.msra.mxu1 %v9710_v56  ;;  %v9807_v55 = vld [vmem:[%s10921_s26 + $0x404] ss:$16 sps:$4 sm:$0xff]   ;;  %v9810_v56 = vld [vmem:[%s10921_s26 + $0x40c] ss:$16 sps:$4 sm:$0xff]  }
 0x2e4   : > { %5666 = vmatprep.subr.bf16.mxu0 %v9715_v58  ;;  %5994 = vmatprep.subr.bf16.mxu1 %v9718_v59  ;;  %v8640_v58 = vcombine.low %v11084_v22, %v11084_v22  ;;  %v9805_v59 = vld [vmem:[%s10921_s26 + $0x400] ss:$16 sps:$4 sm:$0xff]   ;;  %v9840_v22 = vld [vmem:[%s10921_s26 + $0x4ac] ss:$16 sps:$4 sm:$0xff]  }
 0x2e5   : > { %5696 = vmatprep.mubr.bf16.mxu0 %v8641_v53  ;;  %6024 = vmatprep.mubr.bf16.mxu1 %v8641_v53  ;;  %v9835_v53 = vld [vmem:[%s10921_s26 + $0x4a0] ss:$16 sps:$4 sm:$0xff]  }
 0x2e7   : > { %5667 = vmatpush1.bf16.msra.mxu0 %v9713_v60  ;;  %5995 = vmatpush1.bf16.msra.mxu1 %v9716_v61  ;;  %v9808_v60 = vld [vmem:[%s10921_s26 + $0x408] ss:$16 sps:$4 sm:$0xff]   ;;  %v9813_v61 = vld [vmem:[%s10921_s26 + $0x424] ss:$16 sps:$4 sm:$0xff]  }
 0x2e8   : > { %5668 = vmatprep.subr.bf16.mxu0 %v9721_v62  ;;  %5996 = vmatprep.subr.bf16.mxu1 %v9724_v63  ;;  %v11133_v62 = vld [vmem:[#allocation2 + $0x10] sm:$0xff]  ;;  %v9816_v63 = vld [vmem:[%s10921_s26 + $0x42c] ss:$16 sps:$4 sm:$0xff]  }
 0x2eb   : > { %5669 = vmatpush1.bf16.msra.mxu0 %v9719_v0  ;;  %5997 = vmatpush1.bf16.msra.mxu1 %v9722_v1  ;;  %v8643_v0 = vcombine.high %v11133_v62, %v11133_v62  ;;  %v9811_v1 = vld [vmem:[%s10921_s26 + $0x420] ss:$16 sps:$4 sm:$0xff]  }
 0x2ec   : > { %5670 = vmatprep.subr.bf16.mxu0 %v9727_v2  ;;  %5998 = vmatprep.subr.bf16.mxu1 %v9730_v3  ;;  %v9814_v2 = vld [vmem:[%s10921_s26 + $0x428] ss:$16 sps:$4 sm:$0xff]   ;;  %v9819_v3 = vld [vmem:[%s10921_s26 + $0x444] ss:$16 sps:$4 sm:$0xff]  }
 0x2ef   : > { %5671 = vmatpush1.bf16.msra.mxu0 %v9725_v4  ;;  %5999 = vmatpush1.bf16.msra.mxu1 %v9728_v5  ;;  %v9822_v4 = vld [vmem:[%s10921_s26 + $0x44c] ss:$16 sps:$4 sm:$0xff]   ;;  %v9817_v5 = vld [vmem:[%s10921_s26 + $0x440] ss:$16 sps:$4 sm:$0xff]  }
 0x2f0   : > { %5672 = vmatprep.subr.bf16.mxu0 %v9733_v6  ;;  %6000 = vmatprep.subr.bf16.mxu1 %v9736_v7  ;;  %v9820_v6 = vld [vmem:[%s10921_s26 + $0x448] ss:$16 sps:$4 sm:$0xff]   ;;  %v9825_v7 = vld [vmem:[%s10921_s26 + $0x464] ss:$16 sps:$4 sm:$0xff]  }
 0x2f3   : > { %5673 = vmatpush1.bf16.msra.mxu0 %v9731_v8  ;;  %6001 = vmatpush1.bf16.msra.mxu1 %v9734_v9  ;;  %v9828_v8 = vld [vmem:[%s10921_s26 + $0x46c] ss:$16 sps:$4 sm:$0xff]   ;;  %v9823_v9 = vld [vmem:[%s10921_s26 + $0x460] ss:$16 sps:$4 sm:$0xff]  }
 0x2f4   : > { %5674 = vmatprep.subr.bf16.mxu0 %v9739_v10  ;;  %6002 = vmatprep.subr.bf16.mxu1 %v9742_v11  ;;  %v9826_v10 = vld [vmem:[%s10921_s26 + $0x468] ss:$16 sps:$4 sm:$0xff]   ;;  %v9831_v11 = vld [vmem:[%s10921_s26 + $0x484] ss:$16 sps:$4 sm:$0xff]  }
 0x2f7   : > { %5675 = vmatpush1.bf16.msra.mxu0 %v9737_v13  ;;  %6003 = vmatpush1.bf16.msra.mxu1 %v9740_v14  ;;  %v9834_v13 = vld [vmem:[%s10921_s26 + $0x48c] ss:$16 sps:$4 sm:$0xff]   ;;  %v9829_v14 = vld [vmem:[%s10921_s26 + $0x480] ss:$16 sps:$4 sm:$0xff]  }
 0x2f8   : > { %5676 = vmatprep.subr.bf16.mxu0 %v9745_v15  ;;  %6004 = vmatprep.subr.bf16.mxu1 %v9748_v18  ;;  %v9832_v15 = vld [vmem:[%s10921_s26 + $0x488] ss:$16 sps:$4 sm:$0xff]   ;;  %v9837_v18 = vld [vmem:[%s10921_s26 + $0x4a4] ss:$16 sps:$4 sm:$0xff]  }
 0x2fb   : > { %5677 = vmatpush1.bf16.msra.mxu0 %v9743_v12  ;;  %6005 = vmatpush1.bf16.msra.mxu1 %v9746_v23  ;;  %v9838_v12 = vld [vmem:[%s10921_s26 + $0x4a8] ss:$16 sps:$4 sm:$0xff]   ;;  %v9843_v23 = vld [vmem:[%s10921_s26 + $0x4c4] ss:$16 sps:$4 sm:$0xff]  }
 0x2fc   : > { %5678 = vmatprep.subr.bf16.mxu0 %v9751_v24  ;;  %6006 = vmatprep.subr.bf16.mxu1 %v9754_v17  ;;  %v9846_v24 = vld [vmem:[%s10921_s26 + $0x4cc] ss:$16 sps:$4 sm:$0xff]   ;;  %v9841_v17 = vld [vmem:[%s10921_s26 + $0x4c0] ss:$16 sps:$4 sm:$0xff]  }
 0x2ff   : > { %5679 = vmatpush1.bf16.msra.mxu0 %v9749_v25  ;;  %6007 = vmatpush1.bf16.msra.mxu1 %v9752_v26  ;;  %v9844_v25 = vld [vmem:[%s10921_s26 + $0x4c8] ss:$16 sps:$4 sm:$0xff]   ;;  %v9849_v26 = vld [vmem:[%s10921_s26 + $0x4e4] ss:$16 sps:$4 sm:$0xff]  }
 0x300   : > { %5680 = vmatprep.subr.bf16.mxu0 %v9757_v19  ;;  %6008 = vmatprep.subr.bf16.mxu1 %v9760_v27  ;;  %v9852_v19 = vld [vmem:[%s10921_s26 + $0x4ec] ss:$16 sps:$4 sm:$0xff]   ;;  %v9847_v27 = vld [vmem:[%s10921_s26 + $0x4e0] ss:$16 sps:$4 sm:$0xff]  }
 0x303   : > { %5681 = vmatpush1.bf16.msra.mxu0 %v9755_v28  ;;  %6009 = vmatpush1.bf16.msra.mxu1 %v9758_v20  ;;  %v9850_v28 = vld [vmem:[%s10921_s26 + $0x4e8] ss:$16 sps:$4 sm:$0xff]   ;;  %v9855_v20 = vld [vmem:[%s10921_s26 + $0x504] ss:$16 sps:$4 sm:$0xff]  }
 0x304   : > { %5682 = vmatprep.subr.bf16.mxu0 %v9763_v29  ;;  %6010 = vmatprep.subr.bf16.mxu1 %v9766_v16  ;;  %v9858_v29 = vld [vmem:[%s10921_s26 + $0x50c] ss:$16 sps:$4 sm:$0xff]   ;;  %v9853_v16 = vld [vmem:[%s10921_s26 + $0x500] ss:$16 sps:$4 sm:$0xff]  }
 0x307   : > { %5683 = vmatpush1.bf16.msra.mxu0 %v9761_v21  ;;  %6011 = vmatpush1.bf16.msra.mxu1 %v9764_v30  ;;  %v9856_v21 = vld [vmem:[%s10921_s26 + $0x508] ss:$16 sps:$4 sm:$0xff]   ;;  %v9861_v30 = vld [vmem:[%s10921_s26 + $0x524] ss:$16 sps:$4 sm:$0xff]  }
 0x308   : > { %5684 = vmatprep.subr.bf16.mxu0 %v9769_v31  ;;  %6012 = vmatprep.subr.bf16.mxu1 %v9772_v32  ;;  %v9864_v31 = vld [vmem:[%s10921_s26 + $0x52c] ss:$16 sps:$4 sm:$0xff]   ;;  %v9859_v32 = vld [vmem:[%s10921_s26 + $0x520] ss:$16 sps:$4 sm:$0xff]  }
 0x30b   : > { %5685 = vmatpush1.bf16.msra.mxu0 %v9767_v33  ;;  %6013 = vmatpush1.bf16.msra.mxu1 %v9770_v34  ;;  %v9862_v33 = vld [vmem:[%s10921_s26 + $0x528] ss:$16 sps:$4 sm:$0xff]   ;;  %v9867_v34 = vld [vmem:[%s10921_s26 + $0x544] ss:$16 sps:$4 sm:$0xff]  }
 0x30c   : > { %5686 = vmatprep.subr.bf16.mxu0 %v9775_v35  ;;  %6014 = vmatprep.subr.bf16.mxu1 %v9778_v36  ;;  %v9870_v35 = vld [vmem:[%s10921_s26 + $0x54c] ss:$16 sps:$4 sm:$0xff]   ;;  %v9865_v36 = vld [vmem:[%s10921_s26 + $0x540] ss:$16 sps:$4 sm:$0xff]  }
 0x30f   : > { %5687 = vmatpush1.bf16.msra.mxu0 %v9773_v37  ;;  %6015 = vmatpush1.bf16.msra.mxu1 %v9776_v38  ;;  %v9868_v37 = vld [vmem:[%s10921_s26 + $0x548] ss:$16 sps:$4 sm:$0xff]   ;;  %v9873_v38 = vld [vmem:[%s10921_s26 + $0x564] ss:$16 sps:$4 sm:$0xff]  }
 0x310   : > { %5688 = vmatprep.subr.bf16.mxu0 %v9781_v39  ;;  %6016 = vmatprep.subr.bf16.mxu1 %v9784_v40  ;;  %v9876_v39 = vld [vmem:[%s10921_s26 + $0x56c] ss:$16 sps:$4 sm:$0xff]   ;;  %v9871_v40 = vld [vmem:[%s10921_s26 + $0x560] ss:$16 sps:$4 sm:$0xff]  }
 0x313   : > { %5689 = vmatpush1.bf16.msra.mxu0 %v9779_v41  ;;  %6017 = vmatpush1.bf16.msra.mxu1 %v9782_v46  ;;  %v9874_v41 = vld [vmem:[%s10921_s26 + $0x568] ss:$16 sps:$4 sm:$0xff]   ;;  %v9879_v46 = vld [vmem:[%s10921_s26 + $0x584] ss:$16 sps:$4 sm:$0xff]  }
 0x314   : > { %5690 = vmatprep.subr.bf16.mxu0 %v9787_v47  ;;  %6018 = vmatprep.subr.bf16.mxu1 %v9790_v48  ;;  %v9882_v47 = vld [vmem:[%s10921_s26 + $0x58c] ss:$16 sps:$4 sm:$0xff]   ;;  %v9877_v48 = vld [vmem:[%s10921_s26 + $0x580] ss:$16 sps:$4 sm:$0xff]  }
 0x317   : > { %5691 = vmatpush1.bf16.msra.mxu0 %v9785_v57  ;;  %6019 = vmatpush1.bf16.msra.mxu1 %v9788_v49  ;;  %v9880_v57 = vld [vmem:[%s10921_s26 + $0x588] ss:$16 sps:$4 sm:$0xff]   ;;  %v9885_v49 = vld [vmem:[%s10921_s26 + $0x5a4] ss:$16 sps:$4 sm:$0xff]  }
 0x318   : > { %5692 = vmatprep.subr.bf16.mxu0 %v9793_v50  ;;  %6020 = vmatprep.subr.bf16.mxu1 %v9796_v42  ;;  %v9888_v50 = vld [vmem:[%s10921_s26 + $0x5ac] ss:$16 sps:$4 sm:$0xff]   ;;  %v9883_v42 = vld [vmem:[%s10921_s26 + $0x5a0] ss:$16 sps:$4 sm:$0xff]  }
 0x31b   : > { %5693 = vmatpush1.bf16.msra.mxu0 %v9791_v43  ;;  %6021 = vmatpush1.bf16.msra.mxu1 %v9794_v44  ;;  %v9886_v43 = vld [vmem:[%s10921_s26 + $0x5a8] ss:$16 sps:$4 sm:$0xff]   ;;  %v9891_v44 = vld [vmem:[%s10921_s26 + $0x5c4] ss:$16 sps:$4 sm:$0xff]  }
 0x31c   : > { %5694 = vmatprep.subr.bf16.mxu0 %v9799_v45  ;;  %6022 = vmatprep.subr.bf16.mxu1 %v9802_v51  ;;  %v9894_v45 = vld [vmem:[%s10921_s26 + $0x5cc] ss:$16 sps:$4 sm:$0xff]   ;;  %v9889_v51 = vld [vmem:[%s10921_s26 + $0x5c0] ss:$16 sps:$4 sm:$0xff]  }
 0x31f   : > { %5695 = vmatpush1.bf16.msra.mxu0 %v9797_v52  ;;  %6023 = vmatpush1.bf16.msra.mxu1 %v9800_v54  ;;  %v9892_v52 = vld [vmem:[%s10921_s26 + $0x5c8] ss:$16 sps:$4 sm:$0xff]   ;;  %v9897_v54 = vld [vmem:[%s10921_s26 + $0x5e4] ss:$16 sps:$4 sm:$0xff]  }
 0x320   : > { %5705 = vmatprep.subr.bf16.mxu0 %v9807_v55  ;;  %6033 = vmatprep.subr.bf16.mxu1 %v9810_v56  ;;  %v9900_v55 = vld [vmem:[%s10921_s26 + $0x5ec] ss:$16 sps:$4 sm:$0xff]   ;;  %v9895_v56 = vld [vmem:[%s10921_s26 + $0x5e0] ss:$16 sps:$4 sm:$0xff]  }
 0x322   : > { %5697 = vmatmul.mubr.bf16.vlgmr.msra.gmra.mrb[0].mxu0 %v8640_v58  ;;  %6025 = vmatmul.mubr.bf16.vlgmr.msra.gmra.mrb[0].mxu1 %v8640_v58  ;;  %v9898_v58 = vld [vmem:[%s10921_s26 + $0x5e8] ss:$16 sps:$4 sm:$0xff]  }
 0x323   : > { %5706 = vmatpush1.bf16.msra.mxu0 %v9805_v59  ;;  %6034 = vmatpush1.bf16.msra.mxu1 %v9808_v60  ;;  %v9905_v59 = vld [vmem:[%s10921_s26 + $0x604] ss:$16 sps:$4 sm:$0xff]   ;;  %v9908_v60 = vld [vmem:[%s10921_s26 + $0x60c] ss:$16 sps:$4 sm:$0xff]  }
 0x324   : > { %5707 = vmatprep.subr.bf16.mxu0 %v9813_v61  ;;  %6035 = vmatprep.subr.bf16.mxu1 %v9816_v63  ;;  %v9903_v61 = vld [vmem:[%s10921_s26 + $0x600] ss:$16 sps:$4 sm:$0xff]   ;;  %v8642_v63 = vcombine.low %v11133_v62, %v11133_v62 }
 0x325   : > { %5737 = vmatprep.mubr.bf16.mxu0 %v8643_v0  ;;  %6065 = vmatprep.mubr.bf16.mxu1 %v8643_v0  ;;  %v9906_v0 = vld [vmem:[%s10921_s26 + $0x608] ss:$16 sps:$4 sm:$0xff]   ;;  %v9909_v62 = vld [vmem:[%s10921_s26 + $0x620] ss:$16 sps:$4 sm:$0xff]  }
 0x327   : > { %5708 = vmatpush1.bf16.msra.mxu0 %v9811_v1  ;;  %6036 = vmatpush1.bf16.msra.mxu1 %v9814_v2  ;;  %v11202_v1 = vld [vmem:[#allocation2 + $0x18] sm:$0xff]  ;;  %v9911_v2 = vld [vmem:[%s10921_s26 + $0x624] ss:$16 sps:$4 sm:$0xff]  }
 0x328   : > { %5709 = vmatprep.subr.bf16.mxu0 %v9819_v3  ;;  %6037 = vmatprep.subr.bf16.mxu1 %v9822_v4  ;;  %v9914_v3 = vld [vmem:[%s10921_s26 + $0x62c] ss:$16 sps:$4 sm:$0xff]   ;;  %v8645_v4 = vcombine.high %v11202_v1, %v11202_v1 }
 0x32b   : > { %5710 = vmatpush1.bf16.msra.mxu0 %v9817_v5  ;;  %6038 = vmatpush1.bf16.msra.mxu1 %v9820_v6  ;;  %v9912_v5 = vld [vmem:[%s10921_s26 + $0x628] ss:$16 sps:$4 sm:$0xff]   ;;  %v9917_v6 = vld [vmem:[%s10921_s26 + $0x644] ss:$16 sps:$4 sm:$0xff]  }
 0x32c   : > { %5711 = vmatprep.subr.bf16.mxu0 %v9825_v7  ;;  %6039 = vmatprep.subr.bf16.mxu1 %v9828_v8  ;;  %v9920_v7 = vld [vmem:[%s10921_s26 + $0x64c] ss:$16 sps:$4 sm:$0xff]   ;;  %v9915_v8 = vld [vmem:[%s10921_s26 + $0x640] ss:$16 sps:$4 sm:$0xff]  }
 0x32f   : > { %5712 = vmatpush1.bf16.msra.mxu0 %v9823_v9  ;;  %6040 = vmatpush1.bf16.msra.mxu1 %v9826_v10  ;;  %v9918_v9 = vld [vmem:[%s10921_s26 + $0x648] ss:$16 sps:$4 sm:$0xff]   ;;  %v9923_v10 = vld [vmem:[%s10921_s26 + $0x664] ss:$16 sps:$4 sm:$0xff]  }
 0x330   : > { %5713 = vmatprep.subr.bf16.mxu0 %v9831_v11  ;;  %6041 = vmatprep.subr.bf16.mxu1 %v9834_v13  ;;  %v9926_v11 = vld [vmem:[%s10921_s26 + $0x66c] ss:$16 sps:$4 sm:$0xff]   ;;  %v9921_v13 = vld [vmem:[%s10921_s26 + $0x660] ss:$16 sps:$4 sm:$0xff]  }
 0x333   : > { %5714 = vmatpush1.bf16.msra.mxu0 %v9829_v14  ;;  %6042 = vmatpush1.bf16.msra.mxu1 %v9832_v15  ;;  %v9924_v14 = vld [vmem:[%s10921_s26 + $0x668] ss:$16 sps:$4 sm:$0xff]   ;;  %v9929_v15 = vld [vmem:[%s10921_s26 + $0x684] ss:$16 sps:$4 sm:$0xff]  }
 0x334   : > { %5715 = vmatprep.subr.bf16.mxu0 %v9837_v18  ;;  %6043 = vmatprep.subr.bf16.mxu1 %v9840_v22  ;;  %v9932_v18 = vld [vmem:[%s10921_s26 + $0x68c] ss:$16 sps:$4 sm:$0xff]   ;;  %v9927_v22 = vld [vmem:[%s10921_s26 + $0x680] ss:$16 sps:$4 sm:$0xff]  }
 0x337   : > { %5716 = vmatpush1.bf16.msra.mxu0 %v9835_v53  ;;  %6044 = vmatpush1.bf16.msra.mxu1 %v9838_v12  ;;  %v9930_v53 = vld [vmem:[%s10921_s26 + $0x688] ss:$16 sps:$4 sm:$0xff]   ;;  %v9935_v12 = vld [vmem:[%s10921_s26 + $0x6a4] ss:$16 sps:$4 sm:$0xff]  }
 0x338   : > { %5717 = vmatprep.subr.bf16.mxu0 %v9843_v23  ;;  %6045 = vmatprep.subr.bf16.mxu1 %v9846_v24  ;;  %v9938_v23 = vld [vmem:[%s10921_s26 + $0x6ac] ss:$16 sps:$4 sm:$0xff]   ;;  %v9933_v24 = vld [vmem:[%s10921_s26 + $0x6a0] ss:$16 sps:$4 sm:$0xff]  }
 0x33b   : > { %5718 = vmatpush1.bf16.msra.mxu0 %v9841_v17  ;;  %6046 = vmatpush1.bf16.msra.mxu1 %v9844_v25  ;;  %v9936_v17 = vld [vmem:[%s10921_s26 + $0x6a8] ss:$16 sps:$4 sm:$0xff]   ;;  %v9941_v25 = vld [vmem:[%s10921_s26 + $0x6c4] ss:$16 sps:$4 sm:$0xff]  }
 0x33c   : > { %5719 = vmatprep.subr.bf16.mxu0 %v9849_v26  ;;  %6047 = vmatprep.subr.bf16.mxu1 %v9852_v19  ;;  %v9944_v26 = vld [vmem:[%s10921_s26 + $0x6cc] ss:$16 sps:$4 sm:$0xff]   ;;  %v9939_v19 = vld [vmem:[%s10921_s26 + $0x6c0] ss:$16 sps:$4 sm:$0xff]  }
 0x33f   : > { %5720 = vmatpush1.bf16.msra.mxu0 %v9847_v27  ;;  %6048 = vmatpush1.bf16.msra.mxu1 %v9850_v28  ;;  %v9942_v27 = vld [vmem:[%s10921_s26 + $0x6c8] ss:$16 sps:$4 sm:$0xff]   ;;  %v9947_v28 = vld [vmem:[%s10921_s26 + $0x6e4] ss:$16 sps:$4 sm:$0xff]  }
 0x340   : > { %5721 = vmatprep.subr.bf16.mxu0 %v9855_v20  ;;  %6049 = vmatprep.subr.bf16.mxu1 %v9858_v29  ;;  %v9950_v20 = vld [vmem:[%s10921_s26 + $0x6ec] ss:$16 sps:$4 sm:$0xff]   ;;  %v9945_v29 = vld [vmem:[%s10921_s26 + $0x6e0] ss:$16 sps:$4 sm:$0xff]  }
 0x343   : > { %5722 = vmatpush1.bf16.msra.mxu0 %v9853_v16  ;;  %6050 = vmatpush1.bf16.msra.mxu1 %v9856_v21  ;;  %v9948_v16 = vld [vmem:[%s10921_s26 + $0x6e8] ss:$16 sps:$4 sm:$0xff]   ;;  %v9953_v21 = vld [vmem:[%s10921_s26 + $0x704] ss:$16 sps:$4 sm:$0xff]  }
 0x344   : > { %5723 = vmatprep.subr.bf16.mxu0 %v9861_v30  ;;  %6051 = vmatprep.subr.bf16.mxu1 %v9864_v31  ;;  %v9956_v30 = vld [vmem:[%s10921_s26 + $0x70c] ss:$16 sps:$4 sm:$0xff]   ;;  %v9951_v31 = vld [vmem:[%s10921_s26 + $0x700] ss:$16 sps:$4 sm:$0xff]  }
 0x347   : > { %5724 = vmatpush1.bf16.msra.mxu0 %v9859_v32  ;;  %6052 = vmatpush1.bf16.msra.mxu1 %v9862_v33  ;;  %v9954_v32 = vld [vmem:[%s10921_s26 + $0x708] ss:$16 sps:$4 sm:$0xff]   ;;  %v9959_v33 = vld [vmem:[%s10921_s26 + $0x724] ss:$16 sps:$4 sm:$0xff]  }
 0x348   : > { %5725 = vmatprep.subr.bf16.mxu0 %v9867_v34  ;;  %6053 = vmatprep.subr.bf16.mxu1 %v9870_v35  ;;  %v9962_v34 = vld [vmem:[%s10921_s26 + $0x72c] ss:$16 sps:$4 sm:$0xff]   ;;  %v9957_v35 = vld [vmem:[%s10921_s26 + $0x720] ss:$16 sps:$4 sm:$0xff]  }
 0x34b   : > { %5726 = vmatpush1.bf16.msra.mxu0 %v9865_v36  ;;  %6054 = vmatpush1.bf16.msra.mxu1 %v9868_v37  ;;  %v9960_v36 = vld [vmem:[%s10921_s26 + $0x728] ss:$16 sps:$4 sm:$0xff]   ;;  %v9965_v37 = vld [vmem:[%s10921_s26 + $0x744] ss:$16 sps:$4 sm:$0xff]  }
 0x34c   : > { %5727 = vmatprep.subr.bf16.mxu0 %v9873_v38  ;;  %6055 = vmatprep.subr.bf16.mxu1 %v9876_v39  ;;  %v9968_v38 = vld [vmem:[%s10921_s26 + $0x74c] ss:$16 sps:$4 sm:$0xff]   ;;  %v9963_v39 = vld [vmem:[%s10921_s26 + $0x740] ss:$16 sps:$4 sm:$0xff]  }
 0x34f   : > { %5728 = vmatpush1.bf16.msra.mxu0 %v9871_v40  ;;  %6056 = vmatpush1.bf16.msra.mxu1 %v9874_v41  ;;  %v9966_v40 = vld [vmem:[%s10921_s26 + $0x748] ss:$16 sps:$4 sm:$0xff]   ;;  %v9971_v41 = vld [vmem:[%s10921_s26 + $0x764] ss:$16 sps:$4 sm:$0xff]  }
 0x350   : > { %5729 = vmatprep.subr.bf16.mxu0 %v9879_v46  ;;  %6057 = vmatprep.subr.bf16.mxu1 %v9882_v47  ;;  %v9974_v46 = vld [vmem:[%s10921_s26 + $0x76c] ss:$16 sps:$4 sm:$0xff]   ;;  %v9969_v47 = vld [vmem:[%s10921_s26 + $0x760] ss:$16 sps:$4 sm:$0xff]  }
 0x353   : > { %5730 = vmatpush1.bf16.msra.mxu0 %v9877_v48  ;;  %6058 = vmatpush1.bf16.msra.mxu1 %v9880_v57  ;;  %v9972_v48 = vld [vmem:[%s10921_s26 + $0x768] ss:$16 sps:$4 sm:$0xff]   ;;  %v9977_v57 = vld [vmem:[%s10921_s26 + $0x784] ss:$16 sps:$4 sm:$0xff]  }
 0x354   : > { %5731 = vmatprep.subr.bf16.mxu0 %v9885_v49  ;;  %6059 = vmatprep.subr.bf16.mxu1 %v9888_v50  ;;  %v9980_v49 = vld [vmem:[%s10921_s26 + $0x78c] ss:$16 sps:$4 sm:$0xff]   ;;  %v9975_v50 = vld [vmem:[%s10921_s26 + $0x780] ss:$16 sps:$4 sm:$0xff]  }
 0x357   : > { %5732 = vmatpush1.bf16.msra.mxu0 %v9883_v42  ;;  %6060 = vmatpush1.bf16.msra.mxu1 %v9886_v43  ;;  %v9978_v42 = vld [vmem:[%s10921_s26 + $0x788] ss:$16 sps:$4 sm:$0xff]   ;;  %v9983_v43 = vld [vmem:[%s10921_s26 + $0x7a4] ss:$16 sps:$4 sm:$0xff]  }
 0x358   : > { %5733 = vmatprep.subr.bf16.mxu0 %v9891_v44  ;;  %6061 = vmatprep.subr.bf16.mxu1 %v9894_v45  ;;  %v9986_v44 = vld [vmem:[%s10921_s26 + $0x7ac] ss:$16 sps:$4 sm:$0xff]   ;;  %v9981_v45 = vld [vmem:[%s10921_s26 + $0x7a0] ss:$16 sps:$4 sm:$0xff]  }
 0x35b   : > { %5734 = vmatpush1.bf16.msra.mxu0 %v9889_v51  ;;  %6062 = vmatpush1.bf16.msra.mxu1 %v9892_v52  ;;  %v9984_v51 = vld [vmem:[%s10921_s26 + $0x7a8] ss:$16 sps:$4 sm:$0xff]   ;;  %v9989_v52 = vld [vmem:[%s10921_s26 + $0x7c4] ss:$16 sps:$4 sm:$0xff]  }
 0x35c   : > { %5735 = vmatprep.subr.bf16.mxu0 %v9897_v54  ;;  %6063 = vmatprep.subr.bf16.mxu1 %v9900_v55  ;;  %v9992_v54 = vld [vmem:[%s10921_s26 + $0x7cc] ss:$16 sps:$4 sm:$0xff]   ;;  %v9987_v55 = vld [vmem:[%s10921_s26 + $0x7c0] ss:$16 sps:$4 sm:$0xff]  }
 0x35f   : > { %5736 = vmatpush1.bf16.msra.mxu0 %v9895_v56  ;;  %6064 = vmatpush1.bf16.msra.mxu1 %v9898_v58  ;;  %v9990_v56 = vld [vmem:[%s10921_s26 + $0x7c8] ss:$16 sps:$4 sm:$0xff]   ;;  %v9995_v58 = vld [vmem:[%s10921_s26 + $0x7e4] ss:$16 sps:$4 sm:$0xff]  }
 0x360   : > { %5746 = vmatprep.subr.bf16.mxu0 %v9905_v59  ;;  %6074 = vmatprep.subr.bf16.mxu1 %v9908_v60  ;;  %v9998_v59 = vld [vmem:[%s10921_s26 + $0x7ec] ss:$16 sps:$4 sm:$0xff]   ;;  %v9993_v60 = vld [vmem:[%s10921_s26 + $0x7e0] ss:$16 sps:$4 sm:$0xff]  }
 0x362   : > { %5738 = vmatmul.mubr.bf16.vlgmr.msra.gmra.mrb[0].mxu0 %v8642_v63  ;;  %6066 = vmatmul.mubr.bf16.vlgmr.msra.gmra.mrb[0].mxu1 %v8642_v63  ;;  %v10003_v63 = vld [vmem:[%s10921_s26 + $0x804] ss:$16 sps:$4 sm:$0xff]  }
 0x363   : > { %5747 = vmatpush1.bf16.msra.mxu0 %v9903_v61  ;;  %6075 = vmatpush1.bf16.msra.mxu1 %v9906_v0  ;;  %v9996_v61 = vld [vmem:[%s10921_s26 + $0x7e8] ss:$16 sps:$4 sm:$0xff]   ;;  %v10006_v0 = vld [vmem:[%s10921_s26 + $0x80c] ss:$16 sps:$4 sm:$0xff]  }
 0x364   : > { %5748 = vmatprep.subr.bf16.mxu0 %v9911_v2  ;;  %6076 = vmatprep.subr.bf16.mxu1 %v9914_v3  ;;  %v10001_v2 = vld [vmem:[%s10921_s26 + $0x800] ss:$16 sps:$4 sm:$0xff]   ;;  %v8644_v3 = vcombine.low %v11202_v1, %v11202_v1 }
 0x365   : > { %5778 = vmatprep.mubr.bf16.mxu0 %v8645_v4  ;;  %6106 = vmatprep.mubr.bf16.mxu1 %v8645_v4  ;;  %v11271_v4 = vld [vmem:[#allocation2 + $0x20] sm:$0xff] }
 0x366   : > { %v10007_v1 = vld [vmem:[%s10921_s26 + $0x820] ss:$16 sps:$4 sm:$0xff]  }
 0x367   : > { %5749 = vmatpush1.bf16.msra.mxu0 %v9909_v62  ;;  %6077 = vmatpush1.bf16.msra.mxu1 %v9912_v5  ;;  %v10004_v62 = vld [vmem:[%s10921_s26 + $0x808] ss:$16 sps:$4 sm:$0xff]   ;;  %v10009_v5 = vld [vmem:[%s10921_s26 + $0x824] ss:$16 sps:$4 sm:$0xff]  }
 0x368   : > { %5750 = vmatprep.subr.bf16.mxu0 %v9917_v6  ;;  %6078 = vmatprep.subr.bf16.mxu1 %v9920_v7  ;;  %v10012_v6 = vld [vmem:[%s10921_s26 + $0x82c] ss:$16 sps:$4 sm:$0xff]   ;;  %v8647_v7 = vcombine.high %v11271_v4, %v11271_v4 }
 0x36b   : > { %5751 = vmatpush1.bf16.msra.mxu0 %v9915_v8  ;;  %6079 = vmatpush1.bf16.msra.mxu1 %v9918_v9  ;;  %v10010_v8 = vld [vmem:[%s10921_s26 + $0x828] ss:$16 sps:$4 sm:$0xff]   ;;  %v10015_v9 = vld [vmem:[%s10921_s26 + $0x844] ss:$16 sps:$4 sm:$0xff]  }
 0x36c   : > { %5752 = vmatprep.subr.bf16.mxu0 %v9923_v10  ;;  %6080 = vmatprep.subr.bf16.mxu1 %v9926_v11  ;;  %v10018_v10 = vld [vmem:[%s10921_s26 + $0x84c] ss:$16 sps:$4 sm:$0xff]   ;;  %v10013_v11 = vld [vmem:[%s10921_s26 + $0x840] ss:$16 sps:$4 sm:$0xff]  }
 0x36f   : > { %5753 = vmatpush1.bf16.msra.mxu0 %v9921_v13  ;;  %6081 = vmatpush1.bf16.msra.mxu1 %v9924_v14  ;;  %v10016_v13 = vld [vmem:[%s10921_s26 + $0x848] ss:$16 sps:$4 sm:$0xff]   ;;  %v10021_v14 = vld [vmem:[%s10921_s26 + $0x864] ss:$16 sps:$4 sm:$0xff]  }
 0x370   : > { %5754 = vmatprep.subr.bf16.mxu0 %v9929_v15  ;;  %6082 = vmatprep.subr.bf16.mxu1 %v9932_v18  ;;  %v10024_v15 = vld [vmem:[%s10921_s26 + $0x86c] ss:$16 sps:$4 sm:$0xff]   ;;  %v10019_v18 = vld [vmem:[%s10921_s26 + $0x860] ss:$16 sps:$4 sm:$0xff]  }
 0x373   : > { %5755 = vmatpush1.bf16.msra.mxu0 %v9927_v22  ;;  %6083 = vmatpush1.bf16.msra.mxu1 %v9930_v53  ;;  %v10022_v22 = vld [vmem:[%s10921_s26 + $0x868] ss:$16 sps:$4 sm:$0xff]   ;;  %v10027_v53 = vld [vmem:[%s10921_s26 + $0x884] ss:$16 sps:$4 sm:$0xff]  }
 0x374   : > { %5756 = vmatprep.subr.bf16.mxu0 %v9935_v12  ;;  %6084 = vmatprep.subr.bf16.mxu1 %v9938_v23  ;;  %v10030_v12 = vld [vmem:[%s10921_s26 + $0x88c] ss:$16 sps:$4 sm:$0xff]   ;;  %v10025_v23 = vld [vmem:[%s10921_s26 + $0x880] ss:$16 sps:$4 sm:$0xff]  }
 0x377   : > { %5757 = vmatpush1.bf16.msra.mxu0 %v9933_v24  ;;  %6085 = vmatpush1.bf16.msra.mxu1 %v9936_v17  ;;  %v10028_v24 = vld [vmem:[%s10921_s26 + $0x888] ss:$16 sps:$4 sm:$0xff]   ;;  %v10033_v17 = vld [vmem:[%s10921_s26 + $0x8a4] ss:$16 sps:$4 sm:$0xff]  }
 0x378   : > { %5758 = vmatprep.subr.bf16.mxu0 %v9941_v25  ;;  %6086 = vmatprep.subr.bf16.mxu1 %v9944_v26  ;;  %v10036_v25 = vld [vmem:[%s10921_s26 + $0x8ac] ss:$16 sps:$4 sm:$0xff]   ;;  %v10031_v26 = vld [vmem:[%s10921_s26 + $0x8a0] ss:$16 sps:$4 sm:$0xff]  }
 0x37b   : > { %5759 = vmatpush1.bf16.msra.mxu0 %v9939_v19  ;;  %6087 = vmatpush1.bf16.msra.mxu1 %v9942_v27  ;;  %v10034_v19 = vld [vmem:[%s10921_s26 + $0x8a8] ss:$16 sps:$4 sm:$0xff]   ;;  %v10039_v27 = vld [vmem:[%s10921_s26 + $0x8c4] ss:$16 sps:$4 sm:$0xff]  }
 0x37c   : > { %5760 = vmatprep.subr.bf16.mxu0 %v9947_v28  ;;  %6088 = vmatprep.subr.bf16.mxu1 %v9950_v20  ;;  %v10042_v28 = vld [vmem:[%s10921_s26 + $0x8cc] ss:$16 sps:$4 sm:$0xff]   ;;  %v10037_v20 = vld [vmem:[%s10921_s26 + $0x8c0] ss:$16 sps:$4 sm:$0xff]  }
 0x37f   : > { %5761 = vmatpush1.bf16.msra.mxu0 %v9945_v29  ;;  %6089 = vmatpush1.bf16.msra.mxu1 %v9948_v16  ;;  %v10040_v29 = vld [vmem:[%s10921_s26 + $0x8c8] ss:$16 sps:$4 sm:$0xff]   ;;  %v10045_v16 = vld [vmem:[%s10921_s26 + $0x8e4] ss:$16 sps:$4 sm:$0xff]  }
 0x380   : > { %5762 = vmatprep.subr.bf16.mxu0 %v9953_v21  ;;  %6090 = vmatprep.subr.bf16.mxu1 %v9956_v30  ;;  %v10048_v21 = vld [vmem:[%s10921_s26 + $0x8ec] ss:$16 sps:$4 sm:$0xff]   ;;  %v10043_v30 = vld [vmem:[%s10921_s26 + $0x8e0] ss:$16 sps:$4 sm:$0xff]  }
 0x383   : > { %5763 = vmatpush1.bf16.msra.mxu0 %v9951_v31  ;;  %6091 = vmatpush1.bf16.msra.mxu1 %v9954_v32  ;;  %v10046_v31 = vld [vmem:[%s10921_s26 + $0x8e8] ss:$16 sps:$4 sm:$0xff]   ;;  %v10051_v32 = vld [vmem:[%s10921_s26 + $0x904] ss:$16 sps:$4 sm:$0xff]  }
 0x384   : > { %5764 = vmatprep.subr.bf16.mxu0 %v9959_v33  ;;  %6092 = vmatprep.subr.bf16.mxu1 %v9962_v34  ;;  %v10054_v33 = vld [vmem:[%s10921_s26 + $0x90c] ss:$16 sps:$4 sm:$0xff]   ;;  %v10049_v34 = vld [vmem:[%s10921_s26 + $0x900] ss:$16 sps:$4 sm:$0xff]  }
 0x387   : > { %5765 = vmatpush1.bf16.msra.mxu0 %v9957_v35  ;;  %6093 = vmatpush1.bf16.msra.mxu1 %v9960_v36  ;;  %v10052_v35 = vld [vmem:[%s10921_s26 + $0x908] ss:$16 sps:$4 sm:$0xff]   ;;  %v10057_v36 = vld [vmem:[%s10921_s26 + $0x924] ss:$16 sps:$4 sm:$0xff]  }
 0x388   : > { %5766 = vmatprep.subr.bf16.mxu0 %v9965_v37  ;;  %6094 = vmatprep.subr.bf16.mxu1 %v9968_v38  ;;  %v10060_v37 = vld [vmem:[%s10921_s26 + $0x92c] ss:$16 sps:$4 sm:$0xff]   ;;  %v10055_v38 = vld [vmem:[%s10921_s26 + $0x920] ss:$16 sps:$4 sm:$0xff]  }
 0x38b   : > { %5767 = vmatpush1.bf16.msra.mxu0 %v9963_v39  ;;  %6095 = vmatpush1.bf16.msra.mxu1 %v9966_v40  ;;  %v10058_v39 = vld [vmem:[%s10921_s26 + $0x928] ss:$16 sps:$4 sm:$0xff]   ;;  %v10063_v40 = vld [vmem:[%s10921_s26 + $0x944] ss:$16 sps:$4 sm:$0xff]  }
 0x38c   : > { %5768 = vmatprep.subr.bf16.mxu0 %v9971_v41  ;;  %6096 = vmatprep.subr.bf16.mxu1 %v9974_v46  ;;  %v10066_v41 = vld [vmem:[%s10921_s26 + $0x94c] ss:$16 sps:$4 sm:$0xff]   ;;  %v10061_v46 = vld [vmem:[%s10921_s26 + $0x940] ss:$16 sps:$4 sm:$0xff]  }
 0x38f   : > { %5769 = vmatpush1.bf16.msra.mxu0 %v9969_v47  ;;  %6097 = vmatpush1.bf16.msra.mxu1 %v9972_v48  ;;  %v10064_v47 = vld [vmem:[%s10921_s26 + $0x948] ss:$16 sps:$4 sm:$0xff]   ;;  %v10069_v48 = vld [vmem:[%s10921_s26 + $0x964] ss:$16 sps:$4 sm:$0xff]  }
 0x390   : > { %5770 = vmatprep.subr.bf16.mxu0 %v9977_v57  ;;  %6098 = vmatprep.subr.bf16.mxu1 %v9980_v49  ;;  %v10072_v57 = vld [vmem:[%s10921_s26 + $0x96c] ss:$16 sps:$4 sm:$0xff]   ;;  %v10067_v49 = vld [vmem:[%s10921_s26 + $0x960] ss:$16 sps:$4 sm:$0xff]  }
 0x393   : > { %5771 = vmatpush1.bf16.msra.mxu0 %v9975_v50  ;;  %6099 = vmatpush1.bf16.msra.mxu1 %v9978_v42  ;;  %v10070_v50 = vld [vmem:[%s10921_s26 + $0x968] ss:$16 sps:$4 sm:$0xff]   ;;  %v10075_v42 = vld [vmem:[%s10921_s26 + $0x984] ss:$16 sps:$4 sm:$0xff]  }
 0x394   : > { %5772 = vmatprep.subr.bf16.mxu0 %v9983_v43  ;;  %6100 = vmatprep.subr.bf16.mxu1 %v9986_v44  ;;  %v10078_v43 = vld [vmem:[%s10921_s26 + $0x98c] ss:$16 sps:$4 sm:$0xff]   ;;  %v10073_v44 = vld [vmem:[%s10921_s26 + $0x980] ss:$16 sps:$4 sm:$0xff]  }
 0x397   : > { %5773 = vmatpush1.bf16.msra.mxu0 %v9981_v45  ;;  %6101 = vmatpush1.bf16.msra.mxu1 %v9984_v51  ;;  %v10076_v45 = vld [vmem:[%s10921_s26 + $0x988] ss:$16 sps:$4 sm:$0xff]   ;;  %v10081_v51 = vld [vmem:[%s10921_s26 + $0x9a4] ss:$16 sps:$4 sm:$0xff]  }
 0x398   : > { %5774 = vmatprep.subr.bf16.mxu0 %v9989_v52  ;;  %6102 = vmatprep.subr.bf16.mxu1 %v9992_v54  ;;  %v10084_v52 = vld [vmem:[%s10921_s26 + $0x9ac] ss:$16 sps:$4 sm:$0xff]   ;;  %v10079_v54 = vld [vmem:[%s10921_s26 + $0x9a0] ss:$16 sps:$4 sm:$0xff]  }
 0x39b   : > { %5775 = vmatpush1.bf16.msra.mxu0 %v9987_v55  ;;  %6103 = vmatpush1.bf16.msra.mxu1 %v9990_v56  ;;  %v10082_v55 = vld [vmem:[%s10921_s26 + $0x9a8] ss:$16 sps:$4 sm:$0xff]   ;;  %v10087_v56 = vld [vmem:[%s10921_s26 + $0x9c4] ss:$16 sps:$4 sm:$0xff]  }
 0x39c   : > { %5776 = vmatprep.subr.bf16.mxu0 %v9995_v58  ;;  %6104 = vmatprep.subr.bf16.mxu1 %v9998_v59  ;;  %v10090_v58 = vld [vmem:[%s10921_s26 + $0x9cc] ss:$16 sps:$4 sm:$0xff]   ;;  %v10085_v59 = vld [vmem:[%s10921_s26 + $0x9c0] ss:$16 sps:$4 sm:$0xff]  }
 0x39f   : > { %5777 = vmatpush1.bf16.msra.mxu0 %v9993_v60  ;;  %6105 = vmatpush1.bf16.msra.mxu1 %v9996_v61  ;;  %v10088_v60 = vld [vmem:[%s10921_s26 + $0x9c8] ss:$16 sps:$4 sm:$0xff]   ;;  %v10093_v61 = vld [vmem:[%s10921_s26 + $0x9e4] ss:$16 sps:$4 sm:$0xff]  }
 0x3a0   : > { %5787 = vmatprep.subr.bf16.mxu0 %v10003_v63  ;;  %6115 = vmatprep.subr.bf16.mxu1 %v10006_v0  ;;  %v10096_v63 = vld [vmem:[%s10921_s26 + $0x9ec] ss:$16 sps:$4 sm:$0xff]   ;;  %v10091_v0 = vld [vmem:[%s10921_s26 + $0x9e0] ss:$16 sps:$4 sm:$0xff]  }
 0x3a2   : > { %5779 = vmatmul.mubr.bf16.vlgmr.msra.gmra.mrb[0].mxu0 %v8644_v3  ;;  %6107 = vmatmul.mubr.bf16.vlgmr.msra.gmra.mrb[0].mxu1 %v8644_v3  ;;  %v10101_v3 = vld [vmem:[%s10921_s26 + $0xa04] ss:$16 sps:$4 sm:$0xff]  }
 0x3a3   : > { %5788 = vmatpush1.bf16.msra.mxu0 %v10001_v2  ;;  %6116 = vmatpush1.bf16.msra.mxu1 %v10004_v62  ;;  %v10094_v2 = vld [vmem:[%s10921_s26 + $0x9e8] ss:$16 sps:$4 sm:$0xff]   ;;  %v10104_v62 = vld [vmem:[%s10921_s26 + $0xa0c] ss:$16 sps:$4 sm:$0xff]  }
 0x3a4   : > { %5789 = vmatprep.subr.bf16.mxu0 %v10009_v5  ;;  %6117 = vmatprep.subr.bf16.mxu1 %v10012_v6  ;;  %v11338_v5 = vld [vmem:[#allocation2 + $0x28] sm:$0xff]  ;;  %v8646_v6 = vcombine.low %v11271_v4, %v11271_v4  ;;  %v10105_v4 = vld [vmem:[%s10921_s26 + $0xa20] ss:$16 sps:$4 sm:$0xff]  }
 0x3a5   : > { %5819 = vmatprep.mubr.bf16.mxu0 %v8647_v7  ;;  %6147 = vmatprep.mubr.bf16.mxu1 %v8647_v7  ;;  %v10099_v7 = vld [vmem:[%s10921_s26 + $0xa00] ss:$16 sps:$4 sm:$0xff]  }
 0x3a7   : > { %5790 = vmatpush1.bf16.msra.mxu0 %v10007_v1  ;;  %6118 = vmatpush1.bf16.msra.mxu1 %v10010_v8  ;;  %v10102_v1 = vld [vmem:[%s10921_s26 + $0xa08] ss:$16 sps:$4 sm:$0xff]   ;;  %v10107_v8 = vld [vmem:[%s10921_s26 + $0xa24] ss:$16 sps:$4 sm:$0xff]  }
 0x3a8   : > { %5791 = vmatprep.subr.bf16.mxu0 %v10015_v9  ;;  %6119 = vmatprep.subr.bf16.mxu1 %v10018_v10  ;;  %v10110_v9 = vld [vmem:[%s10921_s26 + $0xa2c] ss:$16 sps:$4 sm:$0xff]   ;;  %v8649_v10 = vcombine.high %v11338_v5, %v11338_v5 }
 0x3ab   : > { %5792 = vmatpush1.bf16.msra.mxu0 %v10013_v11  ;;  %6120 = vmatpush1.bf16.msra.mxu1 %v10016_v13  ;;  %v10108_v11 = vld [vmem:[%s10921_s26 + $0xa28] ss:$16 sps:$4 sm:$0xff]   ;;  %v10113_v13 = vld [vmem:[%s10921_s26 + $0xa44] ss:$16 sps:$4 sm:$0xff]  }
 0x3ac   : > { %5793 = vmatprep.subr.bf16.mxu0 %v10021_v14  ;;  %6121 = vmatprep.subr.bf16.mxu1 %v10024_v15  ;;  %v10116_v14 = vld [vmem:[%s10921_s26 + $0xa4c] ss:$16 sps:$4 sm:$0xff]   ;;  %v10111_v15 = vld [vmem:[%s10921_s26 + $0xa40] ss:$16 sps:$4 sm:$0xff]  }
 0x3af   : > { %5794 = vmatpush1.bf16.msra.mxu0 %v10019_v18  ;;  %6122 = vmatpush1.bf16.msra.mxu1 %v10022_v22  ;;  %v10114_v18 = vld [vmem:[%s10921_s26 + $0xa48] ss:$16 sps:$4 sm:$0xff]   ;;  %v10119_v22 = vld [vmem:[%s10921_s26 + $0xa64] ss:$16 sps:$4 sm:$0xff]  }
 0x3b0   : > { %5795 = vmatprep.subr.bf16.mxu0 %v10027_v53  ;;  %6123 = vmatprep.subr.bf16.mxu1 %v10030_v12  ;;  %v10122_v53 = vld [vmem:[%s10921_s26 + $0xa6c] ss:$16 sps:$4 sm:$0xff]   ;;  %v10117_v12 = vld [vmem:[%s10921_s26 + $0xa60] ss:$16 sps:$4 sm:$0xff]  }
 0x3b3   : > { %5796 = vmatpush1.bf16.msra.mxu0 %v10025_v23  ;;  %6124 = vmatpush1.bf16.msra.mxu1 %v10028_v24  ;;  %v10120_v23 = vld [vmem:[%s10921_s26 + $0xa68] ss:$16 sps:$4 sm:$0xff]   ;;  %v10125_v24 = vld [vmem:[%s10921_s26 + $0xa84] ss:$16 sps:$4 sm:$0xff]  }
 0x3b4   : > { %5797 = vmatprep.subr.bf16.mxu0 %v10033_v17  ;;  %6125 = vmatprep.subr.bf16.mxu1 %v10036_v25  ;;  %v10128_v17 = vld [vmem:[%s10921_s26 + $0xa8c] ss:$16 sps:$4 sm:$0xff]   ;;  %v10123_v25 = vld [vmem:[%s10921_s26 + $0xa80] ss:$16 sps:$4 sm:$0xff]  }
 0x3b7   : > { %5798 = vmatpush1.bf16.msra.mxu0 %v10031_v26  ;;  %6126 = vmatpush1.bf16.msra.mxu1 %v10034_v19  ;;  %v10126_v26 = vld [vmem:[%s10921_s26 + $0xa88] ss:$16 sps:$4 sm:$0xff]   ;;  %v10131_v19 = vld [vmem:[%s10921_s26 + $0xaa4] ss:$16 sps:$4 sm:$0xff]  }
 0x3b8   : > { %5799 = vmatprep.subr.bf16.mxu0 %v10039_v27  ;;  %6127 = vmatprep.subr.bf16.mxu1 %v10042_v28  ;;  %v10134_v27 = vld [vmem:[%s10921_s26 + $0xaac] ss:$16 sps:$4 sm:$0xff]   ;;  %v10129_v28 = vld [vmem:[%s10921_s26 + $0xaa0] ss:$16 sps:$4 sm:$0xff]  }
 0x3bb   : > { %5800 = vmatpush1.bf16.msra.mxu0 %v10037_v20  ;;  %6128 = vmatpush1.bf16.msra.mxu1 %v10040_v29  ;;  %v10132_v20 = vld [vmem:[%s10921_s26 + $0xaa8] ss:$16 sps:$4 sm:$0xff]   ;;  %v10137_v29 = vld [vmem:[%s10921_s26 + $0xac4] ss:$16 sps:$4 sm:$0xff]  }
 0x3bc   : > { %5801 = vmatprep.subr.bf16.mxu0 %v10045_v16  ;;  %6129 = vmatprep.subr.bf16.mxu1 %v10048_v21  ;;  %v10140_v16 = vld [vmem:[%s10921_s26 + $0xacc] ss:$16 sps:$4 sm:$0xff]   ;;  %v10135_v21 = vld [vmem:[%s10921_s26 + $0xac0] ss:$16 sps:$4 sm:$0xff]  }
 0x3bf   : > { %5802 = vmatpush1.bf16.msra.mxu0 %v10043_v30  ;;  %6130 = vmatpush1.bf16.msra.mxu1 %v10046_v31  ;;  %v10138_v30 = vld [vmem:[%s10921_s26 + $0xac8] ss:$16 sps:$4 sm:$0xff]   ;;  %v10143_v31 = vld [vmem:[%s10921_s26 + $0xae4] ss:$16 sps:$4 sm:$0xff]  }
 0x3c0   : > { %5803 = vmatprep.subr.bf16.mxu0 %v10051_v32  ;;  %6131 = vmatprep.subr.bf16.mxu1 %v10054_v33  ;;  %v10146_v32 = vld [vmem:[%s10921_s26 + $0xaec] ss:$16 sps:$4 sm:$0xff]   ;;  %v10141_v33 = vld [vmem:[%s10921_s26 + $0xae0] ss:$16 sps:$4 sm:$0xff]  }
 0x3c3   : > { %5804 = vmatpush1.bf16.msra.mxu0 %v10049_v34  ;;  %6132 = vmatpush1.bf16.msra.mxu1 %v10052_v35  ;;  %v10144_v34 = vld [vmem:[%s10921_s26 + $0xae8] ss:$16 sps:$4 sm:$0xff]   ;;  %v10149_v35 = vld [vmem:[%s10921_s26 + $0xb04] ss:$16 sps:$4 sm:$0xff]  }
 0x3c4   : > { %5805 = vmatprep.subr.bf16.mxu0 %v10057_v36  ;;  %6133 = vmatprep.subr.bf16.mxu1 %v10060_v37  ;;  %v10152_v36 = vld [vmem:[%s10921_s26 + $0xb0c] ss:$16 sps:$4 sm:$0xff]   ;;  %v10147_v37 = vld [vmem:[%s10921_s26 + $0xb00] ss:$16 sps:$4 sm:$0xff]  }
 0x3c7   : > { %5806 = vmatpush1.bf16.msra.mxu0 %v10055_v38  ;;  %6134 = vmatpush1.bf16.msra.mxu1 %v10058_v39  ;;  %v10150_v38 = vld [vmem:[%s10921_s26 + $0xb08] ss:$16 sps:$4 sm:$0xff]   ;;  %v10155_v39 = vld [vmem:[%s10921_s26 + $0xb24] ss:$16 sps:$4 sm:$0xff]  }
 0x3c8   : > { %5807 = vmatprep.subr.bf16.mxu0 %v10063_v40  ;;  %6135 = vmatprep.subr.bf16.mxu1 %v10066_v41  ;;  %v10158_v40 = vld [vmem:[%s10921_s26 + $0xb2c] ss:$16 sps:$4 sm:$0xff]   ;;  %v10153_v41 = vld [vmem:[%s10921_s26 + $0xb20] ss:$16 sps:$4 sm:$0xff]  }
 0x3cb   : > { %5808 = vmatpush1.bf16.msra.mxu0 %v10061_v46  ;;  %6136 = vmatpush1.bf16.msra.mxu1 %v10064_v47  ;;  %v10156_v46 = vld [vmem:[%s10921_s26 + $0xb28] ss:$16 sps:$4 sm:$0xff]   ;;  %v10161_v47 = vld [vmem:[%s10921_s26 + $0xb44] ss:$16 sps:$4 sm:$0xff]  }
 0x3cc   : > { %5809 = vmatprep.subr.bf16.mxu0 %v10069_v48  ;;  %6137 = vmatprep.subr.bf16.mxu1 %v10072_v57  ;;  %v10164_v48 = vld [vmem:[%s10921_s26 + $0xb4c] ss:$16 sps:$4 sm:$0xff]   ;;  %v10159_v57 = vld [vmem:[%s10921_s26 + $0xb40] ss:$16 sps:$4 sm:$0xff]  }
 0x3cf   : > { %5810 = vmatpush1.bf16.msra.mxu0 %v10067_v49  ;;  %6138 = vmatpush1.bf16.msra.mxu1 %v10070_v50  ;;  %v10162_v49 = vld [vmem:[%s10921_s26 + $0xb48] ss:$16 sps:$4 sm:$0xff]   ;;  %v10167_v50 = vld [vmem:[%s10921_s26 + $0xb64] ss:$16 sps:$4 sm:$0xff]  }
 0x3d0   : > { %5811 = vmatprep.subr.bf16.mxu0 %v10075_v42  ;;  %6139 = vmatprep.subr.bf16.mxu1 %v10078_v43  ;;  %v10170_v42 = vld [vmem:[%s10921_s26 + $0xb6c] ss:$16 sps:$4 sm:$0xff]   ;;  %v10165_v43 = vld [vmem:[%s10921_s26 + $0xb60] ss:$16 sps:$4 sm:$0xff]  }
 0x3d3   : > { %5812 = vmatpush1.bf16.msra.mxu0 %v10073_v44  ;;  %6140 = vmatpush1.bf16.msra.mxu1 %v10076_v45  ;;  %v10168_v44 = vld [vmem:[%s10921_s26 + $0xb68] ss:$16 sps:$4 sm:$0xff]   ;;  %v10173_v45 = vld [vmem:[%s10921_s26 + $0xb84] ss:$16 sps:$4 sm:$0xff]  }
 0x3d4   : > { %5813 = vmatprep.subr.bf16.mxu0 %v10081_v51  ;;  %6141 = vmatprep.subr.bf16.mxu1 %v10084_v52  ;;  %v10176_v51 = vld [vmem:[%s10921_s26 + $0xb8c] ss:$16 sps:$4 sm:$0xff]   ;;  %v10171_v52 = vld [vmem:[%s10921_s26 + $0xb80] ss:$16 sps:$4 sm:$0xff]  }
 0x3d7   : > { %5814 = vmatpush1.bf16.msra.mxu0 %v10079_v54  ;;  %6142 = vmatpush1.bf16.msra.mxu1 %v10082_v55  ;;  %v10174_v54 = vld [vmem:[%s10921_s26 + $0xb88] ss:$16 sps:$4 sm:$0xff]   ;;  %v10179_v55 = vld [vmem:[%s10921_s26 + $0xba4] ss:$16 sps:$4 sm:$0xff]  }
 0x3d8   : > { %5815 = vmatprep.subr.bf16.mxu0 %v10087_v56  ;;  %6143 = vmatprep.subr.bf16.mxu1 %v10090_v58  ;;  %v10182_v56 = vld [vmem:[%s10921_s26 + $0xbac] ss:$16 sps:$4 sm:$0xff]   ;;  %v10177_v58 = vld [vmem:[%s10921_s26 + $0xba0] ss:$16 sps:$4 sm:$0xff]  }
 0x3db   : > { %5816 = vmatpush1.bf16.msra.mxu0 %v10085_v59  ;;  %6144 = vmatpush1.bf16.msra.mxu1 %v10088_v60  ;;  %v10180_v59 = vld [vmem:[%s10921_s26 + $0xba8] ss:$16 sps:$4 sm:$0xff]   ;;  %v10185_v60 = vld [vmem:[%s10921_s26 + $0xbc4] ss:$16 sps:$4 sm:$0xff]  }
 0x3dc   : > { %5817 = vmatprep.subr.bf16.mxu0 %v10093_v61  ;;  %6145 = vmatprep.subr.bf16.mxu1 %v10096_v63  ;;  %v10188_v61 = vld [vmem:[%s10921_s26 + $0xbcc] ss:$16 sps:$4 sm:$0xff]   ;;  %v10183_v63 = vld [vmem:[%s10921_s26 + $0xbc0] ss:$16 sps:$4 sm:$0xff]  }
 0x3df   : > { %5818 = vmatpush1.bf16.msra.mxu0 %v10091_v0  ;;  %6146 = vmatpush1.bf16.msra.mxu1 %v10094_v2  ;;  %v10186_v0 = vld [vmem:[%s10921_s26 + $0xbc8] ss:$16 sps:$4 sm:$0xff]   ;;  %v10191_v2 = vld [vmem:[%s10921_s26 + $0xbe4] ss:$16 sps:$4 sm:$0xff]  }
 0x3e0   : > { %5828 = vmatprep.subr.bf16.mxu0 %v10101_v3  ;;  %6156 = vmatprep.subr.bf16.mxu1 %v10104_v62  ;;  %v10194_v3 = vld [vmem:[%s10921_s26 + $0xbec] ss:$16 sps:$4 sm:$0xff]   ;;  %v10189_v62 = vld [vmem:[%s10921_s26 + $0xbe0] ss:$16 sps:$4 sm:$0xff]  }
 0x3e2   : > { %5820 = vmatmul.mubr.bf16.vlgmr.msra.gmra.mrb[0].mxu0 %v8646_v6  ;;  %6148 = vmatmul.mubr.bf16.vlgmr.msra.gmra.mrb[0].mxu1 %v8646_v6  ;;  %v10192_v6 = vld [vmem:[%s10921_s26 + $0xbe8] ss:$16 sps:$4 sm:$0xff]  }
 0x3e3   : > { %5829 = vmatpush1.bf16.msra.mxu0 %v10099_v7  ;;  %6157 = vmatpush1.bf16.msra.mxu1 %v10102_v1  ;;  %v10199_v7 = vld [vmem:[%s10921_s26 + $0xc04] ss:$16 sps:$4 sm:$0xff]   ;;  %v10202_v1 = vld [vmem:[%s10921_s26 + $0xc0c] ss:$16 sps:$4 sm:$0xff]  }
 0x3e4   : > { %5830 = vmatprep.subr.bf16.mxu0 %v10107_v8  ;;  %6158 = vmatprep.subr.bf16.mxu1 %v10110_v9  ;;  %v8648_v8 = vcombine.low %v11338_v5, %v11338_v5  ;;  %v11410_v9 = vld [vmem:[#allocation2 + $0x30] sm:$0xff] }
 0x3e5   : > { %5860 = vmatprep.mubr.bf16.mxu0 %v8649_v10  ;;  %6188 = vmatprep.mubr.bf16.mxu1 %v8649_v10  ;;  %v10197_v10 = vld [vmem:[%s10921_s26 + $0xc00] ss:$16 sps:$4 sm:$0xff]  }
 0x3e6   : > { %v10203_v5 = vld [vmem:[%s10921_s26 + $0xc20] ss:$16 sps:$4 sm:$0xff]  }
 0x3e7   : > { %5831 = vmatpush1.bf16.msra.mxu0 %v10105_v4  ;;  %6159 = vmatpush1.bf16.msra.mxu1 %v10108_v11  ;;  %v10200_v4 = vld [vmem:[%s10921_s26 + $0xc08] ss:$16 sps:$4 sm:$0xff]   ;;  %v10205_v11 = vld [vmem:[%s10921_s26 + $0xc24] ss:$16 sps:$4 sm:$0xff]  }
 0x3e8   : > { %5832 = vmatprep.subr.bf16.mxu0 %v10113_v13  ;;  %6160 = vmatprep.subr.bf16.mxu1 %v10116_v14  ;;  %v10208_v13 = vld [vmem:[%s10921_s26 + $0xc2c] ss:$16 sps:$4 sm:$0xff]   ;;  %v8651_v14 = vcombine.high %v11410_v9, %v11410_v9 }
 0x3eb   : > { %5833 = vmatpush1.bf16.msra.mxu0 %v10111_v15  ;;  %6161 = vmatpush1.bf16.msra.mxu1 %v10114_v18  ;;  %v10206_v15 = vld [vmem:[%s10921_s26 + $0xc28] ss:$16 sps:$4 sm:$0xff]   ;;  %v10211_v18 = vld [vmem:[%s10921_s26 + $0xc44] ss:$16 sps:$4 sm:$0xff]  }
 0x3ec   : > { %5834 = vmatprep.subr.bf16.mxu0 %v10119_v22  ;;  %6162 = vmatprep.subr.bf16.mxu1 %v10122_v53  ;;  %v10214_v22 = vld [vmem:[%s10921_s26 + $0xc4c] ss:$16 sps:$4 sm:$0xff]   ;;  %v10209_v53 = vld [vmem:[%s10921_s26 + $0xc40] ss:$16 sps:$4 sm:$0xff]  }
 0x3ef   : > { %5835 = vmatpush1.bf16.msra.mxu0 %v10117_v12  ;;  %6163 = vmatpush1.bf16.msra.mxu1 %v10120_v23  ;;  %v10212_v12 = vld [vmem:[%s10921_s26 + $0xc48] ss:$16 sps:$4 sm:$0xff]   ;;  %v10217_v23 = vld [vmem:[%s10921_s26 + $0xc64] ss:$16 sps:$4 sm:$0xff]  }
 0x3f0   : > { %5836 = vmatprep.subr.bf16.mxu0 %v10125_v24  ;;  %6164 = vmatprep.subr.bf16.mxu1 %v10128_v17  ;;  %v10220_v24 = vld [vmem:[%s10921_s26 + $0xc6c] ss:$16 sps:$4 sm:$0xff]   ;;  %v10215_v17 = vld [vmem:[%s10921_s26 + $0xc60] ss:$16 sps:$4 sm:$0xff]  }
 0x3f3   : > { %5837 = vmatpush1.bf16.msra.mxu0 %v10123_v25  ;;  %6165 = vmatpush1.bf16.msra.mxu1 %v10126_v26  ;;  %v10218_v25 = vld [vmem:[%s10921_s26 + $0xc68] ss:$16 sps:$4 sm:$0xff]   ;;  %v10223_v26 = vld [vmem:[%s10921_s26 + $0xc84] ss:$16 sps:$4 sm:$0xff]  }
 0x3f4   : > { %5838 = vmatprep.subr.bf16.mxu0 %v10131_v19  ;;  %6166 = vmatprep.subr.bf16.mxu1 %v10134_v27  ;;  %v10226_v19 = vld [vmem:[%s10921_s26 + $0xc8c] ss:$16 sps:$4 sm:$0xff]   ;;  %v10221_v27 = vld [vmem:[%s10921_s26 + $0xc80] ss:$16 sps:$4 sm:$0xff]  }
 0x3f7   : > { %5839 = vmatpush1.bf16.msra.mxu0 %v10129_v28  ;;  %6167 = vmatpush1.bf16.msra.mxu1 %v10132_v20  ;;  %v10224_v28 = vld [vmem:[%s10921_s26 + $0xc88] ss:$16 sps:$4 sm:$0xff]   ;;  %v10229_v20 = vld [vmem:[%s10921_s26 + $0xca4] ss:$16 sps:$4 sm:$0xff]  }
 0x3f8   : > { %5840 = vmatprep.subr.bf16.mxu0 %v10137_v29  ;;  %6168 = vmatprep.subr.bf16.mxu1 %v10140_v16  ;;  %v10232_v29 = vld [vmem:[%s10921_s26 + $0xcac] ss:$16 sps:$4 sm:$0xff]   ;;  %v10227_v16 = vld [vmem:[%s10921_s26 + $0xca0] ss:$16 sps:$4 sm:$0xff]  }
 0x3fb   : > { %5841 = vmatpush1.bf16.msra.mxu0 %v10135_v21  ;;  %6169 = vmatpush1.bf16.msra.mxu1 %v10138_v30  ;;  %v10230_v21 = vld [vmem:[%s10921_s26 + $0xca8] ss:$16 sps:$4 sm:$0xff]   ;;  %v10235_v30 = vld [vmem:[%s10921_s26 + $0xcc4] ss:$16 sps:$4 sm:$0xff]  }
 0x3fc   : > { %5842 = vmatprep.subr.bf16.mxu0 %v10143_v31  ;;  %6170 = vmatprep.subr.bf16.mxu1 %v10146_v32  ;;  %v10238_v31 = vld [vmem:[%s10921_s26 + $0xccc] ss:$16 sps:$4 sm:$0xff]   ;;  %v10233_v32 = vld [vmem:[%s10921_s26 + $0xcc0] ss:$16 sps:$4 sm:$0xff]  }
 0x3ff   : > { %5843 = vmatpush1.bf16.msra.mxu0 %v10141_v33  ;;  %6171 = vmatpush1.bf16.msra.mxu1 %v10144_v34  ;;  %v10236_v33 = vld [vmem:[%s10921_s26 + $0xcc8] ss:$16 sps:$4 sm:$0xff]   ;;  %v10241_v34 = vld [vmem:[%s10921_s26 + $0xce4] ss:$16 sps:$4 sm:$0xff]  }
 0x400   : > { %5844 = vmatprep.subr.bf16.mxu0 %v10149_v35  ;;  %6172 = vmatprep.subr.bf16.mxu1 %v10152_v36  ;;  %v10244_v35 = vld [vmem:[%s10921_s26 + $0xcec] ss:$16 sps:$4 sm:$0xff]   ;;  %v10239_v36 = vld [vmem:[%s10921_s26 + $0xce0] ss:$16 sps:$4 sm:$0xff]  }
 0x403   : > { %5845 = vmatpush1.bf16.msra.mxu0 %v10147_v37  ;;  %6173 = vmatpush1.bf16.msra.mxu1 %v10150_v38  ;;  %v10242_v37 = vld [vmem:[%s10921_s26 + $0xce8] ss:$16 sps:$4 sm:$0xff]   ;;  %v10247_v38 = vld [vmem:[%s10921_s26 + $0xd04] ss:$16 sps:$4 sm:$0xff]  }
 0x404   : > { %5846 = vmatprep.subr.bf16.mxu0 %v10155_v39  ;;  %6174 = vmatprep.subr.bf16.mxu1 %v10158_v40  ;;  %v10250_v39 = vld [vmem:[%s10921_s26 + $0xd0c] ss:$16 sps:$4 sm:$0xff]   ;;  %v10245_v40 = vld [vmem:[%s10921_s26 + $0xd00] ss:$16 sps:$4 sm:$0xff]  }
 0x407   : > { %5847 = vmatpush1.bf16.msra.mxu0 %v10153_v41  ;;  %6175 = vmatpush1.bf16.msra.mxu1 %v10156_v46  ;;  %v10248_v41 = vld [vmem:[%s10921_s26 + $0xd08] ss:$16 sps:$4 sm:$0xff]   ;;  %v10253_v46 = vld [vmem:[%s10921_s26 + $0xd24] ss:$16 sps:$4 sm:$0xff]  }
 0x408   : > { %5848 = vmatprep.subr.bf16.mxu0 %v10161_v47  ;;  %6176 = vmatprep.subr.bf16.mxu1 %v10164_v48  ;;  %v10256_v47 = vld [vmem:[%s10921_s26 + $0xd2c] ss:$16 sps:$4 sm:$0xff]   ;;  %v10251_v48 = vld [vmem:[%s10921_s26 + $0xd20] ss:$16 sps:$4 sm:$0xff]  }
 0x40b   : > { %5849 = vmatpush1.bf16.msra.mxu0 %v10159_v57  ;;  %6177 = vmatpush1.bf16.msra.mxu1 %v10162_v49  ;;  %v10254_v57 = vld [vmem:[%s10921_s26 + $0xd28] ss:$16 sps:$4 sm:$0xff]   ;;  %v10259_v49 = vld [vmem:[%s10921_s26 + $0xd44] ss:$16 sps:$4 sm:$0xff]  }
 0x40c   : > { %5850 = vmatprep.subr.bf16.mxu0 %v10167_v50  ;;  %6178 = vmatprep.subr.bf16.mxu1 %v10170_v42  ;;  %v10262_v50 = vld [vmem:[%s10921_s26 + $0xd4c] ss:$16 sps:$4 sm:$0xff]   ;;  %v10257_v42 = vld [vmem:[%s10921_s26 + $0xd40] ss:$16 sps:$4 sm:$0xff]  }
 0x40f   : > { %5851 = vmatpush1.bf16.msra.mxu0 %v10165_v43  ;;  %6179 = vmatpush1.bf16.msra.mxu1 %v10168_v44  ;;  %v10260_v43 = vld [vmem:[%s10921_s26 + $0xd48] ss:$16 sps:$4 sm:$0xff]   ;;  %v10265_v44 = vld [vmem:[%s10921_s26 + $0xd64] ss:$16 sps:$4 sm:$0xff]  }
 0x410   : > { %5852 = vmatprep.subr.bf16.mxu0 %v10173_v45  ;;  %6180 = vmatprep.subr.bf16.mxu1 %v10176_v51  ;;  %v10268_v45 = vld [vmem:[%s10921_s26 + $0xd6c] ss:$16 sps:$4 sm:$0xff]   ;;  %v10263_v51 = vld [vmem:[%s10921_s26 + $0xd60] ss:$16 sps:$4 sm:$0xff]  }
 0x413   : > { %5853 = vmatpush1.bf16.msra.mxu0 %v10171_v52  ;;  %6181 = vmatpush1.bf16.msra.mxu1 %v10174_v54  ;;  %v10266_v52 = vld [vmem:[%s10921_s26 + $0xd68] ss:$16 sps:$4 sm:$0xff]   ;;  %v10271_v54 = vld [vmem:[%s10921_s26 + $0xd84] ss:$16 sps:$4 sm:$0xff]  }
 0x414   : > { %5854 = vmatprep.subr.bf16.mxu0 %v10179_v55  ;;  %6182 = vmatprep.subr.bf16.mxu1 %v10182_v56  ;;  %v10274_v55 = vld [vmem:[%s10921_s26 + $0xd8c] ss:$16 sps:$4 sm:$0xff]   ;;  %v10269_v56 = vld [vmem:[%s10921_s26 + $0xd80] ss:$16 sps:$4 sm:$0xff]  }
 0x417   : > { %5855 = vmatpush1.bf16.msra.mxu0 %v10177_v58  ;;  %6183 = vmatpush1.bf16.msra.mxu1 %v10180_v59  ;;  %v10272_v58 = vld [vmem:[%s10921_s26 + $0xd88] ss:$16 sps:$4 sm:$0xff]   ;;  %v10277_v59 = vld [vmem:[%s10921_s26 + $0xda4] ss:$16 sps:$4 sm:$0xff]  }
 0x418   : > { %5856 = vmatprep.subr.bf16.mxu0 %v10185_v60  ;;  %6184 = vmatprep.subr.bf16.mxu1 %v10188_v61  ;;  %v10280_v60 = vld [vmem:[%s10921_s26 + $0xdac] ss:$16 sps:$4 sm:$0xff]   ;;  %v10275_v61 = vld [vmem:[%s10921_s26 + $0xda0] ss:$16 sps:$4 sm:$0xff]  }
 0x41b   : > { %5857 = vmatpush1.bf16.msra.mxu0 %v10183_v63  ;;  %6185 = vmatpush1.bf16.msra.mxu1 %v10186_v0  ;;  %v10278_v63 = vld [vmem:[%s10921_s26 + $0xda8] ss:$16 sps:$4 sm:$0xff]   ;;  %v10283_v0 = vld [vmem:[%s10921_s26 + $0xdc4] ss:$16 sps:$4 sm:$0xff]  }
 0x41c   : > { %5858 = vmatprep.subr.bf16.mxu0 %v10191_v2  ;;  %6186 = vmatprep.subr.bf16.mxu1 %v10194_v3  ;;  %v10286_v2 = vld [vmem:[%s10921_s26 + $0xdcc] ss:$16 sps:$4 sm:$0xff]   ;;  %v10281_v3 = vld [vmem:[%s10921_s26 + $0xdc0] ss:$16 sps:$4 sm:$0xff]  }
 0x41f   : > { %5859 = vmatpush1.bf16.msra.mxu0 %v10189_v62  ;;  %6187 = vmatpush1.bf16.msra.mxu1 %v10192_v6  ;;  %v10284_v62 = vld [vmem:[%s10921_s26 + $0xdc8] ss:$16 sps:$4 sm:$0xff]   ;;  %v10289_v6 = vld [vmem:[%s10921_s26 + $0xde4] ss:$16 sps:$4 sm:$0xff]  }
 0x420   : > { %5869 = vmatprep.subr.bf16.mxu0 %v10199_v7  ;;  %6197 = vmatprep.subr.bf16.mxu1 %v10202_v1  ;;  %v10292_v7 = vld [vmem:[%s10921_s26 + $0xdec] ss:$16 sps:$4 sm:$0xff]   ;;  %v10287_v1 = vld [vmem:[%s10921_s26 + $0xde0] ss:$16 sps:$4 sm:$0xff]  }
 0x422   : > { %5861 = vmatmul.mubr.bf16.vlgmr.msra.gmra.mrb[0].mxu0 %v8648_v8  ;;  %6189 = vmatmul.mubr.bf16.vlgmr.msra.gmra.mrb[0].mxu1 %v8648_v8  ;;  %v10290_v8 = vld [vmem:[%s10921_s26 + $0xde8] ss:$16 sps:$4 sm:$0xff]  }
 0x423   : > { %5870 = vmatpush1.bf16.msra.mxu0 %v10197_v10  ;;  %6198 = vmatpush1.bf16.msra.mxu1 %v10200_v4  ;;  %v10297_v10 = vld [vmem:[%s10921_s26 + $0xe04] ss:$16 sps:$4 sm:$0xff]   ;;  %v10300_v4 = vld [vmem:[%s10921_s26 + $0xe0c] ss:$16 sps:$4 sm:$0xff]  }
 0x424   : > { %5871 = vmatprep.subr.bf16.mxu0 %v10205_v11  ;;  %6199 = vmatprep.subr.bf16.mxu1 %v10208_v13  ;;  %v8650_v11 = vcombine.low %v11410_v9, %v11410_v9  ;;  %v11480_v13 = vld [vmem:[#allocation2 + $0x38] sm:$0xff]  ;;  %v10301_v9 = vld [vmem:[%s10921_s26 + $0xe20] ss:$16 sps:$4 sm:$0xff]  }
 0x425   : > { %5901 = vmatprep.mubr.bf16.mxu0 %v8651_v14  ;;  %6229 = vmatprep.mubr.bf16.mxu1 %v8651_v14  ;;  %v10295_v14 = vld [vmem:[%s10921_s26 + $0xe00] ss:$16 sps:$4 sm:$0xff]  }
 0x427   : > { %5872 = vmatpush1.bf16.msra.mxu0 %v10203_v5  ;;  %6200 = vmatpush1.bf16.msra.mxu1 %v10206_v15  ;;  %v10298_v5 = vld [vmem:[%s10921_s26 + $0xe08] ss:$16 sps:$4 sm:$0xff]   ;;  %v10303_v15 = vld [vmem:[%s10921_s26 + $0xe24] ss:$16 sps:$4 sm:$0xff]  }
 0x428   : > { %5873 = vmatprep.subr.bf16.mxu0 %v10211_v18  ;;  %6201 = vmatprep.subr.bf16.mxu1 %v10214_v22  ;;  %v10306_v18 = vld [vmem:[%s10921_s26 + $0xe2c] ss:$16 sps:$4 sm:$0xff]   ;;  %v8653_v22 = vcombine.high %v11480_v13, %v11480_v13 }
 0x42b   : > { %5874 = vmatpush1.bf16.msra.mxu0 %v10209_v53  ;;  %6202 = vmatpush1.bf16.msra.mxu1 %v10212_v12  ;;  %v10304_v53 = vld [vmem:[%s10921_s26 + $0xe28] ss:$16 sps:$4 sm:$0xff]   ;;  %v10309_v12 = vld [vmem:[%s10921_s26 + $0xe44] ss:$16 sps:$4 sm:$0xff]  }
 0x42c   : > { %5875 = vmatprep.subr.bf16.mxu0 %v10217_v23  ;;  %6203 = vmatprep.subr.bf16.mxu1 %v10220_v24  ;;  %v10312_v23 = vld [vmem:[%s10921_s26 + $0xe4c] ss:$16 sps:$4 sm:$0xff]   ;;  %v10307_v24 = vld [vmem:[%s10921_s26 + $0xe40] ss:$16 sps:$4 sm:$0xff]  }
 0x42f   : > { %5876 = vmatpush1.bf16.msra.mxu0 %v10215_v17  ;;  %6204 = vmatpush1.bf16.msra.mxu1 %v10218_v25  ;;  %v10310_v17 = vld [vmem:[%s10921_s26 + $0xe48] ss:$16 sps:$4 sm:$0xff]   ;;  %v10315_v25 = vld [vmem:[%s10921_s26 + $0xe64] ss:$16 sps:$4 sm:$0xff]  }
 0x430   : > { %5877 = vmatprep.subr.bf16.mxu0 %v10223_v26  ;;  %6205 = vmatprep.subr.bf16.mxu1 %v10226_v19  ;;  %v10318_v26 = vld [vmem:[%s10921_s26 + $0xe6c] ss:$16 sps:$4 sm:$0xff]   ;;  %v10313_v19 = vld [vmem:[%s10921_s26 + $0xe60] ss:$16 sps:$4 sm:$0xff]  }
 0x433   : > { %5878 = vmatpush1.bf16.msra.mxu0 %v10221_v27  ;;  %6206 = vmatpush1.bf16.msra.mxu1 %v10224_v28  ;;  %v10316_v27 = vld [vmem:[%s10921_s26 + $0xe68] ss:$16 sps:$4 sm:$0xff]   ;;  %v10321_v28 = vld [vmem:[%s10921_s26 + $0xe84] ss:$16 sps:$4 sm:$0xff]  }
 0x434   : > { %5879 = vmatprep.subr.bf16.mxu0 %v10229_v20  ;;  %6207 = vmatprep.subr.bf16.mxu1 %v10232_v29  ;;  %v10324_v20 = vld [vmem:[%s10921_s26 + $0xe8c] ss:$16 sps:$4 sm:$0xff]   ;;  %v10319_v29 = vld [vmem:[%s10921_s26 + $0xe80] ss:$16 sps:$4 sm:$0xff]  }
 0x437   : > { %5880 = vmatpush1.bf16.msra.mxu0 %v10227_v16  ;;  %6208 = vmatpush1.bf16.msra.mxu1 %v10230_v21  ;;  %v10322_v16 = vld [vmem:[%s10921_s26 + $0xe88] ss:$16 sps:$4 sm:$0xff]   ;;  %v10327_v21 = vld [vmem:[%s10921_s26 + $0xea4] ss:$16 sps:$4 sm:$0xff]  }
 0x438   : > { %5881 = vmatprep.subr.bf16.mxu0 %v10235_v30  ;;  %6209 = vmatprep.subr.bf16.mxu1 %v10238_v31  ;;  %v10330_v30 = vld [vmem:[%s10921_s26 + $0xeac] ss:$16 sps:$4 sm:$0xff]   ;;  %v10325_v31 = vld [vmem:[%s10921_s26 + $0xea0] ss:$16 sps:$4 sm:$0xff]  }
 0x43b   : > { %5882 = vmatpush1.bf16.msra.mxu0 %v10233_v32  ;;  %6210 = vmatpush1.bf16.msra.mxu1 %v10236_v33  ;;  %v10328_v32 = vld [vmem:[%s10921_s26 + $0xea8] ss:$16 sps:$4 sm:$0xff]   ;;  %v10333_v33 = vld [vmem:[%s10921_s26 + $0xec4] ss:$16 sps:$4 sm:$0xff]  }
 0x43c   : > { %5883 = vmatprep.subr.bf16.mxu0 %v10241_v34  ;;  %6211 = vmatprep.subr.bf16.mxu1 %v10244_v35  ;;  %v10336_v34 = vld [vmem:[%s10921_s26 + $0xecc] ss:$16 sps:$4 sm:$0xff]   ;;  %v10331_v35 = vld [vmem:[%s10921_s26 + $0xec0] ss:$16 sps:$4 sm:$0xff]  }
 0x43f   : > { %5884 = vmatpush1.bf16.msra.mxu0 %v10239_v36  ;;  %6212 = vmatpush1.bf16.msra.mxu1 %v10242_v37  ;;  %v10334_v36 = vld [vmem:[%s10921_s26 + $0xec8] ss:$16 sps:$4 sm:$0xff]   ;;  %v10339_v37 = vld [vmem:[%s10921_s26 + $0xee4] ss:$16 sps:$4 sm:$0xff]  }
 0x440   : > { %5885 = vmatprep.subr.bf16.mxu0 %v10247_v38  ;;  %6213 = vmatprep.subr.bf16.mxu1 %v10250_v39  ;;  %v10342_v38 = vld [vmem:[%s10921_s26 + $0xeec] ss:$16 sps:$4 sm:$0xff]   ;;  %v10337_v39 = vld [vmem:[%s10921_s26 + $0xee0] ss:$16 sps:$4 sm:$0xff]  }
 0x443   : > { %5886 = vmatpush1.bf16.msra.mxu0 %v10245_v40  ;;  %6214 = vmatpush1.bf16.msra.mxu1 %v10248_v41  ;;  %v10340_v40 = vld [vmem:[%s10921_s26 + $0xee8] ss:$16 sps:$4 sm:$0xff]   ;;  %v10345_v41 = vld [vmem:[%s10921_s26 + $0xf04] ss:$16 sps:$4 sm:$0xff]  }
 0x444   : > { %5887 = vmatprep.subr.bf16.mxu0 %v10253_v46  ;;  %6215 = vmatprep.subr.bf16.mxu1 %v10256_v47  ;;  %v10348_v46 = vld [vmem:[%s10921_s26 + $0xf0c] ss:$16 sps:$4 sm:$0xff]   ;;  %v10343_v47 = vld [vmem:[%s10921_s26 + $0xf00] ss:$16 sps:$4 sm:$0xff]  }
 0x447   : > { %5888 = vmatpush1.bf16.msra.mxu0 %v10251_v48  ;;  %6216 = vmatpush1.bf16.msra.mxu1 %v10254_v57  ;;  %v10346_v48 = vld [vmem:[%s10921_s26 + $0xf08] ss:$16 sps:$4 sm:$0xff]   ;;  %v10351_v57 = vld [vmem:[%s10921_s26 + $0xf24] ss:$16 sps:$4 sm:$0xff]  }
 0x448   : > { %5889 = vmatprep.subr.bf16.mxu0 %v10259_v49  ;;  %6217 = vmatprep.subr.bf16.mxu1 %v10262_v50  ;;  %v10354_v49 = vld [vmem:[%s10921_s26 + $0xf2c] ss:$16 sps:$4 sm:$0xff]   ;;  %v10349_v50 = vld [vmem:[%s10921_s26 + $0xf20] ss:$16 sps:$4 sm:$0xff]  }
 0x44b   : > { %5890 = vmatpush1.bf16.msra.mxu0 %v10257_v42  ;;  %6218 = vmatpush1.bf16.msra.mxu1 %v10260_v43  ;;  %v10352_v42 = vld [vmem:[%s10921_s26 + $0xf28] ss:$16 sps:$4 sm:$0xff]   ;;  %v10357_v43 = vld [vmem:[%s10921_s26 + $0xf44] ss:$16 sps:$4 sm:$0xff]  }
 0x44c   : > { %5891 = vmatprep.subr.bf16.mxu0 %v10265_v44  ;;  %6219 = vmatprep.subr.bf16.mxu1 %v10268_v45  ;;  %v10360_v44 = vld [vmem:[%s10921_s26 + $0xf4c] ss:$16 sps:$4 sm:$0xff]   ;;  %v10355_v45 = vld [vmem:[%s10921_s26 + $0xf40] ss:$16 sps:$4 sm:$0xff]  }
 0x44f   : > { %5892 = vmatpush1.bf16.msra.mxu0 %v10263_v51  ;;  %6220 = vmatpush1.bf16.msra.mxu1 %v10266_v52  ;;  %v10358_v51 = vld [vmem:[%s10921_s26 + $0xf48] ss:$16 sps:$4 sm:$0xff]   ;;  %v10363_v52 = vld [vmem:[%s10921_s26 + $0xf64] ss:$16 sps:$4 sm:$0xff]  }
 0x450   : > { %5893 = vmatprep.subr.bf16.mxu0 %v10271_v54  ;;  %6221 = vmatprep.subr.bf16.mxu1 %v10274_v55  ;;  %v10366_v54 = vld [vmem:[%s10921_s26 + $0xf6c] ss:$16 sps:$4 sm:$0xff]   ;;  %v10361_v55 = vld [vmem:[%s10921_s26 + $0xf60] ss:$16 sps:$4 sm:$0xff]  }
 0x453   : > { %5894 = vmatpush1.bf16.msra.mxu0 %v10269_v56  ;;  %6222 = vmatpush1.bf16.msra.mxu1 %v10272_v58  ;;  %v10364_v56 = vld [vmem:[%s10921_s26 + $0xf68] ss:$16 sps:$4 sm:$0xff]   ;;  %v10369_v58 = vld [vmem:[%s10921_s26 + $0xf84] ss:$16 sps:$4 sm:$0xff]  }
 0x454   : > { %5895 = vmatprep.subr.bf16.mxu0 %v10277_v59  ;;  %6223 = vmatprep.subr.bf16.mxu1 %v10280_v60  ;;  %v10372_v59 = vld [vmem:[%s10921_s26 + $0xf8c] ss:$16 sps:$4 sm:$0xff]   ;;  %v10367_v60 = vld [vmem:[%s10921_s26 + $0xf80] ss:$16 sps:$4 sm:$0xff]  }
 0x457   : > { %5896 = vmatpush1.bf16.msra.mxu0 %v10275_v61  ;;  %6224 = vmatpush1.bf16.msra.mxu1 %v10278_v63  ;;  %v10370_v61 = vld [vmem:[%s10921_s26 + $0xf88] ss:$16 sps:$4 sm:$0xff]   ;;  %v10375_v63 = vld [vmem:[%s10921_s26 + $0xfa4] ss:$16 sps:$4 sm:$0xff]  }
 0x458   : > { %5897 = vmatprep.subr.bf16.mxu0 %v10283_v0  ;;  %6225 = vmatprep.subr.bf16.mxu1 %v10286_v2  ;;  %v10378_v0 = vld [vmem:[%s10921_s26 + $0xfac] ss:$16 sps:$4 sm:$0xff]   ;;  %v10373_v2 = vld [vmem:[%s10921_s26 + $0xfa0] ss:$16 sps:$4 sm:$0xff]  }
 0x45b   : > { %5898 = vmatpush1.bf16.msra.mxu0 %v10281_v3  ;;  %6226 = vmatpush1.bf16.msra.mxu1 %v10284_v62  ;;  %v10376_v3 = vld [vmem:[%s10921_s26 + $0xfa8] ss:$16 sps:$4 sm:$0xff]   ;;  %v10381_v62 = vld [vmem:[%s10921_s26 + $0xfc4] ss:$16 sps:$4 sm:$0xff]  }
 0x45c   : > { %5899 = vmatprep.subr.bf16.mxu0 %v10289_v6  ;;  %6227 = vmatprep.subr.bf16.mxu1 %v10292_v7  ;;  %v10384_v6 = vld [vmem:[%s10921_s26 + $0xfcc] ss:$16 sps:$4 sm:$0xff]   ;;  %v10379_v7 = vld [vmem:[%s10921_s26 + $0xfc0] ss:$16 sps:$4 sm:$0xff]  }
 0x45f   : > { %5900 = vmatpush1.bf16.msra.mxu0 %v10287_v1  ;;  %6228 = vmatpush1.bf16.msra.mxu1 %v10290_v8  ;;  %v10382_v1 = vld [vmem:[%s10921_s26 + $0xfc8] ss:$16 sps:$4 sm:$0xff]   ;;  %v10387_v8 = vld [vmem:[%s10921_s26 + $0xfe4] ss:$16 sps:$4 sm:$0xff]  }
 0x460   : > { %5910 = vmatprep.subr.bf16.mxu0 %v10297_v10  ;;  %6238 = vmatprep.subr.bf16.mxu1 %v10300_v4  ;;  %v10390_v10 = vld [vmem:[%s10921_s26 + $0xfec] ss:$16 sps:$4 sm:$0xff]  }
 0x461   : > { %v6295_v4 = vld [vmem:[%s10936_s10] sm:$0xff] }
 0x462   : > { %5902 = vmatmul.mubr.bf16.vlgmr.msra.gmra.mrb[0].mxu0 %v8650_v11  ;;  %6230 = vmatmul.mubr.bf16.vlgmr.msra.gmra.mrb[0].mxu1 %v8650_v11  ;;  %v6299_v11 = vld [vmem:[%s10936_s10 + $0x20] sm:$0xff] }
 0x463   : > { %5911 = vmatpush1.bf16.msra.mxu0 %v10295_v14  ;;  %6239 = vmatpush1.bf16.msra.mxu1 %v10298_v5  ;;  %v6423_v14 = vld [vmem:[%s10936_s10 + $0x400] sm:$0xff] }
 0x464   : > { %5912 = vmatprep.subr.bf16.mxu0 %v10303_v15  ;;  %6240 = vmatprep.subr.bf16.mxu1 %v10306_v18  ;;  %v6427_v5 = vld [vmem:[%s10936_s10 + $0x420] sm:$0xff]  ;;  %v10385_v15 = vld [vmem:[%s10921_s26 + $0xfe0] ss:$16 sps:$4 sm:$0xff]  }
 0x465   : > { %5942 = vmatprep.mubr.bf16.mxu0 %v8653_v22  ;;  %6270 = vmatprep.mubr.bf16.mxu1 %v8653_v22  ;;  %v10388_v18 = vld [vmem:[%s10921_s26 + $0xfe8] ss:$16 sps:$4 sm:$0xff]   ;;  %v9167_v22 = vcombine.high %v6295_v4, %v6299_v11 }
 0x467   : > { %5913 = vmatpush1.bf16.msra.mxu0 %v10301_v9  ;;  %6241 = vmatpush1.bf16.msra.mxu1 %v10304_v53  ;;  %v9295_v9 = vcombine.high %v6423_v14, %v6427_v5  ;;  %v6303_v53 = vld [vmem:[%s10936_s10 + $0x40] sm:$0xff] }
 0x468   : > { %5914 = vmatprep.subr.bf16.mxu0 %v10309_v12  ;;  %6242 = vmatprep.subr.bf16.mxu1 %v10312_v23  ;;  %v6307_v12 = vld [vmem:[%s10936_s10 + $0x60] sm:$0xff] }
 0x469   : > { %v6431_v23 = vld [vmem:[%s10936_s10 + $0x440] sm:$0xff] }
 0x46b   : > { %5915 = vmatpush1.bf16.msra.mxu0 %v10307_v24  ;;  %6243 = vmatpush1.bf16.msra.mxu1 %v10310_v17  ;;  %v6435_v24 = vld [vmem:[%s10936_s10 + $0x460] sm:$0xff]  ;;  %v8652_v17 = vcombine.low %v11480_v13, %v11480_v13  ;;  %v9174_v13 = vcombine.low %v6303_v53, %v6307_v12 }
 0x46c   : > { %5916 = vmatprep.subr.bf16.mxu0 %v10315_v25  ;;  %6244 = vmatprep.subr.bf16.mxu1 %v10318_v26  ;;  %v9166_v25 = vcombine.low %v6295_v4, %v6299_v11  ;;  %v9294_v26 = vcombine.low %v6423_v14, %v6427_v5  ;;  %v6359_v11 = vld [vmem:[%s10936_s10 + $0x200] sm:$0xff] }
 0x46d   : > { %v6363_v14 = vld [vmem:[%s10936_s10 + $0x220] sm:$0xff] }
 0x46e   : > { %v6487_v5 = vld [vmem:[%s10936_s10 + $0x600] sm:$0xff] }
 0x46f   : > { %5917 = vmatpush1.bf16.msra.mxu0 %v10313_v19  ;;  %6245 = vmatpush1.bf16.msra.mxu1 %v10316_v27  ;;  %v9175_v19 = vcombine.high %v6303_v53, %v6307_v12  ;;  %v9303_v27 = vcombine.high %v6431_v23, %v6435_v24  ;;  %v6367_v12 = vld [vmem:[%s10936_s10 + $0x240] sm:$0xff] }
 0x470   : > { %5918 = vmatprep.subr.bf16.mxu0 %v10321_v28  ;;  %6246 = vmatprep.subr.bf16.mxu1 %v10324_v20  ;;  %v6311_v28 = vld [vmem:[%s10936_s10 + $0x80] sm:$0xff] }
 0x471   : > { %v6315_v20 = vld [vmem:[%s10936_s10 + $0xa0] sm:$0xff] }
 0x473   : > { %5919 = vmatpush1.bf16.msra.mxu0 %v10319_v29  ;;  %6247 = vmatpush1.bf16.msra.mxu1 %v10322_v16  ;;  %v6439_v29 = vld [vmem:[%s10936_s10 + $0x480] sm:$0xff] }
 0x474   : > { %5920 = vmatprep.subr.bf16.mxu0 %v10327_v21  ;;  %6248 = vmatprep.subr.bf16.mxu1 %v10330_v30  ;;  %v6443_v16 = vld [vmem:[%s10936_s10 + $0x4a0] sm:$0xff]  ;;  %v9302_v21 = vcombine.low %v6431_v23, %v6435_v24  ;;  %v9183_v30 = vcombine.high %v6311_v28, %v6315_v20 }
 0x475   : > { %v6371_v23 = vld [vmem:[%s10936_s10 + $0x260] sm:$0xff] }
 0x476   : > { %v6495_v24 = vld [vmem:[%s10936_s10 + $0x640] sm:$0xff] }
 0x477   : > { %5921 = vmatpush1.bf16.msra.mxu0 %v10325_v31  ;;  %6249 = vmatpush1.bf16.msra.mxu1 %v10328_v32  ;;  %v9311_v31 = vcombine.high %v6439_v29, %v6443_v16  ;;  %v6319_v32 = vld [vmem:[%s10936_s10 + $0xc0] sm:$0xff] }
 0x478   : > { %5922 = vmatprep.subr.bf16.mxu0 %v10333_v33  ;;  %6250 = vmatprep.subr.bf16.mxu1 %v10336_v34  ;;  %v6323_v33 = vld [vmem:[%s10936_s10 + $0xe0] sm:$0xff] }
 0x479   : > { %v6447_v34 = vld [vmem:[%s10936_s10 + $0x4c0] sm:$0xff] }
 0x47b   : > { %5923 = vmatpush1.bf16.msra.mxu0 %v10331_v35  ;;  %6251 = vmatpush1.bf16.msra.mxu1 %v10334_v36  ;;  %v6451_v35 = vld [vmem:[%s10936_s10 + $0x4e0] sm:$0xff]  ;;  %v9182_v36 = vcombine.low %v6311_v28, %v6315_v20 }
 0x47c   : > { %5924 = vmatprep.subr.bf16.mxu0 %v10339_v37  ;;  %6252 = vmatprep.subr.bf16.mxu1 %v10342_v38  ;;  %v9310_v37 = vcombine.low %v6439_v29, %v6443_v16  ;;  %v9191_v38 = vcombine.high %v6319_v32, %v6323_v33  ;;  %v6375_v28 = vld [vmem:[%s10936_s10 + $0x280] sm:$0xff] }
 0x47d   : > { %v6379_v20 = vld [vmem:[%s10936_s10 + $0x2a0] sm:$0xff] }
 0x47e   : > { %v6503_v29 = vld [vmem:[%s10936_s10 + $0x680] sm:$0xff] }
 0x47f   : > { %5925 = vmatpush1.bf16.msra.mxu0 %v10337_v39  ;;  %6253 = vmatpush1.bf16.msra.mxu1 %v10340_v40  ;;  %v9319_v39 = vcombine.high %v6447_v34, %v6451_v35  ;;  %v6327_v40 = vld [vmem:[%s10936_s10 + $0x100] sm:$0xff] }
 0x480   : > { %5926 = vmatprep.subr.bf16.mxu0 %v10345_v41  ;;  %6254 = vmatprep.subr.bf16.mxu1 %v10348_v46  ;;  %v6331_v41 = vld [vmem:[%s10936_s10 + $0x120] sm:$0xff] }
 0x481   : > { %v6455_v46 = vld [vmem:[%s10936_s10 + $0x500] sm:$0xff] }
 0x482   : > { %v6507_v16 = vld [vmem:[%s10936_s10 + $0x6a0] sm:$0xff] }
 0x483   : > { %5927 = vmatpush1.bf16.msra.mxu0 %v10343_v47  ;;  %6255 = vmatpush1.bf16.msra.mxu1 %v10346_v48  ;;  %v6459_v47 = vld [vmem:[%s10936_s10 + $0x520] sm:$0xff]  ;;  %v9190_v48 = vcombine.low %v6319_v32, %v6323_v33 }
 0x484   : > { %5928 = vmatprep.subr.bf16.mxu0 %v10351_v57  ;;  %6256 = vmatprep.subr.bf16.mxu1 %v10354_v49  ;;  %v9318_v57 = vcombine.low %v6447_v34, %v6451_v35  ;;  %v9199_v49 = vcombine.high %v6327_v40, %v6331_v41  ;;  %v6383_v32 = vld [vmem:[%s10936_s10 + $0x2c0] sm:$0xff] }
 0x485   : > { %v6387_v33 = vld [vmem:[%s10936_s10 + $0x2e0] sm:$0xff] }
 0x486   : > { %v6511_v34 = vld [vmem:[%s10936_s10 + $0x6c0] sm:$0xff] }
 0x487   : > { %5929 = vmatpush1.bf16.msra.mxu0 %v10349_v50  ;;  %6257 = vmatpush1.bf16.msra.mxu1 %v10352_v42  ;;  %v9327_v50 = vcombine.high %v6455_v46, %v6459_v47  ;;  %v6335_v42 = vld [vmem:[%s10936_s10 + $0x140] sm:$0xff] }
 0x488   : > { %5930 = vmatprep.subr.bf16.mxu0 %v10357_v43  ;;  %6258 = vmatprep.subr.bf16.mxu1 %v10360_v44  ;;  %v6339_v43 = vld [vmem:[%s10936_s10 + $0x160] sm:$0xff] }
 0x489   : > { %v6463_v44 = vld [vmem:[%s10936_s10 + $0x540] sm:$0xff] }
 0x48a   : > { %v6515_v35 = vld [vmem:[%s10936_s10 + $0x6e0] sm:$0xff] }
 0x48b   : > { %5931 = vmatpush1.bf16.msra.mxu0 %v10355_v45  ;;  %6259 = vmatpush1.bf16.msra.mxu1 %v10358_v51  ;;  %v6467_v45 = vld [vmem:[%s10936_s10 + $0x560] sm:$0xff]  ;;  %v9198_v51 = vcombine.low %v6327_v40, %v6331_v41 }
 0x48c   : > { %5932 = vmatprep.subr.bf16.mxu0 %v10363_v52  ;;  %6260 = vmatprep.subr.bf16.mxu1 %v10366_v54  ;;  %v9326_v52 = vcombine.low %v6455_v46, %v6459_v47  ;;  %v9207_v54 = vcombine.high %v6335_v42, %v6339_v43  ;;  %v6391_v40 = vld [vmem:[%s10936_s10 + $0x300] sm:$0xff] }
 0x48d   : > { %v6395_v41 = vld [vmem:[%s10936_s10 + $0x320] sm:$0xff] }
 0x48e   : > { %v6519_v46 = vld [vmem:[%s10936_s10 + $0x700] sm:$0xff] }
 0x48f   : > { %5933 = vmatpush1.bf16.msra.mxu0 %v10361_v55  ;;  %6261 = vmatpush1.bf16.msra.mxu1 %v10364_v56  ;;  %v9335_v55 = vcombine.high %v6463_v44, %v6467_v45  ;;  %v6343_v56 = vld [vmem:[%s10936_s10 + $0x180] sm:$0xff] }
 0x490   : > { %5934 = vmatprep.subr.bf16.mxu0 %v10369_v58  ;;  %6262 = vmatprep.subr.bf16.mxu1 %v10372_v59  ;;  %v6347_v58 = vld [vmem:[%s10936_s10 + $0x1a0] sm:$0xff] }
 0x491   : > { %v6471_v59 = vld [vmem:[%s10936_s10 + $0x580] sm:$0xff] }
 0x492   : > { %v6523_v47 = vld [vmem:[%s10936_s10 + $0x720] sm:$0xff] }
 0x493   : > { %5935 = vmatpush1.bf16.msra.mxu0 %v10367_v60  ;;  %6263 = vmatpush1.bf16.msra.mxu1 %v10370_v61  ;;  %v6475_v60 = vld [vmem:[%s10936_s10 + $0x5a0] sm:$0xff]  ;;  %v9206_v61 = vcombine.low %v6335_v42, %v6339_v43 }
 0x494   : > { %5936 = vmatprep.subr.bf16.mxu0 %v10375_v63  ;;  %6264 = vmatprep.subr.bf16.mxu1 %v10378_v0  ;;  %v9334_v63 = vcombine.low %v6463_v44, %v6467_v45  ;;  %v9215_v0 = vcombine.high %v6343_v56, %v6347_v58  ;;  %v6399_v42 = vld [vmem:[%s10936_s10 + $0x340] sm:$0xff] }
 0x495   : > { %v6403_v43 = vld [vmem:[%s10936_s10 + $0x360] sm:$0xff] }
 0x496   : > { %v6527_v44 = vld [vmem:[%s10936_s10 + $0x740] sm:$0xff] }
 0x497   : > { %5937 = vmatpush1.bf16.msra.mxu0 %v10373_v2  ;;  %6265 = vmatpush1.bf16.msra.mxu1 %v10376_v3  ;;  %v9343_v2 = vcombine.high %v6471_v59, %v6475_v60  ;;  %v6351_v3 = vld [vmem:[%s10936_s10 + $0x1c0] sm:$0xff] }
 0x498   : > { %5938 = vmatprep.subr.bf16.mxu0 %v10381_v62  ;;  %6266 = vmatprep.subr.bf16.mxu1 %v10384_v6  ;;  %v6355_v62 = vld [vmem:[%s10936_s10 + $0x1e0] sm:$0xff] }
 0x499   : > { %v6479_v6 = vld [vmem:[%s10936_s10 + $0x5c0] sm:$0xff] }
 0x49a   : > { %v6531_v45 = vld [vmem:[%s10936_s10 + $0x760] sm:$0xff] }
 0x49b   : > { %5939 = vmatpush1.bf16.msra.mxu0 %v10379_v7  ;;  %6267 = vmatpush1.bf16.msra.mxu1 %v10382_v1  ;;  %v6483_v7 = vld [vmem:[%s10936_s10 + $0x5e0] sm:$0xff]  ;;  %v9214_v1 = vcombine.low %v6343_v56, %v6347_v58  ;;  %v9270_v56 = vcombine.low %v6399_v42, %v6403_v43  ;;  %v9398_v58 = vcombine.low %v6527_v44, %v6531_v45 }
 0x49c   : > { %5940 = vmatprep.subr.bf16.mxu0 %v10387_v8  ;;  %6268 = vmatprep.subr.bf16.mxu1 %v10390_v10  ;;  %v9342_v8 = vcombine.low %v6471_v59, %v6475_v60  ;;  %v9223_v10 = vcombine.high %v6351_v3, %v6355_v62  ;;  %v9351_v4 = vcombine.high %v6479_v6, %v6483_v7  ;;  %v6407_v59 = vld [vmem:[%s10936_s10 + $0x380] sm:$0xff] }
 0x49d   : > { %v6411_v60 = vld [vmem:[%s10936_s10 + $0x3a0] sm:$0xff] }
 0x49f   : > { %5941 = vmatpush1.bf16.msra.mxu0 %v10385_v15  ;;  %6269 = vmatpush1.bf16.msra.mxu1 %v10388_v18  ;;  %v6491_v15 = vld [vmem:[%s10936_s10 + $0x620] sm:$0xff]  ;;  %v9222_v18 = vcombine.low %v6351_v3, %v6355_v62 }
 0x4a0   : > { %7831 = vmatprep.subr.bf16.mxu0 %v9167_v22  ;;  %7872 = vmatprep.subr.bf16.mxu1 %v9295_v9  ;;  %v9350_v22 = vcombine.low %v6479_v6, %v6483_v7  ;;  %v9231_v9 = vcombine.high %v6359_v11, %v6363_v14  ;;  %v9359_v53 = vcombine.high %v6487_v5, %v6491_v15  ;;  %v6415_v6 = vld [vmem:[%s10936_s10 + $0x3c0] sm:$0xff] }
 0x4a1   : > { %v6419_v7 = vld [vmem:[%s10936_s10 + $0x3e0] sm:$0xff] }
 0x4a2   : > { %5943 = vmatmul.mubr.bf16.vlgmr.msra.gmra.mrb[0].mxu0 %v8652_v17  ;;  %6271 = vmatmul.mubr.bf16.vlgmr.msra.gmra.mrb[0].mxu1 %v8652_v17  ;;  %v6499_v17 = vld [vmem:[%s10936_s10 + $0x660] sm:$0xff] }
 0x4a3   : > { %7832 = vmatpush1.bf16.msra.mxu0 %v9166_v25  ;;  %7873 = vmatpush1.bf16.msra.mxu1 %v9294_v26  ;;  %v9230_v25 = vcombine.low %v6359_v11, %v6363_v14  ;;  %v9358_v26 = vcombine.low %v6487_v5, %v6491_v15  ;;  %v6296_v5 = vld [vmem:[%s10936_s10 + $0x8] sm:$0xff] }
 0x4a4   : > { %7833 = vmatprep.subr.bf16.mxu0 %v9175_v19  ;;  %7874 = vmatprep.subr.bf16.mxu1 %v9303_v27  ;;  %v9239_v19 = vcombine.high %v6367_v12, %v6371_v23  ;;  %v9367_v27 = vcombine.high %v6495_v24, %v6499_v17  ;;  %v6300_v15 = vld [vmem:[%s10936_s10 + $0x28] sm:$0xff] }
 0x4a7   : > { %7834 = vmatpush1.bf16.msra.mxu0 %v9174_v13  ;;  %7875 = vmatpush1.bf16.msra.mxu1 %v9302_v21  ;;  %v9238_v13 = vcombine.low %v6367_v12, %v6371_v23  ;;  %v9366_v21 = vcombine.low %v6495_v24, %v6499_v17  ;;  %v2987_v24 = vlaneseq }
 0x4a8   : > { %7835 = vmatprep.subr.bf16.mxu0 %v9183_v30  ;;  %7876 = vmatprep.subr.bf16.mxu1 %v9311_v31  ;;  %v9247_v30 = vcombine.high %v6375_v28, %v6379_v20  ;;  %v9375_v31 = vcombine.high %v6503_v29, %v6507_v16 }
 0x4a9   : > { %v2988_v17 = vshrl.u32 %v2987_v24, 7  ;;  %v6468_v24 = vld [vmem:[%s10936_s10 + $0x568] sm:$0xff] }
 0x4ab   : > { %7836 = vmatpush1.bf16.msra.mxu0 %v9182_v36  ;;  %7877 = vmatpush1.bf16.msra.mxu1 %v9310_v37  ;;  %v9246_v36 = vcombine.low %v6375_v28, %v6379_v20  ;;  %v9374_v37 = vcombine.low %v6503_v29, %v6507_v16  ;;  %v3001_v28 = vsub.s32 3, %v2988_v17 }
 0x4ac   : > { %7837 = vmatprep.subr.bf16.mxu0 %v9191_v38  ;;  %7878 = vmatprep.subr.bf16.mxu1 %v9319_v39  ;;  %v9255_v38 = vcombine.high %v6383_v32, %v6387_v33  ;;  %v9383_v39 = vcombine.high %v6511_v34, %v6515_v35 }
 0x4af   : > { %7838 = vmatpush1.bf16.msra.mxu0 %v9190_v48  ;;  %7879 = vmatpush1.bf16.msra.mxu1 %v9318_v57  ;;  %v9254_v48 = vcombine.low %v6383_v32, %v6387_v33  ;;  %v9382_v57 = vcombine.low %v6511_v34, %v6515_v35 }
 0x4b0   : > { %7839 = vmatprep.subr.bf16.mxu0 %v9199_v49  ;;  %7880 = vmatprep.subr.bf16.mxu1 %v9327_v50  ;;  %v9263_v49 = vcombine.high %v6391_v40, %v6395_v41  ;;  %v9391_v50 = vcombine.high %v6519_v46, %v6523_v47 }
 0x4b3   : > { %7840 = vmatpush1.bf16.msra.mxu0 %v9198_v51  ;;  %7881 = vmatpush1.bf16.msra.mxu1 %v9326_v52  ;;  %v9262_v51 = vcombine.low %v6391_v40, %v6395_v41  ;;  %v9390_v52 = vcombine.low %v6519_v46, %v6523_v47 }
 0x4b4   : > { %7841 = vmatprep.subr.bf16.mxu0 %v9207_v54  ;;  %7882 = vmatprep.subr.bf16.mxu1 %v9335_v55  ;;  %v9271_v54 = vcombine.high %v6399_v42, %v6403_v43  ;;  %v9399_v55 = vcombine.high %v6527_v44, %v6531_v45  ;;  %v6436_v42 = vld [vmem:[%s10936_s10 + $0x468] sm:$0xff] }
 0x4b7   : > { %7842 = vmatpush1.bf16.msra.mxu0 %v9206_v61  ;;  %7883 = vmatpush1.bf16.msra.mxu1 %v9334_v63  ;;  %v6535_v61 = vld [vmem:[%s10936_s10 + $0x780] sm:$0xff]  ;;  %v9279_v63 = vcombine.high %v6407_v59, %v6411_v60 }
 0x4b8   : > { %7843 = vmatprep.subr.bf16.mxu0 %v9215_v0  ;;  %7884 = vmatprep.subr.bf16.mxu1 %v9343_v2  ;;  %v6539_v0 = vld [vmem:[%s10936_s10 + $0x7a0] sm:$0xff]  ;;  %v9278_v2 = vcombine.low %v6407_v59, %v6411_v60  ;;  %v6444_v59 = vld [vmem:[%s10936_s10 + $0x4a8] sm:$0xff] }
 0x4b9   : > { %v9406_v3 = vcombine.low %v6535_v61, %v6539_v0  ;;  %v9407_v62 = vcombine.high %v6535_v61, %v6539_v0 }
 0x4bb   : > { %7844 = vmatpush1.bf16.msra.mxu0 %v9214_v1  ;;  %7885 = vmatpush1.bf16.msra.mxu1 %v9342_v8  ;;  %v6543_v1 = vld [vmem:[%s10936_s10 + $0x7c0] sm:$0xff]  ;;  %v9287_v8 = vcombine.high %v6415_v6, %v6419_v7 }
 0x4bc   : > { %7845 = vmatprep.subr.bf16.mxu0 %v9223_v10  ;;  %7886 = vmatprep.subr.bf16.mxu1 %v9351_v4  ;;  %v6547_v10 = vld [vmem:[%s10936_s10 + $0x7e0] sm:$0xff]  ;;  %v9286_v4 = vcombine.low %v6415_v6, %v6419_v7  ;;  %v6452_v6 = vld [vmem:[%s10936_s10 + $0x4e8] sm:$0xff] }
 0x4bd   : > { %v9414_v11 = vcombine.low %v6543_v1, %v6547_v10  ;;  %v9415_v14 = vcombine.high %v6543_v1, %v6547_v10 }
 0x4bf   : > { %7846 = vmatpush1.bf16.msra.mxu0 %v9222_v18  ;;  %7887 = vmatpush1.bf16.msra.mxu1 %v9350_v22  ;;  %v6424_v18 = vld [vmem:[%s10936_s10 + $0x408] sm:$0xff]  ;;  %v9169_v22 = vcombine.high %v6296_v5, %v6300_v15 }
 0x4c0   : > { %7847 = vmatprep.subr.bf16.mxu0 %v9231_v9  ;;  %7888 = vmatprep.subr.bf16.mxu1 %v9359_v53  ;;  %v6428_v9 = vld [vmem:[%s10936_s10 + $0x428] sm:$0xff]  ;;  %v9168_v53 = vcombine.low %v6296_v5, %v6300_v15 }
 0x4c1   : > { %v9296_v12 = vcombine.low %v6424_v18, %v6428_v9  ;;  %v9297_v23 = vcombine.high %v6424_v18, %v6428_v9  ;;  %v6460_v5 = vld [vmem:[%s10936_s10 + $0x528] sm:$0xff] }
 0x4c3   : > { %7848 = vmatpush1.bf16.msra.mxu0 %v9230_v25  ;;  %7889 = vmatpush1.bf16.msra.mxu1 %v9358_v26  ;;  %v2989_v25 = vsub.s32 0, %v2988_v17  ;;  %v2997_v26 = vsub.s32 2, %v2988_v17 }
 0x4c4   : > { %7849 = vmatprep.subr.bf16.mxu0 %v9239_v19  ;;  %7890 = vmatprep.subr.bf16.mxu1 %v9367_v27  ;;  %v2985_v19 = vld [vmem:[%s10934_s27] sm:$0xf]  ;;  %v2993_v27 = vsub.s32 1, %v2988_v17 }
 0x4c5   : > { %v2990_v20 = vrot.slane %v2985_v19, %v2989_v25  ;;  %v2998_v29 = vrot.slane %v2985_v19, %v2997_v26 }
 0x4c6   : > { %v2994_v16 = vrot.slane %v2985_v19, %v2993_v27  ;;  %v6344_v27 = vld [vmem:[%s10936_s10 + $0x188] sm:$0xff] }
 0x4c7   : > { %7850 = vmatpush1.bf16.msra.mxu0 %v9238_v13  ;;  %7891 = vmatpush1.bf16.msra.mxu1 %v9366_v21  ;;  %v3002_v13 = vrot.slane %v2985_v19, %v3001_v28  ;;  %v6348_v28 = vld [vmem:[%s10936_s10 + $0x1a8] sm:$0xff] }
 0x4c8   : > { %7851 = vmatprep.subr.bf16.mxu0 %v9247_v30  ;;  %7892 = vmatprep.subr.bf16.mxu1 %v9375_v31 }
 0x4cb   : > { %7852 = vmatpush1.bf16.msra.mxu0 %v9246_v36  ;;  %7893 = vmatpush1.bf16.msra.mxu1 %v9374_v37 }
 0x4cc   : > { %7853 = vmatprep.subr.bf16.mxu0 %v9255_v38  ;;  %7894 = vmatprep.subr.bf16.mxu1 %v9383_v39 }
 0x4cf   : > { %7854 = vmatpush1.bf16.msra.mxu0 %v9254_v48  ;;  %7895 = vmatpush1.bf16.msra.mxu1 %v9382_v57  ;;  %v6304_v57 = vld [vmem:[%s10936_s10 + $0x48] sm:$0xff] }
 0x4d0   : > { %7855 = vmatprep.subr.bf16.mxu0 %v9263_v49  ;;  %7896 = vmatprep.subr.bf16.mxu1 %v9391_v50  ;;  %v6308_v49 = vld [vmem:[%s10936_s10 + $0x68] sm:$0xff] }
 0x4d1   : > { %v6432_v50 = vld [vmem:[%s10936_s10 + $0x448] sm:$0xff]  ;;  %v9176_v60 = vcombine.low %v6304_v57, %v6308_v49 }
 0x4d2   : > { %v9304_v61 = vcombine.low %v6432_v50, %v6436_v42 }
 0x4d3   : > { %7856 = vmatpush1.bf16.msra.mxu0 %v9262_v51  ;;  %7897 = vmatpush1.bf16.msra.mxu1 %v9390_v52  ;;  %v6312_v52 = vld [vmem:[%s10936_s10 + $0x88] sm:$0xff] }
 0x4d4   : > { %7857 = vmatprep.subr.bf16.mxu0 %v9271_v54  ;;  %7898 = vmatprep.subr.bf16.mxu1 %v9399_v55  ;;  %v9177_v54 = vcombine.high %v6304_v57, %v6308_v49  ;;  %v9305_v55 = vcombine.high %v6432_v50, %v6436_v42  ;;  %v6368_v50 = vld [vmem:[%s10936_s10 + $0x248] sm:$0xff] }
 0x4d5   : > { %v6372_v42 = vld [vmem:[%s10936_s10 + $0x268] sm:$0xff] }
 0x4d7   : > { %7858 = vmatpush1.bf16.msra.mxu0 %v9270_v56  ;;  %7899 = vmatpush1.bf16.msra.mxu1 %v9398_v58  ;;  %v6316_v56 = vld [vmem:[%s10936_s10 + $0xa8] sm:$0xff] }
 0x4d8   : > { %7859 = vmatprep.subr.bf16.mxu0 %v9279_v63  ;;  %7900 = vmatprep.subr.bf16.mxu1 %v9407_v62  ;;  %v6440_v58 = vld [vmem:[%s10936_s10 + $0x488] sm:$0xff]  ;;  %v9185_v63 = vcombine.high %v6312_v52, %v6316_v56  ;;  %v9184_v7 = vcombine.low %v6312_v52, %v6316_v56 }
 0x4d9   : > { %v9313_v0 = vcombine.high %v6440_v58, %v6444_v59  ;;  %v6448_v62 = vld [vmem:[%s10936_s10 + $0x4c8] sm:$0xff]  ;;  %v9312_v1 = vcombine.low %v6440_v58, %v6444_v59  ;;  %v9241_v58 = vcombine.high %v6368_v50, %v6372_v42 }
 0x4da   : > { %v9321_v10 = vcombine.high %v6448_v62, %v6452_v6  ;;  %v9320_v18 = vcombine.low %v6448_v62, %v6452_v6  ;;  %v6496_v52 = vld [vmem:[%s10936_s10 + $0x648] sm:$0xff] }
 0x4db   : > { %7860 = vmatpush1.bf16.msra.mxu0 %v9278_v2  ;;  %7901 = vmatpush1.bf16.msra.mxu1 %v9406_v3  ;;  %v6320_v2 = vld [vmem:[%s10936_s10 + $0xc8] sm:$0xff] }
 0x4dc   : > { %7861 = vmatprep.subr.bf16.mxu0 %v9287_v8  ;;  %7902 = vmatprep.subr.bf16.mxu1 %v9415_v14  ;;  %v6324_v3 = vld [vmem:[%s10936_s10 + $0xe8] sm:$0xff] }
 0x4dd   : > { %v9193_v8 = vcombine.high %v6320_v2, %v6324_v3  ;;  %v6456_v14 = vld [vmem:[%s10936_s10 + $0x508] sm:$0xff]  ;;  %v9192_v15 = vcombine.low %v6320_v2, %v6324_v3  ;;  %v9240_v2 = vcombine.low %v6368_v50, %v6372_v42 }
 0x4de   : > { %v9329_v9 = vcombine.high %v6456_v14, %v6460_v5  ;;  %v9328_v25 = vcombine.low %v6456_v14, %v6460_v5 }
 0x4df   : > { %7862 = vmatpush1.bf16.msra.mxu0 %v9286_v4  ;;  %7903 = vmatpush1.bf16.msra.mxu1 %v9414_v11  ;;  %v6328_v4 = vld [vmem:[%s10936_s10 + $0x108] sm:$0xff] }
 0x4e0   : > { %7913 = vmatprep.subr.bf16.mxu0 %v9169_v22  ;;  %7954 = vmatprep.subr.bf16.mxu1 %v9297_v23  ;;  %v6332_v11 = vld [vmem:[%s10936_s10 + $0x128] sm:$0xff] }
 0x4e1   : > { %v9201_v22 = vcombine.high %v6328_v4, %v6332_v11  ;;  %v6464_v23 = vld [vmem:[%s10936_s10 + $0x548] sm:$0xff]  ;;  %v9200_v17 = vcombine.low %v6328_v4, %v6332_v11 }
 0x4e2   : > { %v9337_v19 = vcombine.high %v6464_v23, %v6468_v24 }
 0x575   : > { %v5944_v21 = vpop.f32.mrb[0].mxu0  ;;  %v6272_v30 = vpop.f32.mrb[0].mxu1 }
 0x576   : > { %v9438_v31 = vadd.f32 %v5944_v21, %v2990_v20  ;;  %v9440_v32 = vadd.f32 %v6272_v30, %v2998_v29  ;;  %v5946_v33 = vpop.f32.mrb[1].mxu0  ;;  %v6274_v34 = vpop.f32.mrb[1].mxu1  ;;  %v6472_v20 = vld [vmem:[%s10936_s10 + $0x588] sm:$0xff]  ;;  %v9217_v21 = vcombine.high %v6344_v27, %v6348_v28 }
 0x577   : > { %v9439_v35 = vadd.f32 %v5946_v33, %v2994_v16  ;;  %v9441_v36 = vadd.f32 %v6274_v34, %v3002_v13  ;;  %v5948_v37 = vpop.f32.mrb[2].mxu0  ;;  %v6276_v38 = vpop.f32.mrb[2].mxu1  ;;  %v6476_v29 = vld [vmem:[%s10936_s10 + $0x5a8] sm:$0xff]  ;;  %v9336_v13 = vcombine.low %v6464_v23, %v6468_v24 }
 0x578   : > { %v6279_v39 = vmax.f32 %v9438_v31, 0.0  ;;  %v6281_v40 = vmax.f32 %v9440_v32, 0.0  ;;  %v5949_v41 = vpop.f32.mrb[3].mxu0  ;;  %v6277_v46 = vpop.f32.mrb[3].mxu1  ;;  %v9345_v30 = vcombine.high %v6472_v20, %v6476_v29  ;;  %v6352_v31 = vld [vmem:[%s10936_s10 + $0x1c8] sm:$0xff] }
 0x579   : > { %v6280_v47 = vmax.f32 %v9439_v35, 0.0  ;;  %v6282_v48 = vmax.f32 %v9441_v36, 0.0  ;;  %v6356_v32 = vld [vmem:[%s10936_s10 + $0x1e8] sm:$0xff]  ;;  %v9216_v35 = vcombine.low %v6344_v27, %v6348_v28  ;;  %v9344_v36 = vcombine.low %v6472_v20, %v6476_v29 }
 0x57a   : > { %v11625_v45 = vpack.c.bf16 %v6279_v39, %v6279_v39  ;;  %v11627_v51 = vpack.c.bf16 %v6281_v40, %v6281_v40  ;;  %v6480_v33 = vld [vmem:[%s10936_s10 + $0x5c8] sm:$0xff]  ;;  %v9225_v37 = vcombine.high %v6352_v31, %v6356_v32 }
 0x57b   : > { %v11621_v43 = vpack.c.bf16 %v6280_v47, %v6280_v47  ;;  %v11623_v44 = vpack.c.bf16 %v6282_v48, %v6282_v48  ;;  %v6484_v34 = vld [vmem:[%s10936_s10 + $0x5e8] sm:$0xff]  ;;  %v9224_v47 = vcombine.low %v6352_v31, %v6356_v32 }
 0x57c   : > { %v9353_v38 = vcombine.high %v6480_v33, %v6484_v34  ;;  %v6360_v39 = vld [vmem:[%s10936_s10 + $0x208] sm:$0xff]  ;;  %v9352_v48 = vcombine.low %v6480_v33, %v6484_v34 }
 0x57d   : > { %7863 = vmatprep.mubr.bf16.mxu0 %v11621_v43  ;;  %7904 = vmatprep.mubr.bf16.mxu1 %v11623_v44  ;;  %v6364_v40 = vld [vmem:[%s10936_s10 + $0x228] sm:$0xff] }
 0x57e   : > { %7864 = vmatmul.mubr.bf16.vlgmr.msra.gmra.mrb[4].mxu0 %v11625_v45  ;;  %7905 = vmatmul.mubr.bf16.vlgmr.msra.gmra.mrb[4].mxu1 %v11627_v51  ;;  %v6488_v41 = vld [vmem:[%s10936_s10 + $0x608] sm:$0xff]  ;;  %v9233_v57 = vcombine.high %v6360_v39, %v6364_v40 }
 0x57f   : > { %7914 = vmatpush1.bf16.msra.mxu0 %v9168_v53  ;;  %7955 = vmatpush1.bf16.msra.mxu1 %v9296_v12  ;;  %v6336_v53 = vld [vmem:[%s10936_s10 + $0x148] sm:$0xff] }
 0x580   : > { %7945 = vmatprep.mubr.bf16.mxu0 %v11621_v43  ;;  %7986 = vmatprep.mubr.bf16.mxu1 %v11623_v44  ;;  %v6340_v12 = vld [vmem:[%s10936_s10 + $0x168] sm:$0xff] }
 0x581   : > { %7915 = vmatprep.subr.bf16.mxu0 %v9177_v54  ;;  %7956 = vmatprep.subr.bf16.mxu1 %v9305_v55  ;;  %v9209_v26 = vcombine.high %v6336_v53, %v6340_v12  ;;  %v9208_v16 = vcombine.low %v6336_v53, %v6340_v12  ;;  %v6492_v46 = vld [vmem:[%s10936_s10 + $0x628] sm:$0xff]  ;;  %v9232_v55 = vcombine.low %v6360_v39, %v6364_v40 }
 0x582   : > { %v9361_v49 = vcombine.high %v6488_v41, %v6492_v46  ;;  %v6500_v54 = vld [vmem:[%s10936_s10 + $0x668] sm:$0xff]  ;;  %v9360_v56 = vcombine.low %v6488_v41, %v6492_v46 }
 0x583   : > { %7916 = vmatpush1.bf16.msra.mxu0 %v9176_v60  ;;  %7957 = vmatpush1.bf16.msra.mxu1 %v9304_v61  ;;  %v9369_v59 = vcombine.high %v6496_v52, %v6500_v54  ;;  %v6376_v60 = vld [vmem:[%s10936_s10 + $0x288] sm:$0xff]  ;;  %v9368_v3 = vcombine.low %v6496_v52, %v6500_v54 }
 0x584   : > { %7917 = vmatprep.subr.bf16.mxu0 %v9185_v63  ;;  %7958 = vmatprep.subr.bf16.mxu1 %v9313_v0  ;;  %v6380_v61 = vld [vmem:[%s10936_s10 + $0x2a8] sm:$0xff] }
 0x585   : > { %v6504_v63 = vld [vmem:[%s10936_s10 + $0x688] sm:$0xff]  ;;  %v9249_v62 = vcombine.high %v6376_v60, %v6380_v61  ;;  %v9248_v4 = vcombine.low %v6376_v60, %v6380_v61 }
 0x586   : > { %v6508_v0 = vld [vmem:[%s10936_s10 + $0x6a8] sm:$0xff] }
 0x587   : > { %7918 = vmatpush1.bf16.msra.mxu0 %v9184_v7  ;;  %7959 = vmatpush1.bf16.msra.mxu1 %v9312_v1  ;;  %v9377_v6 = vcombine.high %v6504_v63, %v6508_v0  ;;  %v6384_v7 = vld [vmem:[%s10936_s10 + $0x2c8] sm:$0xff]  ;;  %v9376_v11 = vcombine.low %v6504_v63, %v6508_v0 }
 0x588   : > { %7919 = vmatprep.subr.bf16.mxu0 %v9193_v8  ;;  %7960 = vmatprep.subr.bf16.mxu1 %v9321_v10  ;;  %v6388_v1 = vld [vmem:[%s10936_s10 + $0x2e8] sm:$0xff] }
 0x589   : > { %v6512_v8 = vld [vmem:[%s10936_s10 + $0x6c8] sm:$0xff]  ;;  %v9257_v14 = vcombine.high %v6384_v7, %v6388_v1  ;;  %v9256_v53 = vcombine.low %v6384_v7, %v6388_v1 }
 0x58a   : > { %v6516_v10 = vld [vmem:[%s10936_s10 + $0x6e8] sm:$0xff] }
 0x58b   : > { %7920 = vmatpush1.bf16.msra.mxu0 %v9192_v15  ;;  %7961 = vmatpush1.bf16.msra.mxu1 %v9320_v18  ;;  %v9385_v5 = vcombine.high %v6512_v8, %v6516_v10  ;;  %v6392_v15 = vld [vmem:[%s10936_s10 + $0x308] sm:$0xff]  ;;  %v9384_v12 = vcombine.low %v6512_v8, %v6516_v10 }
 0x58c   : > { %7921 = vmatprep.subr.bf16.mxu0 %v9201_v22  ;;  %7962 = vmatprep.subr.bf16.mxu1 %v9329_v9  ;;  %v6396_v18 = vld [vmem:[%s10936_s10 + $0x328] sm:$0xff] }
 0x58d   : > { %v6520_v22 = vld [vmem:[%s10936_s10 + $0x708] sm:$0xff]  ;;  %v9265_v23 = vcombine.high %v6392_v15, %v6396_v18  ;;  %v9264_v27 = vcombine.low %v6392_v15, %v6396_v18 }
 0x58e   : > { %v6524_v9 = vld [vmem:[%s10936_s10 + $0x728] sm:$0xff] }
 0x58f   : > { %7922 = vmatpush1.bf16.msra.mxu0 %v9200_v17  ;;  %7963 = vmatpush1.bf16.msra.mxu1 %v9328_v25  ;;  %v9393_v24 = vcombine.high %v6520_v22, %v6524_v9  ;;  %v6400_v17 = vld [vmem:[%s10936_s10 + $0x348] sm:$0xff]  ;;  %v9392_v28 = vcombine.low %v6520_v22, %v6524_v9 }
 0x590   : > { %7923 = vmatprep.subr.bf16.mxu0 %v9209_v26  ;;  %7964 = vmatprep.subr.bf16.mxu1 %v9337_v19  ;;  %v6404_v25 = vld [vmem:[%s10936_s10 + $0x368] sm:$0xff] }
 0x591   : > { %v6528_v26 = vld [vmem:[%s10936_s10 + $0x748] sm:$0xff]  ;;  %v9273_v20 = vcombine.high %v6400_v17, %v6404_v25  ;;  %v9272_v31 = vcombine.low %v6400_v17, %v6404_v25 }
 0x592   : > { %v6532_v19 = vld [vmem:[%s10936_s10 + $0x768] sm:$0xff] }
 0x593   : > { %7924 = vmatpush1.bf16.msra.mxu0 %v9208_v16  ;;  %7965 = vmatpush1.bf16.msra.mxu1 %v9336_v13  ;;  %v9401_v29 = vcombine.high %v6528_v26, %v6532_v19  ;;  %v6408_v16 = vld [vmem:[%s10936_s10 + $0x388] sm:$0xff]  ;;  %v9400_v32 = vcombine.low %v6528_v26, %v6532_v19 }
 0x594   : > { %7925 = vmatprep.subr.bf16.mxu0 %v9217_v21  ;;  %7966 = vmatprep.subr.bf16.mxu1 %v9345_v30  ;;  %v6412_v13 = vld [vmem:[%s10936_s10 + $0x3a8] sm:$0xff] }
 0x595   : > { %v6536_v21 = vld [vmem:[%s10936_s10 + $0x788] sm:$0xff]  ;;  %v9281_v33 = vcombine.high %v6408_v16, %v6412_v13  ;;  %v9280_v39 = vcombine.low %v6408_v16, %v6412_v13 }
 0x596   : > { %v6540_v30 = vld [vmem:[%s10936_s10 + $0x7a8] sm:$0xff] }
 0x597   : > { %7926 = vmatpush1.bf16.msra.mxu0 %v9216_v35  ;;  %7967 = vmatpush1.bf16.msra.mxu1 %v9344_v36  ;;  %v9409_v34 = vcombine.high %v6536_v21, %v6540_v30  ;;  %v6416_v35 = vld [vmem:[%s10936_s10 + $0x3c8] sm:$0xff]  ;;  %v9408_v40 = vcombine.low %v6536_v21, %v6540_v30 }
 0x598   : > { %7927 = vmatprep.subr.bf16.mxu0 %v9225_v37  ;;  %7968 = vmatprep.subr.bf16.mxu1 %v9353_v38  ;;  %v6420_v36 = vld [vmem:[%s10936_s10 + $0x3e8] sm:$0xff] }
 0x599   : > { %v6544_v37 = vld [vmem:[%s10936_s10 + $0x7c8] sm:$0xff]  ;;  %v9289_v41 = vcombine.high %v6416_v35, %v6420_v36  ;;  %v9288_v50 = vcombine.low %v6416_v35, %v6420_v36 }
 0x59a   : > { %v6548_v38 = vld [vmem:[%s10936_s10 + $0x7e8] sm:$0xff] }
 0x59b   : > { %7928 = vmatpush1.bf16.msra.mxu0 %v9224_v47  ;;  %7969 = vmatpush1.bf16.msra.mxu1 %v9352_v48  ;;  %v9417_v46 = vcombine.high %v6544_v37, %v6548_v38  ;;  %v6297_v47 = vld [vmem:[%s10936_s10 + $0x10] sm:$0xff]  ;;  %v9416_v42 = vcombine.low %v6544_v37, %v6548_v38 }
 0x59c   : > { %7929 = vmatprep.subr.bf16.mxu0 %v9233_v57  ;;  %7970 = vmatprep.subr.bf16.mxu1 %v9361_v49  ;;  %v6301_v48 = vld [vmem:[%s10936_s10 + $0x30] sm:$0xff] }
 0x59d   : > { %v6425_v57 = vld [vmem:[%s10936_s10 + $0x410] sm:$0xff]  ;;  %v9171_v52 = vcombine.high %v6297_v47, %v6301_v48  ;;  %v9170_v60 = vcombine.low %v6297_v47, %v6301_v48 }
 0x59e   : > { %v6429_v49 = vld [vmem:[%s10936_s10 + $0x430] sm:$0xff] }
 0x59f   : > { %7930 = vmatpush1.bf16.msra.mxu0 %v9232_v55  ;;  %7971 = vmatpush1.bf16.msra.mxu1 %v9360_v56  ;;  %v9299_v54 = vcombine.high %v6425_v57, %v6429_v49  ;;  %v6305_v55 = vld [vmem:[%s10936_s10 + $0x50] sm:$0xff]  ;;  %v9298_v61 = vcombine.low %v6425_v57, %v6429_v49 }
 0x5a0   : > { %7931 = vmatprep.subr.bf16.mxu0 %v9241_v58  ;;  %7972 = vmatprep.subr.bf16.mxu1 %v9369_v59  ;;  %v6309_v56 = vld [vmem:[%s10936_s10 + $0x70] sm:$0xff] }
 0x5a1   : > { %v6433_v58 = vld [vmem:[%s10936_s10 + $0x450] sm:$0xff]  ;;  %v9179_v63 = vcombine.high %v6305_v55, %v6309_v56  ;;  %v9178_v7 = vcombine.low %v6305_v55, %v6309_v56 }
 0x5a2   : > { %v6437_v59 = vld [vmem:[%s10936_s10 + $0x470] sm:$0xff] }
 0x5a3   : > { %7932 = vmatpush1.bf16.msra.mxu0 %v9240_v2  ;;  %7973 = vmatpush1.bf16.msra.mxu1 %v9368_v3  ;;  %v9307_v0 = vcombine.high %v6433_v58, %v6437_v59  ;;  %v6313_v2 = vld [vmem:[%s10936_s10 + $0x90] sm:$0xff]  ;;  %v9306_v1 = vcombine.low %v6433_v58, %v6437_v59 }
 0x5a4   : > { %7933 = vmatprep.subr.bf16.mxu0 %v9249_v62  ;;  %7974 = vmatprep.subr.bf16.mxu1 %v9377_v6  ;;  %v6317_v3 = vld [vmem:[%s10936_s10 + $0xb0] sm:$0xff] }
 0x5a5   : > { %v6441_v62 = vld [vmem:[%s10936_s10 + $0x490] sm:$0xff]  ;;  %v9187_v8 = vcombine.high %v6313_v2, %v6317_v3  ;;  %v9186_v15 = vcombine.low %v6313_v2, %v6317_v3 }
 0x5a6   : > { %v6445_v6 = vld [vmem:[%s10936_s10 + $0x4b0] sm:$0xff] }
 0x5a7   : > { %7934 = vmatpush1.bf16.msra.mxu0 %v9248_v4  ;;  %7975 = vmatpush1.bf16.msra.mxu1 %v9376_v11  ;;  %v9315_v10 = vcombine.high %v6441_v62, %v6445_v6  ;;  %v6321_v4 = vld [vmem:[%s10936_s10 + $0xd0] sm:$0xff]  ;;  %v9314_v18 = vcombine.low %v6441_v62, %v6445_v6 }
 0x5a8   : > { %7935 = vmatprep.subr.bf16.mxu0 %v9257_v14  ;;  %7976 = vmatprep.subr.bf16.mxu1 %v9385_v5  ;;  %v6325_v11 = vld [vmem:[%s10936_s10 + $0xf0] sm:$0xff] }
 0x5a9   : > { %v6449_v14 = vld [vmem:[%s10936_s10 + $0x4d0] sm:$0xff]  ;;  %v9195_v22 = vcombine.high %v6321_v4, %v6325_v11  ;;  %v9194_v17 = vcombine.low %v6321_v4, %v6325_v11 }
 0x5aa   : > { %v6453_v5 = vld [vmem:[%s10936_s10 + $0x4f0] sm:$0xff] }
 0x5ab   : > { %7936 = vmatpush1.bf16.msra.mxu0 %v9256_v53  ;;  %7977 = vmatpush1.bf16.msra.mxu1 %v9384_v12  ;;  %v9323_v9 = vcombine.high %v6449_v14, %v6453_v5  ;;  %v6329_v53 = vld [vmem:[%s10936_s10 + $0x110] sm:$0xff]  ;;  %v9322_v25 = vcombine.low %v6449_v14, %v6453_v5 }
 0x5ac   : > { %7937 = vmatprep.subr.bf16.mxu0 %v9265_v23  ;;  %7978 = vmatprep.subr.bf16.mxu1 %v9393_v24  ;;  %v6333_v12 = vld [vmem:[%s10936_s10 + $0x130] sm:$0xff] }
 0x5ad   : > { %v6457_v23 = vld [vmem:[%s10936_s10 + $0x510] sm:$0xff]  ;;  %v9203_v26 = vcombine.high %v6329_v53, %v6333_v12  ;;  %v9202_v16 = vcombine.low %v6329_v53, %v6333_v12 }
 0x5ae   : > { %v6461_v24 = vld [vmem:[%s10936_s10 + $0x530] sm:$0xff] }
 0x5af   : > { %7938 = vmatpush1.bf16.msra.mxu0 %v9264_v27  ;;  %7979 = vmatpush1.bf16.msra.mxu1 %v9392_v28  ;;  %v9331_v19 = vcombine.high %v6457_v23, %v6461_v24  ;;  %v6337_v27 = vld [vmem:[%s10936_s10 + $0x150] sm:$0xff]  ;;  %v9330_v13 = vcombine.low %v6457_v23, %v6461_v24 }
 0x5b0   : > { %7939 = vmatprep.subr.bf16.mxu0 %v9273_v20  ;;  %7980 = vmatprep.subr.bf16.mxu1 %v9401_v29  ;;  %v6341_v28 = vld [vmem:[%s10936_s10 + $0x170] sm:$0xff] }
 0x5b1   : > { %v6465_v20 = vld [vmem:[%s10936_s10 + $0x550] sm:$0xff]  ;;  %v9211_v21 = vcombine.high %v6337_v27, %v6341_v28  ;;  %v9210_v35 = vcombine.low %v6337_v27, %v6341_v28 }
 0x5b2   : > { %v6469_v29 = vld [vmem:[%s10936_s10 + $0x570] sm:$0xff] }
 0x5b3   : > { %7940 = vmatpush1.bf16.msra.mxu0 %v9272_v31  ;;  %7981 = vmatpush1.bf16.msra.mxu1 %v9400_v32  ;;  %v9339_v30 = vcombine.high %v6465_v20, %v6469_v29  ;;  %v6345_v31 = vld [vmem:[%s10936_s10 + $0x190] sm:$0xff]  ;;  %v9338_v36 = vcombine.low %v6465_v20, %v6469_v29 }
 0x5b4   : > { %7941 = vmatprep.subr.bf16.mxu0 %v9281_v33  ;;  %7982 = vmatprep.subr.bf16.mxu1 %v9409_v34  ;;  %v6349_v32 = vld [vmem:[%s10936_s10 + $0x1b0] sm:$0xff] }
 0x5b5   : > { %v6473_v33 = vld [vmem:[%s10936_s10 + $0x590] sm:$0xff]  ;;  %v9219_v37 = vcombine.high %v6345_v31, %v6349_v32  ;;  %v9218_v47 = vcombine.low %v6345_v31, %v6349_v32 }
 0x5b6   : > { %v6477_v34 = vld [vmem:[%s10936_s10 + $0x5b0] sm:$0xff] }
 0x5b7   : > { %7942 = vmatpush1.bf16.msra.mxu0 %v9280_v39  ;;  %7983 = vmatpush1.bf16.msra.mxu1 %v9408_v40  ;;  %v9347_v38 = vcombine.high %v6473_v33, %v6477_v34  ;;  %v6353_v39 = vld [vmem:[%s10936_s10 + $0x1d0] sm:$0xff]  ;;  %v9346_v48 = vcombine.low %v6473_v33, %v6477_v34 }
 0x5b8   : > { %7943 = vmatprep.subr.bf16.mxu0 %v9289_v41  ;;  %7984 = vmatprep.subr.bf16.mxu1 %v9417_v46  ;;  %v6357_v40 = vld [vmem:[%s10936_s10 + $0x1f0] sm:$0xff] }
 0x5b9   : > { %v6481_v41 = vld [vmem:[%s10936_s10 + $0x5d0] sm:$0xff]  ;;  %v9227_v57 = vcombine.high %v6353_v39, %v6357_v40  ;;  %v9226_v55 = vcombine.low %v6353_v39, %v6357_v40 }
 0x5ba   : > { %v6485_v46 = vld [vmem:[%s10936_s10 + $0x5f0] sm:$0xff] }
 0x5bb   : > { %7944 = vmatpush1.bf16.msra.mxu0 %v9288_v50  ;;  %7985 = vmatpush1.bf16.msra.mxu1 %v9416_v42  ;;  %v9355_v49 = vcombine.high %v6481_v41, %v6485_v46  ;;  %v6361_v50 = vld [vmem:[%s10936_s10 + $0x210] sm:$0xff]  ;;  %v9354_v56 = vcombine.low %v6481_v41, %v6485_v46 }
 0x5bc   : > { %7995 = vmatprep.subr.bf16.mxu0 %v9171_v52  ;;  %8036 = vmatprep.subr.bf16.mxu1 %v9299_v54  ;;  %v6365_v42 = vld [vmem:[%s10936_s10 + $0x230] sm:$0xff] }
 0x5bd   : > { %v6489_v52 = vld [vmem:[%s10936_s10 + $0x610] sm:$0xff]  ;;  %v9235_v58 = vcombine.high %v6361_v50, %v6365_v42  ;;  %v9234_v2 = vcombine.low %v6361_v50, %v6365_v42 }
 0x5be   : > { %7946 = vmatmul.mubr.bf16.vlgmr.msra.gmra.mrb[8].mxu0 %v11625_v45  ;;  %7987 = vmatmul.mubr.bf16.vlgmr.msra.gmra.mrb[8].mxu1 %v11627_v51  ;;  %v6493_v54 = vld [vmem:[%s10936_s10 + $0x630] sm:$0xff] }
 0x5bf   : > { %7996 = vmatpush1.bf16.msra.mxu0 %v9170_v60  ;;  %8027 = vmatprep.mubr.bf16.mxu0 %v11621_v43  ;;  %v9363_v59 = vcombine.high %v6489_v52, %v6493_v54  ;;  %v6369_v60 = vld [vmem:[%s10936_s10 + $0x250] sm:$0xff]  ;;  %v9362_v3 = vcombine.low %v6489_v52, %v6493_v54 }
 0x5c0   : > { %8037 = vmatpush1.bf16.msra.mxu1 %v9298_v61  ;;  %8068 = vmatprep.mubr.bf16.mxu1 %v11623_v44  ;;  %v6373_v61 = vld [vmem:[%s10936_s10 + $0x270] sm:$0xff] }
 0x5c1   : > { %7997 = vmatprep.subr.bf16.mxu0 %v9179_v63  ;;  %8038 = vmatprep.subr.bf16.mxu1 %v9307_v0  ;;  %v6497_v63 = vld [vmem:[%s10936_s10 + $0x650] sm:$0xff]  ;;  %v9243_v62 = vcombine.high %v6369_v60, %v6373_v61  ;;  %v9242_v4 = vcombine.low %v6369_v60, %v6373_v61 }
 0x5c2   : > { %v6501_v0 = vld [vmem:[%s10936_s10 + $0x670] sm:$0xff] }
 0x5c3   : > { %7998 = vmatpush1.bf16.msra.mxu0 %v9178_v7  ;;  %v9371_v6 = vcombine.high %v6497_v63, %v6501_v0  ;;  %v6377_v7 = vld [vmem:[%s10936_s10 + $0x290] sm:$0xff]  ;;  %v9370_v11 = vcombine.low %v6497_v63, %v6501_v0 }
 0x5c4   : > { %8039 = vmatpush1.bf16.msra.mxu1 %v9306_v1  ;;  %7999 = vmatprep.subr.bf16.mxu0 %v9187_v8  ;;  %v6381_v1 = vld [vmem:[%s10936_s10 + $0x2b0] sm:$0xff] }
 0x5c5   : > { %8040 = vmatprep.subr.bf16.mxu1 %v9315_v10  ;;  %v6505_v8 = vld [vmem:[%s10936_s10 + $0x690] sm:$0xff]  ;;  %v9251_v14 = vcombine.high %v6377_v7, %v6381_v1  ;;  %v9250_v53 = vcombine.low %v6377_v7, %v6381_v1  ;;  %v6438_v7 = vld [vmem:[%s10936_s10 + $0x478] sm:$0xff] }
 0x5c6   : > { %v6509_v10 = vld [vmem:[%s10936_s10 + $0x6b0] sm:$0xff] }
 0x5c7   : > { %8000 = vmatpush1.bf16.msra.mxu0 %v9186_v15  ;;  %v9379_v5 = vcombine.high %v6505_v8, %v6509_v10  ;;  %v6385_v15 = vld [vmem:[%s10936_s10 + $0x2d0] sm:$0xff]  ;;  %v9378_v12 = vcombine.low %v6505_v8, %v6509_v10  ;;  %v6314_v10 = vld [vmem:[%s10936_s10 + $0x98] sm:$0xff] }
 0x5c8   : > { %8041 = vmatpush1.bf16.msra.mxu1 %v9314_v18  ;;  %8001 = vmatprep.subr.bf16.mxu0 %v9195_v22  ;;  %v6389_v18 = vld [vmem:[%s10936_s10 + $0x2f0] sm:$0xff] }
 0x5c9   : > { %8042 = vmatprep.subr.bf16.mxu1 %v9323_v9  ;;  %v6513_v22 = vld [vmem:[%s10936_s10 + $0x6d0] sm:$0xff]  ;;  %v9259_v23 = vcombine.high %v6385_v15, %v6389_v18  ;;  %v9258_v27 = vcombine.low %v6385_v15, %v6389_v18 }
 0x5ca   : > { %v6517_v9 = vld [vmem:[%s10936_s10 + $0x6f0] sm:$0xff] }
 0x5cb   : > { %8002 = vmatpush1.bf16.msra.mxu0 %v9194_v17  ;;  %v9387_v24 = vcombine.high %v6513_v22, %v6517_v9  ;;  %v6393_v17 = vld [vmem:[%s10936_s10 + $0x310] sm:$0xff]  ;;  %v9386_v28 = vcombine.low %v6513_v22, %v6517_v9 }
 0x5cc   : > { %8043 = vmatpush1.bf16.msra.mxu1 %v9322_v25  ;;  %8003 = vmatprep.subr.bf16.mxu0 %v9203_v26  ;;  %v6397_v25 = vld [vmem:[%s10936_s10 + $0x330] sm:$0xff] }
 0x5cd   : > { %8044 = vmatprep.subr.bf16.mxu1 %v9331_v19  ;;  %v6521_v26 = vld [vmem:[%s10936_s10 + $0x710] sm:$0xff]  ;;  %v9267_v20 = vcombine.high %v6393_v17, %v6397_v25  ;;  %v9266_v31 = vcombine.low %v6393_v17, %v6397_v25 }
 0x5ce   : > { %v6525_v19 = vld [vmem:[%s10936_s10 + $0x730] sm:$0xff] }
 0x5cf   : > { %8004 = vmatpush1.bf16.msra.mxu0 %v9202_v16  ;;  %v9395_v29 = vcombine.high %v6521_v26, %v6525_v19  ;;  %v6401_v16 = vld [vmem:[%s10936_s10 + $0x350] sm:$0xff]  ;;  %v9394_v32 = vcombine.low %v6521_v26, %v6525_v19  ;;  %v6330_v26 = vld [vmem:[%s10936_s10 + $0x118] sm:$0xff] }
 0x5d0   : > { %8045 = vmatpush1.bf16.msra.mxu1 %v9330_v13  ;;  %8005 = vmatprep.subr.bf16.mxu0 %v9211_v21  ;;  %v6405_v13 = vld [vmem:[%s10936_s10 + $0x370] sm:$0xff]  ;;  %v6334_v19 = vld [vmem:[%s10936_s10 + $0x138] sm:$0xff] }
 0x5d1   : > { %8046 = vmatprep.subr.bf16.mxu1 %v9339_v30  ;;  %v6529_v21 = vld [vmem:[%s10936_s10 + $0x750] sm:$0xff]  ;;  %v9275_v33 = vcombine.high %v6401_v16, %v6405_v13  ;;  %v9274_v39 = vcombine.low %v6401_v16, %v6405_v13  ;;  %v9205_v16 = vcombine.high %v6330_v26, %v6334_v19 }
 0x5d2   : > { %v6533_v30 = vld [vmem:[%s10936_s10 + $0x770] sm:$0xff] }
 0x5d3   : > { %8006 = vmatpush1.bf16.msra.mxu0 %v9210_v35  ;;  %v9403_v34 = vcombine.high %v6529_v21, %v6533_v30  ;;  %v6409_v35 = vld [vmem:[%s10936_s10 + $0x390] sm:$0xff]  ;;  %v9402_v40 = vcombine.low %v6529_v21, %v6533_v30  ;;  %v6338_v21 = vld [vmem:[%s10936_s10 + $0x158] sm:$0xff] }
 0x5d4   : > { %8047 = vmatpush1.bf16.msra.mxu1 %v9338_v36  ;;  %8007 = vmatprep.subr.bf16.mxu0 %v9219_v37  ;;  %v6413_v36 = vld [vmem:[%s10936_s10 + $0x3b0] sm:$0xff]  ;;  %v6342_v30 = vld [vmem:[%s10936_s10 + $0x178] sm:$0xff] }
 0x5d5   : > { %8048 = vmatprep.subr.bf16.mxu1 %v9347_v38  ;;  %v6537_v37 = vld [vmem:[%s10936_s10 + $0x790] sm:$0xff]  ;;  %v9283_v41 = vcombine.high %v6409_v35, %v6413_v36  ;;  %v9282_v50 = vcombine.low %v6409_v35, %v6413_v36  ;;  %v9213_v35 = vcombine.high %v6338_v21, %v6342_v30 }
 0x5d6   : > { %v6541_v38 = vld [vmem:[%s10936_s10 + $0x7b0] sm:$0xff] }
 0x5d7   : > { %8008 = vmatpush1.bf16.msra.mxu0 %v9218_v47  ;;  %v9411_v46 = vcombine.high %v6537_v37, %v6541_v38  ;;  %v6417_v47 = vld [vmem:[%s10936_s10 + $0x3d0] sm:$0xff]  ;;  %v9410_v42 = vcombine.low %v6537_v37, %v6541_v38  ;;  %v6346_v37 = vld [vmem:[%s10936_s10 + $0x198] sm:$0xff] }
 0x5d8   : > { %8049 = vmatpush1.bf16.msra.mxu1 %v9346_v48  ;;  %8009 = vmatprep.subr.bf16.mxu0 %v9227_v57  ;;  %v6421_v48 = vld [vmem:[%s10936_s10 + $0x3f0] sm:$0xff]  ;;  %v6350_v38 = vld [vmem:[%s10936_s10 + $0x1b8] sm:$0xff] }
 0x5d9   : > { %8050 = vmatprep.subr.bf16.mxu1 %v9355_v49  ;;  %v6545_v57 = vld [vmem:[%s10936_s10 + $0x7d0] sm:$0xff]  ;;  %v9291_v52 = vcombine.high %v6417_v47, %v6421_v48  ;;  %v9290_v60 = vcombine.low %v6417_v47, %v6421_v48  ;;  %v9221_v47 = vcombine.high %v6346_v37, %v6350_v38 }
 0x5da   : > { %v6549_v49 = vld [vmem:[%s10936_s10 + $0x7f0] sm:$0xff] }
 0x5db   : > { %8010 = vmatpush1.bf16.msra.mxu0 %v9226_v55  ;;  %v9419_v54 = vcombine.high %v6545_v57, %v6549_v49  ;;  %v6298_v55 = vld [vmem:[%s10936_s10 + $0x18] sm:$0xff]  ;;  %v9418_v61 = vcombine.low %v6545_v57, %v6549_v49 }
 0x5dc   : > { %8051 = vmatpush1.bf16.msra.mxu1 %v9354_v56  ;;  %8011 = vmatprep.subr.bf16.mxu0 %v9235_v58  ;;  %v6302_v56 = vld [vmem:[%s10936_s10 + $0x38] sm:$0xff] }
 0x5dd   : > { %8052 = vmatprep.subr.bf16.mxu1 %v9363_v59  ;;  %v6426_v58 = vld [vmem:[%s10936_s10 + $0x418] sm:$0xff]  ;;  %v9173_v63 = vcombine.high %v6298_v55, %v6302_v56 }
 0x5de   : > { %v6430_v59 = vld [vmem:[%s10936_s10 + $0x438] sm:$0xff] }
 0x5df   : > { %8012 = vmatpush1.bf16.msra.mxu0 %v9234_v2  ;;  %v9301_v0 = vcombine.high %v6426_v58, %v6430_v59  ;;  %v6306_v2 = vld [vmem:[%s10936_s10 + $0x58] sm:$0xff]  ;;  %v9300_v1 = vcombine.low %v6426_v58, %v6430_v59 }
 0x5e0   : > { %8053 = vmatpush1.bf16.msra.mxu1 %v9362_v3  ;;  %8013 = vmatprep.subr.bf16.mxu0 %v9243_v62  ;;  %v6310_v3 = vld [vmem:[%s10936_s10 + $0x78] sm:$0xff]  ;;  %v9172_v62 = vcombine.low %v6298_v55, %v6302_v56 }
 0x5e1   : > { %8054 = vmatprep.subr.bf16.mxu1 %v9371_v6  ;;  %v6434_v6 = vld [vmem:[%s10936_s10 + $0x458] sm:$0xff]  ;;  %v9181_v8 = vcombine.high %v6306_v2, %v6310_v3  ;;  %v9180_v15 = vcombine.low %v6306_v2, %v6310_v3 }
 0x5e2   : > { %v9308_v18 = vcombine.low %v6434_v6, %v6438_v7  ;;  %v6354_v57 = vld [vmem:[%s10936_s10 + $0x1d8] sm:$0xff] }
 0x5e3   : > { %8014 = vmatpush1.bf16.msra.mxu0 %v9242_v4  ;;  %v6318_v4 = vld [vmem:[%s10936_s10 + $0xb8] sm:$0xff] }
 0x5e4   : > { %8055 = vmatpush1.bf16.msra.mxu1 %v9370_v11  ;;  %8015 = vmatprep.subr.bf16.mxu0 %v9251_v14  ;;  %v9309_v11 = vcombine.high %v6434_v6, %v6438_v7  ;;  %v6442_v14 = vld [vmem:[%s10936_s10 + $0x498] sm:$0xff]  ;;  %v9189_v22 = vcombine.high %v6314_v10, %v6318_v4  ;;  %v9188_v17 = vcombine.low %v6314_v10, %v6318_v4 }
 0x5e5   : > { %8056 = vmatprep.subr.bf16.mxu1 %v9379_v5  ;;  %v6446_v5 = vld [vmem:[%s10936_s10 + $0x4b8] sm:$0xff] }
 0x5e6   : > { %v9317_v9 = vcombine.high %v6442_v14, %v6446_v5  ;;  %v6358_v49 = vld [vmem:[%s10936_s10 + $0x1f8] sm:$0xff] }
 0x5e7   : > { %8016 = vmatpush1.bf16.msra.mxu0 %v9250_v53  ;;  %v6322_v53 = vld [vmem:[%s10936_s10 + $0xd8] sm:$0xff]  ;;  %v9229_v55 = vcombine.high %v6354_v57, %v6358_v49 }
 0x5e8   : > { %8057 = vmatpush1.bf16.msra.mxu1 %v9378_v12  ;;  %8017 = vmatprep.subr.bf16.mxu0 %v9259_v23  ;;  %v6326_v12 = vld [vmem:[%s10936_s10 + $0xf8] sm:$0xff] }
 0x5e9   : > { %8058 = vmatprep.subr.bf16.mxu1 %v9387_v24  ;;  %v6450_v23 = vld [vmem:[%s10936_s10 + $0x4d8] sm:$0xff]  ;;  %v9197_v25 = vcombine.high %v6322_v53, %v6326_v12 }
 0x5ea   : > { %v6454_v24 = vld [vmem:[%s10936_s10 + $0x4f8] sm:$0xff] }
 0x5eb   : > { %8018 = vmatpush1.bf16.msra.mxu0 %v9258_v27  ;;  %v6458_v27 = vld [vmem:[%s10936_s10 + $0x518] sm:$0xff] }
 0x5ec   : > { %8059 = vmatpush1.bf16.msra.mxu1 %v9386_v28  ;;  %8019 = vmatprep.subr.bf16.mxu0 %v9267_v20  ;;  %v6462_v28 = vld [vmem:[%s10936_s10 + $0x538] sm:$0xff]  ;;  %v9196_v20 = vcombine.low %v6322_v53, %v6326_v12 }
 0x5ed   : > { %8060 = vmatprep.subr.bf16.mxu1 %v9395_v29  ;;  %v9324_v29 = vcombine.low %v6450_v23, %v6454_v24  ;;  %v9333_v13 = vcombine.high %v6458_v27, %v6462_v28  ;;  %v6362_v58 = vld [vmem:[%s10936_s10 + $0x218] sm:$0xff] }
 0x5ee   : > { %v6366_v59 = vld [vmem:[%s10936_s10 + $0x238] sm:$0xff] }
 0x5ef   : > { %8020 = vmatpush1.bf16.msra.mxu0 %v9266_v31  ;;  %v6466_v31 = vld [vmem:[%s10936_s10 + $0x558] sm:$0xff]  ;;  %v9237_v2 = vcombine.high %v6362_v58, %v6366_v59 }
 0x5f0   : > { %8061 = vmatpush1.bf16.msra.mxu1 %v9394_v32  ;;  %8021 = vmatprep.subr.bf16.mxu0 %v9275_v33  ;;  %v6470_v32 = vld [vmem:[%s10936_s10 + $0x578] sm:$0xff]  ;;  %v9204_v33 = vcombine.low %v6330_v26, %v6334_v19 }
 0x5f1   : > { %8062 = vmatprep.subr.bf16.mxu1 %v9403_v34  ;;  %v9332_v34 = vcombine.low %v6458_v27, %v6462_v28  ;;  %v9341_v36 = vcombine.high %v6466_v31, %v6470_v32  ;;  %v6374_v6 = vld [vmem:[%s10936_s10 + $0x278] sm:$0xff] }
 0x5f2   : > { %v6498_v7 = vld [vmem:[%s10936_s10 + $0x658] sm:$0xff] }
 0x5f3   : > { %8022 = vmatpush1.bf16.msra.mxu0 %v9274_v39  ;;  %v6474_v39 = vld [vmem:[%s10936_s10 + $0x598] sm:$0xff] }
 0x5f4   : > { %8063 = vmatpush1.bf16.msra.mxu1 %v9402_v40  ;;  %8023 = vmatprep.subr.bf16.mxu0 %v9283_v41  ;;  %v6478_v40 = vld [vmem:[%s10936_s10 + $0x5b8] sm:$0xff]  ;;  %v9212_v41 = vcombine.low %v6338_v21, %v6342_v30 }
 0x5f5   : > { %8064 = vmatprep.subr.bf16.mxu1 %v9411_v46  ;;  %v9340_v46 = vcombine.low %v6466_v31, %v6470_v32  ;;  %v9349_v48 = vcombine.high %v6474_v39, %v6478_v40  ;;  %v6394_v27 = vld [vmem:[%s10936_s10 + $0x318] sm:$0xff] }
 0x5f6   : > { %v6398_v28 = vld [vmem:[%s10936_s10 + $0x338] sm:$0xff] }
 0x5f7   : > { %8024 = vmatpush1.bf16.msra.mxu0 %v9282_v50  ;;  %v6482_v50 = vld [vmem:[%s10936_s10 + $0x5d8] sm:$0xff]  ;;  %v9269_v21 = vcombine.high %v6394_v27, %v6398_v28 }
 0x5f8   : > { %8065 = vmatpush1.bf16.msra.mxu1 %v9410_v42  ;;  %8025 = vmatprep.subr.bf16.mxu0 %v9291_v52  ;;  %v6486_v42 = vld [vmem:[%s10936_s10 + $0x5f8] sm:$0xff]  ;;  %v9220_v52 = vcombine.low %v6346_v37, %v6350_v38 }
 0x5f9   : > { %8066 = vmatprep.subr.bf16.mxu1 %v9419_v54  ;;  %v9348_v54 = vcombine.low %v6474_v39, %v6478_v40  ;;  %v9357_v56 = vcombine.high %v6482_v50, %v6486_v42  ;;  %v6402_v31 = vld [vmem:[%s10936_s10 + $0x358] sm:$0xff] }
 0x5fa   : > { %v6406_v32 = vld [vmem:[%s10936_s10 + $0x378] sm:$0xff] }
 0x5fb   : > { %8026 = vmatpush1.bf16.msra.mxu0 %v9290_v60  ;;  %v6490_v60 = vld [vmem:[%s10936_s10 + $0x618] sm:$0xff]  ;;  %v9277_v37 = vcombine.high %v6402_v31, %v6406_v32 }
 0x5fc   : > { %8067 = vmatpush1.bf16.msra.mxu1 %v9418_v61  ;;  %8077 = vmatprep.subr.bf16.mxu0 %v9173_v63  ;;  %v6494_v61 = vld [vmem:[%s10936_s10 + $0x638] sm:$0xff]  ;;  %v9228_v63 = vcombine.low %v6354_v57, %v6358_v49 }
 0x5fd   : > { %8118 = vmatprep.subr.bf16.mxu1 %v9301_v0  ;;  %v9356_v0 = vcombine.low %v6482_v50, %v6486_v42  ;;  %v9365_v3 = vcombine.high %v6490_v60, %v6494_v61  ;;  %v9364_v10 = vcombine.low %v6490_v60, %v6494_v61  ;;  %v6410_v39 = vld [vmem:[%s10936_s10 + $0x398] sm:$0xff] }
 0x5fe   : > { %8028 = vmatmul.mubr.bf16.vlgmr.msra.gmra.mrb[12].mxu0 %v11625_v45  ;;  %v6414_v40 = vld [vmem:[%s10936_s10 + $0x3b8] sm:$0xff] }
 0x5ff   : > { %8069 = vmatmul.mubr.bf16.vlgmr.msra.gmra.mrb[12].mxu1 %v11627_v51  ;;  %8078 = vmatpush1.bf16.msra.mxu0 %v9172_v62  ;;  %v6370_v62 = vld [vmem:[%s10936_s10 + $0x258] sm:$0xff]  ;;  %v9285_v57 = vcombine.high %v6410_v39, %v6414_v40 }
 0x600   : > { %8109 = vmatprep.mubr.bf16.mxu0 %v11621_v43  ;;  %8119 = vmatpush1.bf16.msra.mxu1 %v9300_v1  ;;  %v9316_v43 = vcombine.low %v6442_v14, %v6446_v5  ;;  %v6502_v1 = vld [vmem:[%s10936_s10 + $0x678] sm:$0xff]  ;;  %v9245_v4 = vcombine.high %v6370_v62, %v6374_v6 }
 0x601   : > { %8150 = vmatprep.mubr.bf16.mxu1 %v11623_v44  ;;  %8079 = vmatprep.subr.bf16.mxu0 %v9181_v8  ;;  %v9325_v44 = vcombine.high %v6450_v23, %v6454_v24  ;;  %v9236_v8 = vcombine.low %v6362_v58, %v6366_v59  ;;  %v6378_v14 = vld [vmem:[%s10936_s10 + $0x298] sm:$0xff] }
 0x602   : > { %8120 = vmatprep.subr.bf16.mxu1 %v9309_v11  ;;  %v9373_v11 = vcombine.high %v6498_v7, %v6502_v1  ;;  %v6382_v5 = vld [vmem:[%s10936_s10 + $0x2b8] sm:$0xff] }
 0x603   : > { %8080 = vmatpush1.bf16.msra.mxu0 %v9180_v15  ;;  %v6506_v15 = vld [vmem:[%s10936_s10 + $0x698] sm:$0xff]  ;;  %v9253_v53 = vcombine.high %v6378_v14, %v6382_v5 }
 0x604   : > { %8121 = vmatpush1.bf16.msra.mxu1 %v9308_v18  ;;  %8081 = vmatprep.subr.bf16.mxu0 %v9189_v22  ;;  %v6510_v18 = vld [vmem:[%s10936_s10 + $0x6b8] sm:$0xff]  ;;  %v9244_v22 = vcombine.low %v6370_v62, %v6374_v6  ;;  %v6288_v6 = vld [vmem:[#allocation3 + $0x8] sm:$0xff] }
 0x605   : > { %8122 = vmatprep.subr.bf16.mxu1 %v9317_v9  ;;  %v9372_v9 = vcombine.low %v6498_v7, %v6502_v1  ;;  %v9381_v12 = vcombine.high %v6506_v15, %v6510_v18  ;;  %v6386_v23 = vld [vmem:[%s10936_s10 + $0x2d8] sm:$0xff] }
 0x606   : > { %v6390_v24 = vld [vmem:[%s10936_s10 + $0x2f8] sm:$0xff] }
 0x607   : > { %8082 = vmatpush1.bf16.msra.mxu0 %v9188_v17  ;;  %v6514_v17 = vld [vmem:[%s10936_s10 + $0x6d8] sm:$0xff]  ;;  %v9261_v26 = vcombine.high %v6386_v23, %v6390_v24 }
 0x608   : > { %8123 = vmatpush1.bf16.msra.mxu1 %v9316_v43  ;;  %8083 = vmatprep.subr.bf16.mxu0 %v9197_v25  ;;  %v6518_v43 = vld [vmem:[%s10936_s10 + $0x6f8] sm:$0xff]  ;;  %v9252_v25 = vcombine.low %v6378_v14, %v6382_v5 }
 0x609   : > { %8124 = vmatprep.subr.bf16.mxu1 %v9325_v44  ;;  %v9380_v44 = vcombine.low %v6506_v15, %v6510_v18  ;;  %v9389_v19 = vcombine.high %v6514_v17, %v6518_v43  ;;  %v6418_v50 = vld [vmem:[%s10936_s10 + $0x3d8] sm:$0xff] }
 0x60a   : > { %v6422_v42 = vld [vmem:[%s10936_s10 + $0x3f8] sm:$0xff] }
 0x60b   : > { %8084 = vmatpush1.bf16.msra.mxu0 %v9196_v20  ;;  %v6522_v20 = vld [vmem:[%s10936_s10 + $0x718] sm:$0xff]  ;;  %v9293_v58 = vcombine.high %v6418_v50, %v6422_v42  ;;  %v9292_v60 = vcombine.low %v6418_v50, %v6422_v42 }
 0x60c   : > { %8125 = vmatpush1.bf16.msra.mxu1 %v9324_v29  ;;  %8085 = vmatprep.subr.bf16.mxu0 %v9205_v16  ;;  %v6526_v29 = vld [vmem:[%s10936_s10 + $0x738] sm:$0xff]  ;;  %v9260_v16 = vcombine.low %v6386_v23, %v6390_v24 }
 0x60d   : > { %8126 = vmatprep.subr.bf16.mxu1 %v9333_v13  ;;  %v9388_v13 = vcombine.low %v6514_v17, %v6518_v43  ;;  %v9397_v30 = vcombine.high %v6522_v20, %v6526_v29 }
 0x60f   : > { %8086 = vmatpush1.bf16.msra.mxu0 %v9204_v33  ;;  %v6530_v33 = vld [vmem:[%s10936_s10 + $0x758] sm:$0xff] }
 0x610   : > { %8127 = vmatpush1.bf16.msra.mxu1 %v9332_v34  ;;  %8087 = vmatprep.subr.bf16.mxu0 %v9213_v35  ;;  %v6534_v34 = vld [vmem:[%s10936_s10 + $0x778] sm:$0xff]  ;;  %v9268_v35 = vcombine.low %v6394_v27, %v6398_v28 }
 0x611   : > { %8128 = vmatprep.subr.bf16.mxu1 %v9341_v36  ;;  %v9396_v36 = vcombine.low %v6522_v20, %v6526_v29  ;;  %v9405_v38 = vcombine.high %v6530_v33, %v6534_v34  ;;  %v6292_v29 = vld [vmem:[#allocation3 + $0x28] sm:$0xff] }
 0x613   : > { %8088 = vmatpush1.bf16.msra.mxu0 %v9212_v41  ;;  %v6538_v41 = vld [vmem:[%s10936_s10 + $0x798] sm:$0xff] }
 0x614   : > { %8129 = vmatpush1.bf16.msra.mxu1 %v9340_v46  ;;  %8089 = vmatprep.subr.bf16.mxu0 %v9221_v47  ;;  %v6542_v46 = vld [vmem:[%s10936_s10 + $0x7b8] sm:$0xff]  ;;  %v9276_v47 = vcombine.low %v6402_v31, %v6406_v32 }
 0x615   : > { %8130 = vmatprep.subr.bf16.mxu1 %v9349_v48  ;;  %v9404_v48 = vcombine.low %v6530_v33, %v6534_v34  ;;  %v9413_v49 = vcombine.high %v6538_v41, %v6542_v46 }
 0x617   : > { %8090 = vmatpush1.bf16.msra.mxu0 %v9220_v52  ;;  %v6546_v52 = vld [vmem:[%s10936_s10 + $0x7d8] sm:$0xff] }
 0x618   : > { %8131 = vmatpush1.bf16.msra.mxu1 %v9348_v54  ;;  %8091 = vmatprep.subr.bf16.mxu0 %v9229_v55  ;;  %v6550_v54 = vld [vmem:[%s10936_s10 + $0x7f8] sm:$0xff]  ;;  %v9284_v55 = vcombine.low %v6410_v39, %v6414_v40  ;;  %v6294_v40 = vld [vmem:[#allocation3 + $0x38] sm:$0xff] }
 0x619   : > { %8132 = vmatprep.subr.bf16.mxu1 %v9357_v56  ;;  %v9412_v56 = vcombine.low %v6538_v41, %v6542_v46  ;;  %v9421_v59 = vcombine.high %v6546_v52, %v6550_v54  ;;  %v9420_v61 = vcombine.low %v6546_v52, %v6550_v54 }
 0x61b   : > { %8092 = vmatpush1.bf16.msra.mxu0 %v9228_v63 }
 0x61c   : > { %8133 = vmatpush1.bf16.msra.mxu1 %v9356_v0  ;;  %8093 = vmatprep.subr.bf16.mxu0 %v9237_v2  ;;  %v6287_v0 = vld [vmem:[#allocation3] sm:$0xff] }
 0x61d   : > { %8134 = vmatprep.subr.bf16.mxu1 %v9365_v3 }
 0x61f   : > { %8094 = vmatpush1.bf16.msra.mxu0 %v9236_v8 }
 0x620   : > { %8135 = vmatpush1.bf16.msra.mxu1 %v9364_v10  ;;  %8095 = vmatprep.subr.bf16.mxu0 %v9245_v4 }
 0x621   : > { %8136 = vmatprep.subr.bf16.mxu1 %v9373_v11 }
 0x623   : > { %8096 = vmatpush1.bf16.msra.mxu0 %v9244_v22 }
 0x624   : > { %8137 = vmatpush1.bf16.msra.mxu1 %v9372_v9  ;;  %8097 = vmatprep.subr.bf16.mxu0 %v9253_v53  ;;  %v6290_v9 = vld [vmem:[#allocation3 + $0x18] sm:$0xff] }
 0x625   : > { %8138 = vmatprep.subr.bf16.mxu1 %v9381_v12 }
 0x627   : > { %8098 = vmatpush1.bf16.msra.mxu0 %v9252_v25 }
 0x628   : > { %8139 = vmatpush1.bf16.msra.mxu1 %v9380_v44  ;;  %8099 = vmatprep.subr.bf16.mxu0 %v9261_v26 }
 0x629   : > { %8140 = vmatprep.subr.bf16.mxu1 %v9389_v19  ;;  %v6291_v19 = vld [vmem:[#allocation3 + $0x20] sm:$0xff] }
 0x62b   : > { %8100 = vmatpush1.bf16.msra.mxu0 %v9260_v16 }
 0x62c   : > { %8141 = vmatpush1.bf16.msra.mxu1 %v9388_v13  ;;  %8101 = vmatprep.subr.bf16.mxu0 %v9269_v21 }
 0x62d   : > { %8142 = vmatprep.subr.bf16.mxu1 %v9397_v30 }
 0x62f   : > { %8102 = vmatpush1.bf16.msra.mxu0 %v9268_v35 }
 0x630   : > { %8143 = vmatpush1.bf16.msra.mxu1 %v9396_v36  ;;  %8103 = vmatprep.subr.bf16.mxu0 %v9277_v37  ;;  %v6293_v36 = vld [vmem:[#allocation3 + $0x30] sm:$0xff] }
 0x631   : > { %8144 = vmatprep.subr.bf16.mxu1 %v9405_v38 }
 0x633   : > { %8104 = vmatpush1.bf16.msra.mxu0 %v9276_v47 }
 0x634   : > { %8145 = vmatpush1.bf16.msra.mxu1 %v9404_v48  ;;  %8105 = vmatprep.subr.bf16.mxu0 %v9285_v57 }
 0x635   : > { %8146 = vmatprep.subr.bf16.mxu1 %v9413_v49 }
 0x637   : > { %8106 = vmatpush1.bf16.msra.mxu0 %v9284_v55 }
 0x638   : > { %8147 = vmatpush1.bf16.msra.mxu1 %v9412_v56  ;;  %8107 = vmatprep.subr.bf16.mxu0 %v9293_v58 }
 0x639   : > { %8148 = vmatprep.subr.bf16.mxu1 %v9421_v59 }
 0x63b   : > { %8108 = vmatpush1.bf16.msra.mxu0 %v9292_v60 }
 0x63c   : > { %8149 = vmatpush1.bf16.msra.mxu1 %v9420_v61 }
 0x63e   : > { %8110 = vmatmul.mubr.bf16.vlgmr.msra.gmra.mrb[16].mxu0 %v11625_v45  ;;  %v6289_v45 = vld [vmem:[#allocation3 + $0x10] sm:$0xff] }
 0x63f   : > { %8151 = vmatmul.mubr.bf16.vlgmr.msra.gmra.mrb[16].mxu1 %v11627_v51 }
 0x651   : > { %v7865_v63 = vpop.f32.mrb[4].mxu0  ;;  %v7906_v2 = vpop.f32.mrb[4].mxu1 }
 0x652   : > { %v7907_v3 = vadd.f32 %v7906_v2, %v7865_v63  ;;  %v7867_v62 = vpop.f32.mrb[5].mxu0  ;;  %v7908_v7 = vpop.f32.mrb[5].mxu1 }
 0x653   : > { %v7909_v1 = vadd.f32 %v7908_v7, %v7867_v62  ;;  %v7869_v8 = vpop.f32.mrb[6].mxu0  ;;  %v7910_v10 = vpop.f32.mrb[6].mxu1 }
 0x654   : > { %v8159_v4 = vadd.f32 %v7907_v3, %v6287_v0  ;;  %v7870_v11 = vpop.f32.mrb[7].mxu0  ;;  %v7911_v14 = vpop.f32.mrb[7].mxu1 }
 0x655   : > { %v8160_v5 = vadd.f32 %v7909_v1, %v6288_v6 }
 0x656   : > { %8167 = vst [vmem:[#allocation3] sm:$0xff] %v8159_v4 }
 0x657   : > { %8168 = vst [vmem:[#allocation3 + $0x8] sm:$0xff] %v8160_v5 }
 0x65d   : > { %v8179_v52 = vld [vmem:[#allocation3] sm:$0xff] (!%p9422_p4) }
 0x65e   : > { %v8180_v54 = vld [vmem:[#allocation3 + $0x8] sm:$0xff] (!%p9422_p4)  ;;  %8187 = vst [vmem:[%s10932_s20] sm:$0xff] (!%p9422_p4), %v8179_v52 }
 0x65f   : > { %8188 = vst [vmem:[%s10932_s20 + $0x8] sm:$0xff] (!%p9422_p4), %v8180_v54 }
 0x691   : > { %v7947_v15 = vpop.f32.mrb[8].mxu0  ;;  %v7988_v18 = vpop.f32.mrb[8].mxu1 }
 0x692   : > { %v7989_v51 = vadd.f32 %v7988_v18, %v7947_v15  ;;  %v7949_v22 = vpop.f32.mrb[9].mxu0  ;;  %v7990_v53 = vpop.f32.mrb[9].mxu1 }
 0x693   : > { %v7991_v12 = vadd.f32 %v7990_v53, %v7949_v22  ;;  %v7951_v23 = vpop.f32.mrb[10].mxu0  ;;  %v7992_v24 = vpop.f32.mrb[10].mxu1 }
 0x694   : > { %v8161_v17 = vadd.f32 %v7989_v51, %v6289_v45  ;;  %v7952_v43 = vpop.f32.mrb[11].mxu0  ;;  %v7993_v25 = vpop.f32.mrb[11].mxu1 }
 0x695   : > { %v8162_v44 = vadd.f32 %v7991_v12, %v6290_v9 }
 0x696   : > { %8169 = vst [vmem:[#allocation3 + $0x10] sm:$0xff] %v8161_v17 }
 0x697   : > { %8170 = vst [vmem:[#allocation3 + $0x18] sm:$0xff] %v8162_v44 }
 0x69d   : > { %v8181_v55 = vld [vmem:[#allocation3 + $0x10] sm:$0xff] (!%p9422_p4) }
 0x69e   : > { %8189 = vst [vmem:[%s10932_s20 + $0x10] sm:$0xff] (!%p9422_p4), %v8181_v55  ;;  %v8182_v56 = vld [vmem:[#allocation3 + $0x18] sm:$0xff] (!%p9422_p4) }
 0x69f   : > { %8190 = vst [vmem:[%s10932_s20 + $0x18] sm:$0xff] (!%p9422_p4), %v8182_v56 }
 0x6d1   : > { %v8029_v26 = vpop.f32.mrb[12].mxu0 }
 0x6d2   : > { %v8070_v27 = vpop.f32.mrb[12].mxu1  ;;  %v8031_v28 = vpop.f32.mrb[13].mxu0 }
 0x6d3   : > { %v8071_v20 = vadd.f32 %v8070_v27, %v8029_v26  ;;  %v8072_v16 = vpop.f32.mrb[13].mxu1  ;;  %v8033_v13 = vpop.f32.mrb[14].mxu0 }
 0x6d4   : > { %v8073_v21 = vadd.f32 %v8072_v16, %v8031_v28  ;;  %v8074_v30 = vpop.f32.mrb[14].mxu1  ;;  %v8034_v31 = vpop.f32.mrb[15].mxu0 }
 0x6d5   : > { %v8163_v32 = vadd.f32 %v8071_v20, %v6291_v19  ;;  %v8075_v33 = vpop.f32.mrb[15].mxu1 }
 0x6d6   : > { %v8164_v34 = vadd.f32 %v8073_v21, %v6292_v29 }
 0x6d7   : > { %8171 = vst [vmem:[#allocation3 + $0x20] sm:$0xff] %v8163_v32 }
 0x6d8   : > { %8172 = vst [vmem:[#allocation3 + $0x28] sm:$0xff] %v8164_v34 }
 0x6de   : > { %v8183_v58 = vld [vmem:[#allocation3 + $0x20] sm:$0xff] (!%p9422_p4) }
 0x6df   : > { %v8184_v59 = vld [vmem:[#allocation3 + $0x28] sm:$0xff] (!%p9422_p4)  ;;  %8191 = vst [vmem:[%s10932_s20 + $0x20] sm:$0xff] (!%p9422_p4), %v8183_v58 }
 0x6e0   : > { %8192 = vst [vmem:[%s10932_s20 + $0x28] sm:$0xff] (!%p9422_p4), %v8184_v59 }
 0x711   : > { %v8111_v35 = vpop.f32.mrb[16].mxu0 }
 0x712   : > { %v8152_v37 = vpop.f32.mrb[16].mxu1  ;;  %v8113_v38 = vpop.f32.mrb[17].mxu0  ;;  %8178 = sbr.rel (%p9422_p4) target bundleno = 1825 (0x721), region = 72 }
 0x713   : > { %v8153_v39 = vadd.f32 %v8152_v37, %v8111_v35  ;;  %v8154_v41 = vpop.f32.mrb[17].mxu1  ;;  %v8115_v46 = vpop.f32.mrb[18].mxu0 }
 0x714   : > { %v8155_v47 = vadd.f32 %v8154_v41, %v8113_v38  ;;  %v8156_v48 = vpop.f32.mrb[18].mxu1  ;;  %v8116_v57 = vpop.f32.mrb[19].mxu0 }
 0x715   : > { %v8165_v49 = vadd.f32 %v8153_v39, %v6293_v36  ;;  %v8157_v50 = vpop.f32.mrb[19].mxu1 }
 0x716   : > { %v8166_v42 = vadd.f32 %v8155_v47, %v6294_v40 }
 0x717   : > { %8173 = vst [vmem:[#allocation3 + $0x30] sm:$0xff] %v8165_v49 }
 0x718   : > { %8174 = vst [vmem:[#allocation3 + $0x38] sm:$0xff] %v8166_v42 }
 0x71e   : > { %v8185_v60 = vld [vmem:[#allocation3 + $0x30] sm:$0xff] }
 0x71f   : > { %v8186_v61 = vld [vmem:[#allocation3 + $0x38] sm:$0xff]  ;;  %8193 = vst [vmem:[%s10932_s20 + $0x30] sm:$0xff] %v8185_v60 }
 0x720   : > { %8194 = vst [vmem:[%s10932_s20 + $0x38] sm:$0xff] %v8186_v61 }
 0x721 PF: > { %s18_s28 = sadd.s32 1, %s10613_s28   ;;  %s11926_s3 = smov %s10829_s21 }
 0x722   : > { %p15_p11 = scmp.ge.s32.totalorder %s18_s28, 6   ;;  %s11927_s24 = sld [smem:[#allocation16_spill]] }
 0x723   : > { %s11928_s25 = sld [smem:[#allocation17_spill]]  ;;  %s11929_s26 = sld [smem:[#allocation18_spill]] }
 0x724   : > { %s11930_s27 = sld [smem:[#allocation19_spill]]  ;;  %s11931_s21 = smov %s10589_s22 }
 0x725   : > { %s11932_s22 = smov %s10593_s23  ;;  %s11933_s23 = smov %s11926_s3 }
 0x726   :  { %17 = sbr.rel (!%p15_p11) target bundleno = 10 (0xa), region = 121 }
 0x72d   :  { %8216 = vsyncpa [#allocation5], 1 }
 0x72e   :  { %8218 = vsyncpa [#allocation5 + $0x1], 1 }
 0x72f   :  { %8219 = vsyncpa [#allocation7], 1 }

</bundles_post_ra>
